<compile_context>
chip_gen: v7x
topology: tpu7x:2x2x1
jax: 0.10.0
libtpu: 0.0.40
codegen_flags: <defaults>
</compile_context>

<pallas_src>
import math

import jax
import jax.numpy as jnp
from jax import lax
from jax.experimental import pallas as pl
from jax.experimental.pallas import tpu as pltpu

_TWO_PI = 2.0 * math.pi


def _round_up(x, m):
    return ((x + m - 1) // m) * m


def _pick_tile(T, E):
    """Token-tile size + padded T: full T for small inputs, large 128-multiple tiles at scale."""
    if T <= 1024:
        return T, T                       # single tile; block dims == full array dims
    cap = 2048 if E <= 256 else (1024 if E <= 512 else 512)
    best_tile, best_pad = None, None
    tile = cap
    while tile >= 128:
        pad = _round_up(T, tile)
        if best_pad is None or pad < best_pad:
            best_tile, best_pad = tile, pad
        tile //= 2
    return best_tile, best_pad


# ------------------------------- parameters ---------------------------------

def init_params(key, embed_dim):
    def dense(k, din, dout):
        kw, kb = jax.random.split(k)
        w = jax.random.normal(kw, (din, dout), jnp.float32) / math.sqrt(din)
        b = 0.01 * jax.random.normal(kb, (dout,), jnp.float32)
        return (w, b)

    def mlp(k, din, dout, num_layers):
        hidden = max(din, dout)
        ks = jax.random.split(k, num_layers)
        layers = [dense(ks[0], din, hidden)]
        for kk in ks[1:-1]:
            layers.append(dense(kk, hidden, hidden))
        layers.append(dense(ks[-1], hidden, dout))
        return layers

    keys = jax.random.split(key, 10)
    E = embed_dim
    return {
        "embed_dim": E,
        "FFM": jax.random.normal(keys[0], (2, E // 2), jnp.float32),
        "phi_in": jax.random.normal(keys[1], (2, E // 2), jnp.float32),
        "xt_in": mlp(keys[2], E, E, 4),
        "fx": mlp(keys[3], E, E, 2),
        "period_in": mlp(keys[4], 1, E, 2),
        "mag_in": mlp(keys[5], 1, E, 2),
        "f_deep": mlp(keys[6], E, 1, 5),
        "phi_deep": mlp(keys[7], E, 1, 5),
        "mag_ln": (jnp.ones((E,), jnp.float32), jnp.zeros((E,), jnp.float32)),
        "period_ln": (jnp.ones((E,), jnp.float32), jnp.zeros((E,), jnp.float32)),
        "ln1": (jnp.ones((E,), jnp.float32), jnp.zeros((E,), jnp.float32)),
    }


# ------------------------------ fused forward --------------------------------

def model_forward(params, mag, period, t, x):
    """Equivalent of Model.forward(mag, period, t=t, x=x) (the x-is-not-None branch)."""
    B, T = t.shape
    E = params["embed_dim"]
    half = E // 2
    f32 = jnp.float32

    # ---- per-batch conditioner chain (tiny; hoisted out of the kernel) -------
    def _mlp(h, layers):
        w, b = layers[0]
        h = jax.nn.relu(h @ w + b)
        for w, b in layers[1:-1]:
            h = h + jax.nn.relu(h @ w + b)
        w, b = layers[-1]
        return h @ w + b

    def _ln(v, g, be, eps=1e-5):
        mu = v.mean(-1, keepdims=True)
        var = ((v - mu) ** 2).mean(-1, keepdims=True)
        return (v - mu) / jnp.sqrt(var + eps) * g + be

    mag_e = _mlp(mag.astype(f32), params["mag_in"])                       # [B, E]
    per_e = _mlp(period.astype(f32), params["period_in"])                 # [B, E]
    fx_in = _ln(mag_e, *params["mag_ln"]) * _ln(per_e, *params["period_ln"])
    fxo = _mlp(fx_in, params["fx"])                                       # [B, E]
    cond = jnp.stack([fx_in, fxo], axis=1)[:, :, None, :].astype(f32)     # [B, 2, 1, E]

    # ---- token inputs: pad T to a tile multiple; stack [x | t] ---------------
    TILE_T, T_pad = _pick_tile(T, E)
    n_tt = T_pad // TILE_T
    if T_pad != T:
        padw = ((0, 0), (0, T_pad - T))
        x_p = jnp.pad(x, padw)
        t_p = jnp.pad(t, padw)
    else:
        x_p, t_p = x, t
    tx = jnp.stack([x_p, t_p], axis=1)[..., None].astype(f32)             # [B, 2, T_pad, 1]

    # ---- kernel-resident weights ---------------------------------------------
    flat = []

    def add(a):
        flat.append(jnp.asarray(a, f32))
        return len(flat) - 1

    plan = {}

    def ffm_mat(Bm):
        # phase trick: fold 2*pi into B and duplicate to full width (sin|cos halves)
        return add(jnp.concatenate([Bm, Bm], axis=1) * _TWO_PI)           # (2, E)

    plan["FFM"] = ffm_mat(params["FFM"])
    plan["phi_in"] = ffm_mat(params["phi_in"])
    plan["phase"] = add(jnp.concatenate(
        [jnp.zeros((1, half), f32), jnp.full((1, half), 0.5 * math.pi, f32)],
        axis=1))                                                          # (1, E)

    def add_mlp(name, layers, head=False):
        ent = []
        n = len(layers)
        for li, (w, b) in enumerate(layers):
            if head and li == n - 1:
                # final E->1 head layer stored as a row (1, E): head becomes a VPU
                # multiply + lane reduction (no M=1 / width-1 MXU work).
                ent.append((add(w.T), add(b.reshape(1, 1))))
            else:
                ent.append((add(w), add(b.reshape(1, -1))))
        plan[name] = ent

    add_mlp("xt_in", params["xt_in"])
    add_mlp("phi_deep", params["phi_deep"], head=True)
    add_mlp("f_deep", params["f_deep"], head=True)
    g1, be1 = params["ln1"]
    plan["ln1"] = (add(g1.reshape(1, -1)), add(be1.reshape(1, -1)))

    n_w = len(flat)

    # ---- the single fused kernel ----------------------------------------------
    def kernel(*refs):
        cond_ref, tx_ref = refs[0], refs[1]
        wrefs = refs[2:2 + n_w]
        o_ref = refs[2 + n_w]

        def get(i):
            return wrefs[i][...]

        def relu(v):
            return jnp.maximum(v, 0.0)

        def dense(h, W, b):
            return jnp.dot(h, W, preferred_element_type=f32) + b

        def load_mlp(name):
            return [(get(wi), get(bi)) for wi, bi in plan[name]]

        def mlp_full(h, layers):
            W, b = layers[0]
            h = relu(dense(h, W, b))
            for W, b in layers[1:-1]:
                h = h + relu(dense(h, W, b))
            W, b = layers[-1]
            return dense(h, W, b)

        def mlp_trunk(h, layers):
            # all layers except the (row-form) E->1 head
            W, b = layers[0]
            h = relu(dense(h, W, b))
            for W, b in layers[1:-1]:
                h = h + relu(dense(h, W, b))
            return h

        def head(h, layers):
            wT, bT = layers[-1]                                   # (1, E), (1, 1)
            col = jnp.sum(h * wT, axis=-1, keepdims=True) + bT    # [TILE_T, 1]
            return col, col.reshape(1, TILE_T)                    # tiny col->row transpose

        def layernorm(v, g, be, eps=1e-5):
            mu = jnp.mean(v, axis=-1, keepdims=True)
            var = jnp.mean(jnp.square(v - mu), axis=-1, keepdims=True)
            return (v - mu) * lax.rsqrt(var + eps) * g + be

        phase = get(plan["phase"])                                # (1, E)

        def ffm(a_col, b_col, Bc):
            # K=2 contraction as two rank-1 VPU broadcasts; sin/cos via phase offset
            # (cos(z) = sin(z + pi/2)), no concat, no scratch round trip.
            return jnp.sin(a_col * Bc[0:1, :] + b_col * Bc[1:2, :] + phase)

        # per-batch conditioners (precomputed in the wrapper)
        fx_in_row = cond_ref[0, 0]                                # [1, E]
        fxo_row = cond_ref[0, 1]                                  # [1, E]

        x_col = tx_ref[0, 0]                                      # [TILE_T, 1]
        t_col = tx_ref[0, 1]                                      # [TILE_T, 1]

        xt = ffm(x_col, t_col, get(plan["FFM"]))                  # [TILE_T, E]
        xt = mlp_full(xt, load_mlp("xt_in"))                      # [TILE_T, E]
        emed = fx_in_row * xt                                     # [TILE_T, E]

        phi_layers = load_mlp("phi_deep")
        phi_col, phi_row = head(mlp_trunk(emed, phi_layers), phi_layers)
        o_ref[0, 0] = phi_row                                     # lane-dense [1, TILE_T]

        phi_t = ffm(phi_col, t_col, get(plan["phi_in"]))          # [TILE_T, E]

        fx_op = layernorm(fxo_row + phi_t, *[get(i) for i in plan["ln1"]])
        op_in = fx_op * phi_t                                     # [TILE_T, E]

        f_layers = load_mlp("f_deep")
        _, out_row = head(mlp_trunk(op_in, f_layers), f_layers)
        o_ref[0, 1] = out_row                                     # lane-dense [1, TILE_T]

    # ---- pallas_call -----------------------------------------------------------
    def run(single_buffer_weights):
        if single_buffer_weights:
            def w_spec(a):
                # constant index_map -> block never changes; single-buffer the
                # resident weights to halve their VMEM footprint.
                return pl.BlockSpec(a.shape, lambda b, tt: (0, 0),
                                    pipeline_mode=pl.Buffered(1))
        else:
            def w_spec(a):
                return pl.BlockSpec(a.shape, lambda b, tt: (0, 0))

        in_specs = [
            pl.BlockSpec((1, 2, 1, E), lambda b, tt: (b, 0, 0, 0)),         # cond (fx_in, fxo)
            pl.BlockSpec((1, 2, TILE_T, 1), lambda b, tt: (b, 0, tt, 0)),   # [x | t]
        ] + [w_spec(a) for a in flat]
        out_spec = pl.BlockSpec((1, 2, 1, TILE_T), lambda b, tt: (b, 0, 0, tt))

        res = pl.pallas_call(
            kernel,
            grid=(B, n_tt),
            in_specs=in_specs,
            out_specs=out_spec,
            out_shape=jax.ShapeDtypeStruct((B, 2, 1, T_pad), f32),
            compiler_params=pltpu.CompilerParams(
                dimension_semantics=("parallel", "parallel"),
                vmem_limit_bytes=64 * 1024 * 1024),
        )(cond, tx, *flat)
        return jax.block_until_ready(res)

    try:
        merged = run(True)
    except Exception:
        # pl.Buffered(1) / pipeline_mode unsupported on this jax version ->
        # fall back to default double-buffered weight blocks (same kernel).
        merged = run(False)

    phi = merged[:, 0, 0, :T]                                     # [B, T]
    out = merged[:, 1, 0, :T].reshape(B, T, 1)                    # [B, T, 1]
    tao = t   # clone/detach/requires_grad has no forward-pass effect
    return phi, out, tao


# --------------------------- pure-JAX reference ------------------------------

def _reference_forward(params, mag, period, t, x):
    E = params["embed_dim"]
    B, T = t.shape
    N = B * T

    def mlp(xv, layers):
        w, b = layers[0]
        h = jax.nn.relu(xv @ w + b)
        for w, b in layers[1:-1]:
            h = h + jax.nn.relu(h @ w + b)
        w, b = layers[-1]
        return h @ w + b

    def ln(v, g, be, eps=1e-5):
        mu = v.mean(-1, keepdims=True)
        var = ((v - mu) ** 2).mean(-1, keepdims=True)
        return (v - mu) / jnp.sqrt(var + eps) * g + be

    def ffm(v, Bm):
        proj = _TWO_PI * (v @ Bm)
        return jnp.concatenate([jnp.sin(proj), jnp.cos(proj)], axis=-1)

    mag_r = jnp.repeat(mlp(mag, params["mag_in"]), T, axis=0)
    per_r = jnp.repeat(mlp(period, params["period_in"]), T, axis=0)
    mag_n = ln(mag_r, *params["mag_ln"])
    per_n = ln(per_r, *params["period_ln"])
    fx_in = mag_n * per_n
    xt = ffm(jnp.stack([x, t], axis=-1).reshape(N, 2), params["FFM"])
    xt = mlp(xt, params["xt_in"])
    emed = fx_in * xt
    phi = mlp(emed, params["phi_deep"]).reshape(B, T)
    tao = t
    phi_t = ffm(jnp.stack([phi, tao], axis=-1).reshape(N, 2), params["phi_in"])
    fx_op = ln(mlp(fx_in, params["fx"]) + phi_t, *params["ln1"])
    op_in = fx_op * phi_t
    out = mlp(op_in, params["f_deep"]).reshape(B, T, 1)
    return phi, out, tao


# ----------------------------------- main ------------------------------------

if __name__ == "__main__":
    EMBED_DIM = 32
    B, T = 2, 8

    key = jax.random.PRNGKey(0)
    kp, kmag, kper, kt, kx = jax.random.split(key, 5)

    params = init_params(kp, EMBED_DIM)
    mag = jax.random.normal(kmag, (B, 1), jnp.float32)
    period = jax.random.normal(kper, (B, 1), jnp.float32)
    t = jax.random.uniform(kt, (B, T), jnp.float32)
    x = jax.random.uniform(kx, (B, T), jnp.float32)

    phi, out, tao = model_forward(params, mag, period, t, x)
    jax.block_until_ready((phi, out, tao))

    assert phi.shape == (B, T)
    assert out.shape == (B, T, 1)
    assert tao.shape == (B, T)

    # sanity check against a pure-JAX reference (loose tol: MXU vs XLA matmuls)
    phi_ref, out_ref, _ = _reference_forward(params, mag, period, t, x)
    assert jnp.allclose(phi, phi_ref, atol=1e-2, rtol=1e-2)
    assert jnp.allclose(out, out_ref, atol=1e-2, rtol=1e-2)

    print("KERNEL_OK")
</pallas_src>

<mosaic_0001>
module attributes {stable_mosaic.version = 11 : i64} {
  func.func @kernel(%arg0: i32, %arg1: i32, %arg2: memref<1x2x1x32xf32, #tpu.memory_space<vmem>>, %arg3: memref<1x2x8x1xf32, #tpu.memory_space<vmem>>, %arg4: memref<2x32xf32, #tpu.memory_space<vmem>>, %arg5: memref<2x32xf32, #tpu.memory_space<vmem>>, %arg6: memref<1x32xf32, #tpu.memory_space<vmem>>, %arg7: memref<32x32xf32, #tpu.memory_space<vmem>>, %arg8: memref<1x32xf32, #tpu.memory_space<vmem>>, %arg9: memref<32x32xf32, #tpu.memory_space<vmem>>, %arg10: memref<1x32xf32, #tpu.memory_space<vmem>>, %arg11: memref<32x32xf32, #tpu.memory_space<vmem>>, %arg12: memref<1x32xf32, #tpu.memory_space<vmem>>, %arg13: memref<32x32xf32, #tpu.memory_space<vmem>>, %arg14: memref<1x32xf32, #tpu.memory_space<vmem>>, %arg15: memref<32x32xf32, #tpu.memory_space<vmem>>, %arg16: memref<1x32xf32, #tpu.memory_space<vmem>>, %arg17: memref<32x32xf32, #tpu.memory_space<vmem>>, %arg18: memref<1x32xf32, #tpu.memory_space<vmem>>, %arg19: memref<32x32xf32, #tpu.memory_space<vmem>>, %arg20: memref<1x32xf32, #tpu.memory_space<vmem>>, %arg21: memref<32x32xf32, #tpu.memory_space<vmem>>, %arg22: memref<1x32xf32, #tpu.memory_space<vmem>>, %arg23: memref<1x32xf32, #tpu.memory_space<vmem>>, %arg24: memref<1x1xf32, #tpu.memory_space<vmem>>, %arg25: memref<32x32xf32, #tpu.memory_space<vmem>>, %arg26: memref<1x32xf32, #tpu.memory_space<vmem>>, %arg27: memref<32x32xf32, #tpu.memory_space<vmem>>, %arg28: memref<1x32xf32, #tpu.memory_space<vmem>>, %arg29: memref<32x32xf32, #tpu.memory_space<vmem>>, %arg30: memref<1x32xf32, #tpu.memory_space<vmem>>, %arg31: memref<32x32xf32, #tpu.memory_space<vmem>>, %arg32: memref<1x32xf32, #tpu.memory_space<vmem>>, %arg33: memref<1x32xf32, #tpu.memory_space<vmem>>, %arg34: memref<1x1xf32, #tpu.memory_space<vmem>>, %arg35: memref<1x32xf32, #tpu.memory_space<vmem>>, %arg36: memref<1x32xf32, #tpu.memory_space<vmem>>, %arg37: memref<1x2x1x8xf32, #tpu.memory_space<vmem>>) attributes {dimension_semantics = [#tpu.dimension_semantics<parallel>, #tpu.dimension_semantics<parallel>], iteration_bounds = array<i64: 2, 1>, scalar_prefetch = 0 : i64, scratch_operands = 0 : i64, tpu.core_type = #tpu.core_type<tc>, window_params = [{transform_indices = @transform_0, window_bounds = array<i64: 1, 2, 1, 32>}, {transform_indices = @transform_1, window_bounds = array<i64: 1, 2, 8, 1>}, {pipeline_mode = #tpu.pipeline_mode<synchronous>, transform_indices = @transform_2, window_bounds = array<i64: 2, 32>}, {pipeline_mode = #tpu.pipeline_mode<synchronous>, transform_indices = @transform_3, window_bounds = array<i64: 2, 32>}, {pipeline_mode = #tpu.pipeline_mode<synchronous>, transform_indices = @transform_4, window_bounds = array<i64: 1, 32>}, {pipeline_mode = #tpu.pipeline_mode<synchronous>, transform_indices = @transform_5, window_bounds = array<i64: 32, 32>}, {pipeline_mode = #tpu.pipeline_mode<synchronous>, transform_indices = @transform_6, window_bounds = array<i64: 1, 32>}, {pipeline_mode = #tpu.pipeline_mode<synchronous>, transform_indices = @transform_7, window_bounds = array<i64: 32, 32>}, {pipeline_mode = #tpu.pipeline_mode<synchronous>, transform_indices = @transform_8, window_bounds = array<i64: 1, 32>}, {pipeline_mode = #tpu.pipeline_mode<synchronous>, transform_indices = @transform_9, window_bounds = array<i64: 32, 32>}, {pipeline_mode = #tpu.pipeline_mode<synchronous>, transform_indices = @transform_10, window_bounds = array<i64: 1, 32>}, {pipeline_mode = #tpu.pipeline_mode<synchronous>, transform_indices = @transform_11, window_bounds = array<i64: 32, 32>}, {pipeline_mode = #tpu.pipeline_mode<synchronous>, transform_indices = @transform_12, window_bounds = array<i64: 1, 32>}, {pipeline_mode = #tpu.pipeline_mode<synchronous>, transform_indices = @transform_13, window_bounds = array<i64: 32, 32>}, {pipeline_mode = #tpu.pipeline_mode<synchronous>, transform_indices = @transform_14, window_bounds = array<i64: 1, 32>}, {pipeline_mode = #tpu.pipeline_mode<synchronous>, transform_indices = @transform_15, window_bounds = array<i64: 32, 32>}, {pipeline_mode = #tpu.pipeline_mode<synchronous>, transform_indices = @transform_16, window_bounds = array<i64: 1, 32>}, {pipeline_mode = #tpu.pipeline_mode<synchronous>, transform_indices = @transform_17, window_bounds = array<i64: 32, 32>}, {pipeline_mode = #tpu.pipeline_mode<synchronous>, transform_indices = @transform_18, window_bounds = array<i64: 1, 32>}, {pipeline_mode = #tpu.pipeline_mode<synchronous>, transform_indices = @transform_19, window_bounds = array<i64: 32, 32>}, {pipeline_mode = #tpu.pipeline_mode<synchronous>, transform_indices = @transform_20, window_bounds = array<i64: 1, 32>}, {pipeline_mode = #tpu.pipeline_mode<synchronous>, transform_indices = @transform_21, window_bounds = array<i64: 1, 32>}, {pipeline_mode = #tpu.pipeline_mode<synchronous>, transform_indices = @transform_22, window_bounds = array<i64: 1, 1>}, {pipeline_mode = #tpu.pipeline_mode<synchronous>, transform_indices = @transform_23, window_bounds = array<i64: 32, 32>}, {pipeline_mode = #tpu.pipeline_mode<synchronous>, transform_indices = @transform_24, window_bounds = array<i64: 1, 32>}, {pipeline_mode = #tpu.pipeline_mode<synchronous>, transform_indices = @transform_25, window_bounds = array<i64: 32, 32>}, {pipeline_mode = #tpu.pipeline_mode<synchronous>, transform_indices = @transform_26, window_bounds = array<i64: 1, 32>}, {pipeline_mode = #tpu.pipeline_mode<synchronous>, transform_indices = @transform_27, window_bounds = array<i64: 32, 32>}, {pipeline_mode = #tpu.pipeline_mode<synchronous>, transform_indices = @transform_28, window_bounds = array<i64: 1, 32>}, {pipeline_mode = #tpu.pipeline_mode<synchronous>, transform_indices = @transform_29, window_bounds = array<i64: 32, 32>}, {pipeline_mode = #tpu.pipeline_mode<synchronous>, transform_indices = @transform_30, window_bounds = array<i64: 1, 32>}, {pipeline_mode = #tpu.pipeline_mode<synchronous>, transform_indices = @transform_31, window_bounds = array<i64: 1, 32>}, {pipeline_mode = #tpu.pipeline_mode<synchronous>, transform_indices = @transform_32, window_bounds = array<i64: 1, 1>}, {pipeline_mode = #tpu.pipeline_mode<synchronous>, transform_indices = @transform_33, window_bounds = array<i64: 1, 32>}, {pipeline_mode = #tpu.pipeline_mode<synchronous>, transform_indices = @transform_34, window_bounds = array<i64: 1, 32>}, {transform_indices = @transform_35, window_bounds = array<i64: 1, 2, 1, 8>}]} {
    %c0 = arith.constant 0 : index
    %c0_0 = arith.constant 0 : index
    %0 = vector.load %arg6[%c0, %c0_0] : memref<1x32xf32, #tpu.memory_space<vmem>>, vector<1x32xf32>
    %c0_1 = arith.constant 0 : index
    %c0_2 = arith.constant 0 : index
    %c0_3 = arith.constant 0 : index
    %c0_4 = arith.constant 0 : index
    %1 = vector.load %arg2[%c0_1, %c0_2, %c0_3, %c0_4] : memref<1x2x1x32xf32, #tpu.memory_space<vmem>>, vector<1x1x1x32xf32>
    %2 = vector.shape_cast %1 : vector<1x1x1x32xf32> to vector<1x32xf32>
    %c0_5 = arith.constant 0 : index
    %c1 = arith.constant 1 : index
    %c0_6 = arith.constant 0 : index
    %c0_7 = arith.constant 0 : index
    %3 = vector.load %arg2[%c0_5, %c1, %c0_6, %c0_7] : memref<1x2x1x32xf32, #tpu.memory_space<vmem>>, vector<1x1x1x32xf32>
    %4 = vector.shape_cast %3 : vector<1x1x1x32xf32> to vector<1x32xf32>
    %c0_8 = arith.constant 0 : index
    %c0_9 = arith.constant 0 : index
    %c0_10 = arith.constant 0 : index
    %c0_11 = arith.constant 0 : index
    %5 = vector.load %arg3[%c0_8, %c0_9, %c0_10, %c0_11] : memref<1x2x8x1xf32, #tpu.memory_space<vmem>>, vector<1x1x8x1xf32>
    %6 = vector.shape_cast %5 : vector<1x1x8x1xf32> to vector<8x1xf32>
    %c0_12 = arith.constant 0 : index
    %c1_13 = arith.constant 1 : index
    %c0_14 = arith.constant 0 : index
    %c0_15 = arith.constant 0 : index
    %7 = vector.load %arg3[%c0_12, %c1_13, %c0_14, %c0_15] : memref<1x2x8x1xf32, #tpu.memory_space<vmem>>, vector<1x1x8x1xf32>
    %8 = vector.shape_cast %7 : vector<1x1x8x1xf32> to vector<8x1xf32>
    %c0_16 = arith.constant 0 : index
    %c0_17 = arith.constant 0 : index
    %9 = vector.load %arg4[%c0_16, %c0_17] : memref<2x32xf32, #tpu.memory_space<vmem>>, vector<2x32xf32>
    %10 = vector.extract_strided_slice %9 {offsets = [0, 0], sizes = [1, 32], strides = [1, 1]} : vector<2x32xf32> to vector<1x32xf32>
    %11 = vector.broadcast %6 : vector<8x1xf32> to vector<8x32xf32>
    %12 = vector.broadcast %10 : vector<1x32xf32> to vector<8x32xf32>
    %13 = arith.mulf %11, %12 : vector<8x32xf32>
    %14 = vector.extract_strided_slice %9 {offsets = [1, 0], sizes = [1, 32], strides = [1, 1]} : vector<2x32xf32> to vector<1x32xf32>
    %15 = vector.broadcast %8 : vector<8x1xf32> to vector<8x32xf32>
    %16 = vector.broadcast %14 : vector<1x32xf32> to vector<8x32xf32>
    %17 = arith.mulf %15, %16 : vector<8x32xf32>
    %18 = arith.addf %13, %17 : vector<8x32xf32>
    %19 = vector.broadcast %0 : vector<1x32xf32> to vector<8x32xf32>
    %20 = arith.addf %18, %19 : vector<8x32xf32>
    %21 = math.sin %20 : vector<8x32xf32>
    %c0_18 = arith.constant 0 : index
    %c0_19 = arith.constant 0 : index
    %22 = vector.load %arg7[%c0_18, %c0_19] : memref<32x32xf32, #tpu.memory_space<vmem>>, vector<32x32xf32>
    %c0_20 = arith.constant 0 : index
    %c0_21 = arith.constant 0 : index
    %23 = vector.load %arg8[%c0_20, %c0_21] : memref<1x32xf32, #tpu.memory_space<vmem>>, vector<1x32xf32>
    %c0_22 = arith.constant 0 : index
    %c0_23 = arith.constant 0 : index
    %24 = vector.load %arg9[%c0_22, %c0_23] : memref<32x32xf32, #tpu.memory_space<vmem>>, vector<32x32xf32>
    %c0_24 = arith.constant 0 : index
    %c0_25 = arith.constant 0 : index
    %25 = vector.load %arg10[%c0_24, %c0_25] : memref<1x32xf32, #tpu.memory_space<vmem>>, vector<1x32xf32>
    %c0_26 = arith.constant 0 : index
    %c0_27 = arith.constant 0 : index
    %26 = vector.load %arg11[%c0_26, %c0_27] : memref<32x32xf32, #tpu.memory_space<vmem>>, vector<32x32xf32>
    %c0_28 = arith.constant 0 : index
    %c0_29 = arith.constant 0 : index
    %27 = vector.load %arg12[%c0_28, %c0_29] : memref<1x32xf32, #tpu.memory_space<vmem>>, vector<1x32xf32>
    %c0_30 = arith.constant 0 : index
    %c0_31 = arith.constant 0 : index
    %28 = vector.load %arg13[%c0_30, %c0_31] : memref<32x32xf32, #tpu.memory_space<vmem>>, vector<32x32xf32>
    %c0_32 = arith.constant 0 : index
    %c0_33 = arith.constant 0 : index
    %29 = vector.load %arg14[%c0_32, %c0_33] : memref<1x32xf32, #tpu.memory_space<vmem>>, vector<1x32xf32>
    %cst = arith.constant dense<0.000000e+00> : vector<8x32xf32>
    %30 = tpu.matmul %21, %22, %cst {dimension_numbers = #tpu.dot_dimension_numbers<[1], [0], [0], [1], [0, 0, 1, 1], [], []>} : vector<8x32xf32>, vector<32x32xf32>, vector<8x32xf32> -> vector<8x32xf32>
    %31 = vector.broadcast %23 : vector<1x32xf32> to vector<8x32xf32>
    %32 = arith.addf %30, %31 : vector<8x32xf32>
    %cst_34 = arith.constant 0.000000e+00 : f32
    %33 = vector.broadcast %cst_34 : f32 to vector<8x32xf32>
    %34 = arith.maximumf %32, %33 : vector<8x32xf32>
    %cst_35 = arith.constant dense<0.000000e+00> : vector<8x32xf32>
    %35 = tpu.matmul %34, %24, %cst_35 {dimension_numbers = #tpu.dot_dimension_numbers<[1], [0], [0], [1], [0, 0, 1, 1], [], []>} : vector<8x32xf32>, vector<32x32xf32>, vector<8x32xf32> -> vector<8x32xf32>
    %36 = vector.broadcast %25 : vector<1x32xf32> to vector<8x32xf32>
    %37 = arith.addf %35, %36 : vector<8x32xf32>
    %cst_36 = arith.constant 0.000000e+00 : f32
    %38 = vector.broadcast %cst_36 : f32 to vector<8x32xf32>
    %39 = arith.maximumf %37, %38 : vector<8x32xf32>
    %40 = arith.addf %34, %39 : vector<8x32xf32>
    %cst_37 = arith.constant dense<0.000000e+00> : vector<8x32xf32>
    %41 = tpu.matmul %40, %26, %cst_37 {dimension_numbers = #tpu.dot_dimension_numbers<[1], [0], [0], [1], [0, 0, 1, 1], [], []>} : vector<8x32xf32>, vector<32x32xf32>, vector<8x32xf32> -> vector<8x32xf32>
    %42 = vector.broadcast %27 : vector<1x32xf32> to vector<8x32xf32>
    %43 = arith.addf %41, %42 : vector<8x32xf32>
    %cst_38 = arith.constant 0.000000e+00 : f32
    %44 = vector.broadcast %cst_38 : f32 to vector<8x32xf32>
    %45 = arith.maximumf %43, %44 : vector<8x32xf32>
    %46 = arith.addf %40, %45 : vector<8x32xf32>
    %cst_39 = arith.constant dense<0.000000e+00> : vector<8x32xf32>
    %47 = tpu.matmul %46, %28, %cst_39 {dimension_numbers = #tpu.dot_dimension_numbers<[1], [0], [0], [1], [0, 0, 1, 1], [], []>} : vector<8x32xf32>, vector<32x32xf32>, vector<8x32xf32> -> vector<8x32xf32>
    %48 = vector.broadcast %29 : vector<1x32xf32> to vector<8x32xf32>
    %49 = arith.addf %47, %48 : vector<8x32xf32>
    %50 = vector.broadcast %2 : vector<1x32xf32> to vector<8x32xf32>
    %51 = arith.mulf %50, %49 : vector<8x32xf32>
    %c0_40 = arith.constant 0 : index
    %c0_41 = arith.constant 0 : index
    %52 = vector.load %arg15[%c0_40, %c0_41] : memref<32x32xf32, #tpu.memory_space<vmem>>, vector<32x32xf32>
    %c0_42 = arith.constant 0 : index
    %c0_43 = arith.constant 0 : index
    %53 = vector.load %arg16[%c0_42, %c0_43] : memref<1x32xf32, #tpu.memory_space<vmem>>, vector<1x32xf32>
    %c0_44 = arith.constant 0 : index
    %c0_45 = arith.constant 0 : index
    %54 = vector.load %arg17[%c0_44, %c0_45] : memref<32x32xf32, #tpu.memory_space<vmem>>, vector<32x32xf32>
    %c0_46 = arith.constant 0 : index
    %c0_47 = arith.constant 0 : index
    %55 = vector.load %arg18[%c0_46, %c0_47] : memref<1x32xf32, #tpu.memory_space<vmem>>, vector<1x32xf32>
    %c0_48 = arith.constant 0 : index
    %c0_49 = arith.constant 0 : index
    %56 = vector.load %arg19[%c0_48, %c0_49] : memref<32x32xf32, #tpu.memory_space<vmem>>, vector<32x32xf32>
    %c0_50 = arith.constant 0 : index
    %c0_51 = arith.constant 0 : index
    %57 = vector.load %arg20[%c0_50, %c0_51] : memref<1x32xf32, #tpu.memory_space<vmem>>, vector<1x32xf32>
    %c0_52 = arith.constant 0 : index
    %c0_53 = arith.constant 0 : index
    %58 = vector.load %arg21[%c0_52, %c0_53] : memref<32x32xf32, #tpu.memory_space<vmem>>, vector<32x32xf32>
    %c0_54 = arith.constant 0 : index
    %c0_55 = arith.constant 0 : index
    %59 = vector.load %arg22[%c0_54, %c0_55] : memref<1x32xf32, #tpu.memory_space<vmem>>, vector<1x32xf32>
    %c0_56 = arith.constant 0 : index
    %c0_57 = arith.constant 0 : index
    %60 = vector.load %arg23[%c0_56, %c0_57] : memref<1x32xf32, #tpu.memory_space<vmem>>, vector<1x32xf32>
    %c0_58 = arith.constant 0 : index
    %c0_59 = arith.constant 0 : index
    %61 = vector.load %arg24[%c0_58, %c0_59] : memref<1x1xf32, #tpu.memory_space<vmem>>, vector<1x1xf32>
    %cst_60 = arith.constant dense<0.000000e+00> : vector<8x32xf32>
    %62 = tpu.matmul %51, %52, %cst_60 {dimension_numbers = #tpu.dot_dimension_numbers<[1], [0], [0], [1], [0, 0, 1, 1], [], []>} : vector<8x32xf32>, vector<32x32xf32>, vector<8x32xf32> -> vector<8x32xf32>
    %63 = vector.broadcast %53 : vector<1x32xf32> to vector<8x32xf32>
    %64 = arith.addf %62, %63 : vector<8x32xf32>
    %cst_61 = arith.constant 0.000000e+00 : f32
    %65 = vector.broadcast %cst_61 : f32 to vector<8x32xf32>
    %66 = arith.maximumf %64, %65 : vector<8x32xf32>
    %cst_62 = arith.constant dense<0.000000e+00> : vector<8x32xf32>
    %67 = tpu.matmul %66, %54, %cst_62 {dimension_numbers = #tpu.dot_dimension_numbers<[1], [0], [0], [1], [0, 0, 1, 1], [], []>} : vector<8x32xf32>, vector<32x32xf32>, vector<8x32xf32> -> vector<8x32xf32>
    %68 = vector.broadcast %55 : vector<1x32xf32> to vector<8x32xf32>
    %69 = arith.addf %67, %68 : vector<8x32xf32>
    %cst_63 = arith.constant 0.000000e+00 : f32
    %70 = vector.broadcast %cst_63 : f32 to vector<8x32xf32>
    %71 = arith.maximumf %69, %70 : vector<8x32xf32>
    %72 = arith.addf %66, %71 : vector<8x32xf32>
    %cst_64 = arith.constant dense<0.000000e+00> : vector<8x32xf32>
    %73 = tpu.matmul %72, %56, %cst_64 {dimension_numbers = #tpu.dot_dimension_numbers<[1], [0], [0], [1], [0, 0, 1, 1], [], []>} : vector<8x32xf32>, vector<32x32xf32>, vector<8x32xf32> -> vector<8x32xf32>
    %74 = vector.broadcast %57 : vector<1x32xf32> to vector<8x32xf32>
    %75 = arith.addf %73, %74 : vector<8x32xf32>
    %cst_65 = arith.constant 0.000000e+00 : f32
    %76 = vector.broadcast %cst_65 : f32 to vector<8x32xf32>
    %77 = arith.maximumf %75, %76 : vector<8x32xf32>
    %78 = arith.addf %72, %77 : vector<8x32xf32>
    %cst_66 = arith.constant dense<0.000000e+00> : vector<8x32xf32>
    %79 = tpu.matmul %78, %58, %cst_66 {dimension_numbers = #tpu.dot_dimension_numbers<[1], [0], [0], [1], [0, 0, 1, 1], [], []>} : vector<8x32xf32>, vector<32x32xf32>, vector<8x32xf32> -> vector<8x32xf32>
    %80 = vector.broadcast %59 : vector<1x32xf32> to vector<8x32xf32>
    %81 = arith.addf %79, %80 : vector<8x32xf32>
    %cst_67 = arith.constant 0.000000e+00 : f32
    %82 = vector.broadcast %cst_67 : f32 to vector<8x32xf32>
    %83 = arith.maximumf %81, %82 : vector<8x32xf32>
    %84 = arith.addf %78, %83 : vector<8x32xf32>
    %85 = vector.broadcast %60 : vector<1x32xf32> to vector<8x32xf32>
    %86 = arith.mulf %84, %85 : vector<8x32xf32>
    %cst_68 = arith.constant dense<0.000000e+00> : vector<8xf32>
    %87 = vector.multi_reduction <add>, %86, %cst_68 [1] : vector<8x32xf32> to vector<8xf32>
    %88 = vector.shape_cast %87 : vector<8xf32> to vector<8x1xf32>
    %89 = vector.broadcast %61 : vector<1x1xf32> to vector<8x1xf32>
    %90 = arith.addf %88, %89 : vector<8x1xf32>
    %91 = vector.shape_cast %90 : vector<8x1xf32> to vector<1x8xf32>
    %c0_69 = arith.constant 0 : index
    %c0_70 = arith.constant 0 : index
    %c0_71 = arith.constant 0 : index
    %c0_72 = arith.constant 0 : index
    %92 = vector.load %arg37[%c0_69, %c0_70, %c0_71, %c0_72] : memref<1x2x1x8xf32, #tpu.memory_space<vmem>>, vector<1x1x1x8xf32>
    %93 = vector.shape_cast %92 : vector<1x1x1x8xf32> to vector<1x8xf32>
    %94 = vector.shape_cast %91 : vector<1x8xf32> to vector<1x1x1x8xf32>
    tpu.vector_store %arg37[%c0_69, %c0_70, %c0_71, %c0_72], %94 {strides = array<i32>} : memref<1x2x1x8xf32, #tpu.memory_space<vmem>>, vector<1x1x1x8xf32>,
    %c0_73 = arith.constant 0 : index
    %c0_74 = arith.constant 0 : index
    %95 = vector.load %arg5[%c0_73, %c0_74] : memref<2x32xf32, #tpu.memory_space<vmem>>, vector<2x32xf32>
    %96 = vector.extract_strided_slice %95 {offsets = [0, 0], sizes = [1, 32], strides = [1, 1]} : vector<2x32xf32> to vector<1x32xf32>
    %97 = vector.broadcast %90 : vector<8x1xf32> to vector<8x32xf32>
    %98 = vector.broadcast %96 : vector<1x32xf32> to vector<8x32xf32>
    %99 = arith.mulf %97, %98 : vector<8x32xf32>
    %100 = vector.extract_strided_slice %95 {offsets = [1, 0], sizes = [1, 32], strides = [1, 1]} : vector<2x32xf32> to vector<1x32xf32>
    %101 = vector.broadcast %8 : vector<8x1xf32> to vector<8x32xf32>
    %102 = vector.broadcast %100 : vector<1x32xf32> to vector<8x32xf32>
    %103 = arith.mulf %101, %102 : vector<8x32xf32>
    %104 = arith.addf %99, %103 : vector<8x32xf32>
    %105 = vector.broadcast %0 : vector<1x32xf32> to vector<8x32xf32>
    %106 = arith.addf %104, %105 : vector<8x32xf32>
    %107 = math.sin %106 : vector<8x32xf32>
    %108 = vector.broadcast %4 : vector<1x32xf32> to vector<8x32xf32>
    %109 = arith.addf %108, %107 : vector<8x32xf32>
    %c0_75 = arith.constant 0 : index
    %c0_76 = arith.constant 0 : index
    %110 = vector.load %arg35[%c0_75, %c0_76] : memref<1x32xf32, #tpu.memory_space<vmem>>, vector<1x32xf32>
    %c0_77 = arith.constant 0 : index
    %c0_78 = arith.constant 0 : index
    %111 = vector.load %arg36[%c0_77, %c0_78] : memref<1x32xf32, #tpu.memory_space<vmem>>, vector<1x32xf32>
    %cst_79 = arith.constant dense<0.000000e+00> : vector<8xf32>
    %112 = vector.multi_reduction <add>, %109, %cst_79 [1] : vector<8x32xf32> to vector<8xf32>
    %113 = vector.shape_cast %112 : vector<8xf32> to vector<8x1xf32>
    %cst_80 = arith.constant 3.200000e+01 : f32
    %114 = vector.broadcast %cst_80 : f32 to vector<8x1xf32>
    %115 = arith.divf %113, %114 : vector<8x1xf32>
    %116 = vector.broadcast %115 : vector<8x1xf32> to vector<8x32xf32>
    %117 = arith.subf %109, %116 : vector<8x32xf32>
    %118 = arith.mulf %117, %117 : vector<8x32xf32>
    %cst_81 = arith.constant dense<0.000000e+00> : vector<8xf32>
    %119 = vector.multi_reduction <add>, %118, %cst_81 [1] : vector<8x32xf32> to vector<8xf32>
    %120 = vector.shape_cast %119 : vector<8xf32> to vector<8x1xf32>
    %cst_82 = arith.constant 3.200000e+01 : f32
    %121 = vector.broadcast %cst_82 : f32 to vector<8x1xf32>
    %122 = arith.divf %120, %121 : vector<8x1xf32>
    %123 = vector.broadcast %115 : vector<8x1xf32> to vector<8x32xf32>
    %124 = arith.subf %109, %123 : vector<8x32xf32>
    %cst_83 = arith.constant 9.99999974E-6 : f32
    %125 = vector.broadcast %cst_83 : f32 to vector<8x1xf32>
    %126 = arith.addf %122, %125 : vector<8x1xf32>
    %127 = math.rsqrt %126 : vector<8x1xf32>
    %128 = vector.broadcast %127 : vector<8x1xf32> to vector<8x32xf32>
    %129 = arith.mulf %124, %128 : vector<8x32xf32>
    %130 = vector.broadcast %110 : vector<1x32xf32> to vector<8x32xf32>
    %131 = arith.mulf %129, %130 : vector<8x32xf32>
    %132 = vector.broadcast %111 : vector<1x32xf32> to vector<8x32xf32>
    %133 = arith.addf %131, %132 : vector<8x32xf32>
    %134 = arith.mulf %133, %107 : vector<8x32xf32>
    %c0_84 = arith.constant 0 : index
    %c0_85 = arith.constant 0 : index
    %135 = vector.load %arg25[%c0_84, %c0_85] : memref<32x32xf32, #tpu.memory_space<vmem>>, vector<32x32xf32>
    %c0_86 = arith.constant 0 : index
    %c0_87 = arith.constant 0 : index
    %136 = vector.load %arg26[%c0_86, %c0_87] : memref<1x32xf32, #tpu.memory_space<vmem>>, vector<1x32xf32>
    %c0_88 = arith.constant 0 : index
    %c0_89 = arith.constant 0 : index
    %137 = vector.load %arg27[%c0_88, %c0_89] : memref<32x32xf32, #tpu.memory_space<vmem>>, vector<32x32xf32>
    %c0_90 = arith.constant 0 : index
    %c0_91 = arith.constant 0 : index
    %138 = vector.load %arg28[%c0_90, %c0_91] : memref<1x32xf32, #tpu.memory_space<vmem>>, vector<1x32xf32>
    %c0_92 = arith.constant 0 : index
    %c0_93 = arith.constant 0 : index
    %139 = vector.load %arg29[%c0_92, %c0_93] : memref<32x32xf32, #tpu.memory_space<vmem>>, vector<32x32xf32>
    %c0_94 = arith.constant 0 : index
    %c0_95 = arith.constant 0 : index
    %140 = vector.load %arg30[%c0_94, %c0_95] : memref<1x32xf32, #tpu.memory_space<vmem>>, vector<1x32xf32>
    %c0_96 = arith.constant 0 : index
    %c0_97 = arith.constant 0 : index
    %141 = vector.load %arg31[%c0_96, %c0_97] : memref<32x32xf32, #tpu.memory_space<vmem>>, vector<32x32xf32>
    %c0_98 = arith.constant 0 : index
    %c0_99 = arith.constant 0 : index
    %142 = vector.load %arg32[%c0_98, %c0_99] : memref<1x32xf32, #tpu.memory_space<vmem>>, vector<1x32xf32>
    %c0_100 = arith.constant 0 : index
    %c0_101 = arith.constant 0 : index
    %143 = vector.load %arg33[%c0_100, %c0_101] : memref<1x32xf32, #tpu.memory_space<vmem>>, vector<1x32xf32>
    %c0_102 = arith.constant 0 : index
    %c0_103 = arith.constant 0 : index
    %144 = vector.load %arg34[%c0_102, %c0_103] : memref<1x1xf32, #tpu.memory_space<vmem>>, vector<1x1xf32>
    %cst_104 = arith.constant dense<0.000000e+00> : vector<8x32xf32>
    %145 = tpu.matmul %134, %135, %cst_104 {dimension_numbers = #tpu.dot_dimension_numbers<[1], [0], [0], [1], [0, 0, 1, 1], [], []>} : vector<8x32xf32>, vector<32x32xf32>, vector<8x32xf32> -> vector<8x32xf32>
    %146 = vector.broadcast %136 : vector<1x32xf32> to vector<8x32xf32>
    %147 = arith.addf %145, %146 : vector<8x32xf32>
    %cst_105 = arith.constant 0.000000e+00 : f32
    %148 = vector.broadcast %cst_105 : f32 to vector<8x32xf32>
    %149 = arith.maximumf %147, %148 : vector<8x32xf32>
    %cst_106 = arith.constant dense<0.000000e+00> : vector<8x32xf32>
    %150 = tpu.matmul %149, %137, %cst_106 {dimension_numbers = #tpu.dot_dimension_numbers<[1], [0], [0], [1], [0, 0, 1, 1], [], []>} : vector<8x32xf32>, vector<32x32xf32>, vector<8x32xf32> -> vector<8x32xf32>
    %151 = vector.broadcast %138 : vector<1x32xf32> to vector<8x32xf32>
    %152 = arith.addf %150, %151 : vector<8x32xf32>
    %cst_107 = arith.constant 0.000000e+00 : f32
    %153 = vector.broadcast %cst_107 : f32 to vector<8x32xf32>
    %154 = arith.maximumf %152, %153 : vector<8x32xf32>
    %155 = arith.addf %149, %154 : vector<8x32xf32>
    %cst_108 = arith.constant dense<0.000000e+00> : vector<8x32xf32>
    %156 = tpu.matmul %155, %139, %cst_108 {dimension_numbers = #tpu.dot_dimension_numbers<[1], [0], [0], [1], [0, 0, 1, 1], [], []>} : vector<8x32xf32>, vector<32x32xf32>, vector<8x32xf32> -> vector<8x32xf32>
    %157 = vector.broadcast %140 : vector<1x32xf32> to vector<8x32xf32>
    %158 = arith.addf %156, %157 : vector<8x32xf32>
    %cst_109 = arith.constant 0.000000e+00 : f32
    %159 = vector.broadcast %cst_109 : f32 to vector<8x32xf32>
    %160 = arith.maximumf %158, %159 : vector<8x32xf32>
    %161 = arith.addf %155, %160 : vector<8x32xf32>
    %cst_110 = arith.constant dense<0.000000e+00> : vector<8x32xf32>
    %162 = tpu.matmul %161, %141, %cst_110 {dimension_numbers = #tpu.dot_dimension_numbers<[1], [0], [0], [1], [0, 0, 1, 1], [], []>} : vector<8x32xf32>, vector<32x32xf32>, vector<8x32xf32> -> vector<8x32xf32>
    %163 = vector.broadcast %142 : vector<1x32xf32> to vector<8x32xf32>
    %164 = arith.addf %162, %163 : vector<8x32xf32>
    %cst_111 = arith.constant 0.000000e+00 : f32
    %165 = vector.broadcast %cst_111 : f32 to vector<8x32xf32>
    %166 = arith.maximumf %164, %165 : vector<8x32xf32>
    %167 = arith.addf %161, %166 : vector<8x32xf32>
    %168 = vector.broadcast %143 : vector<1x32xf32> to vector<8x32xf32>
    %169 = arith.mulf %167, %168 : vector<8x32xf32>
    %cst_112 = arith.constant dense<0.000000e+00> : vector<8xf32>
    %170 = vector.multi_reduction <add>, %169, %cst_112 [1] : vector<8x32xf32> to vector<8xf32>
    %171 = vector.shape_cast %170 : vector<8xf32> to vector<8x1xf32>
    %172 = vector.broadcast %144 : vector<1x1xf32> to vector<8x1xf32>
    %173 = arith.addf %171, %172 : vector<8x1xf32>
    %174 = vector.shape_cast %173 : vector<8x1xf32> to vector<1x8xf32>
    %c0_113 = arith.constant 0 : index
    %c1_114 = arith.constant 1 : index
    %c0_115 = arith.constant 0 : index
    %c0_116 = arith.constant 0 : index
    %175 = vector.load %arg37[%c0_113, %c1_114, %c0_115, %c0_116] : memref<1x2x1x8xf32, #tpu.memory_space<vmem>>, vector<1x1x1x8xf32>
    %176 = vector.shape_cast %175 : vector<1x1x1x8xf32> to vector<1x8xf32>
    %177 = vector.shape_cast %174 : vector<1x8xf32> to vector<1x1x1x8xf32>
    tpu.vector_store %arg37[%c0_113, %c1_114, %c0_115, %c0_116], %177 {strides = array<i32>} : memref<1x2x1x8xf32, #tpu.memory_space<vmem>>, vector<1x1x1x8xf32>,
    return
  }
  func.func @transform_0(%arg0: i32, %arg1: i32) -> (i32, i32, i32, i32) {
    %c0_i32 = arith.constant 0 : i32
    %c0_i32_0 = arith.constant 0 : i32
    %c0_i32_1 = arith.constant 0 : i32
    %c0_i32_2 = arith.constant 0 : i32
    return %arg0, %c0_i32, %c0_i32_0, %c0_i32_1 : i32, i32, i32, i32
  }
  func.func @transform_1(%arg0: i32, %arg1: i32) -> (i32, i32, i32, i32) {
    %c0_i32 = arith.constant 0 : i32
    %c0_i32_0 = arith.constant 0 : i32
    %c0_i32_1 = arith.constant 0 : i32
    return %arg0, %c0_i32, %arg1, %c0_i32_0 : i32, i32, i32, i32
  }
  func.func @transform_2(%arg0: i32, %arg1: i32) -> (i32, i32) {
    %c0_i32 = arith.constant 0 : i32
    %c0_i32_0 = arith.constant 0 : i32
    %c0_i32_1 = arith.constant 0 : i32
    return %c0_i32, %c0_i32_0 : i32, i32
  }
  func.func @transform_3(%arg0: i32, %arg1: i32) -> (i32, i32) {
    %c0_i32 = arith.constant 0 : i32
    %c0_i32_0 = arith.constant 0 : i32
    %c0_i32_1 = arith.constant 0 : i32
    return %c0_i32, %c0_i32_0 : i32, i32
  }
  func.func @transform_4(%arg0: i32, %arg1: i32) -> (i32, i32) {
    %c0_i32 = arith.constant 0 : i32
    %c0_i32_0 = arith.constant 0 : i32
    %c0_i32_1 = arith.constant 0 : i32
    return %c0_i32, %c0_i32_0 : i32, i32
  }
  func.func @transform_5(%arg0: i32, %arg1: i32) -> (i32, i32) {
    %c0_i32 = arith.constant 0 : i32
    %c0_i32_0 = arith.constant 0 : i32
    %c0_i32_1 = arith.constant 0 : i32
    return %c0_i32, %c0_i32_0 : i32, i32
  }
  func.func @transform_6(%arg0: i32, %arg1: i32) -> (i32, i32) {
    %c0_i32 = arith.constant 0 : i32
    %c0_i32_0 = arith.constant 0 : i32
    %c0_i32_1 = arith.constant 0 : i32
    return %c0_i32, %c0_i32_0 : i32, i32
  }
  func.func @transform_7(%arg0: i32, %arg1: i32) -> (i32, i32) {
    %c0_i32 = arith.constant 0 : i32
    %c0_i32_0 = arith.constant 0 : i32
    %c0_i32_1 = arith.constant 0 : i32
    return %c0_i32, %c0_i32_0 : i32, i32
  }
  func.func @transform_8(%arg0: i32, %arg1: i32) -> (i32, i32) {
    %c0_i32 = arith.constant 0 : i32
    %c0_i32_0 = arith.constant 0 : i32
    %c0_i32_1 = arith.constant 0 : i32
    return %c0_i32, %c0_i32_0 : i32, i32
  }
  func.func @transform_9(%arg0: i32, %arg1: i32) -> (i32, i32) {
    %c0_i32 = arith.constant 0 : i32
    %c0_i32_0 = arith.constant 0 : i32
    %c0_i32_1 = arith.constant 0 : i32
    return %c0_i32, %c0_i32_0 : i32, i32
  }
  func.func @transform_10(%arg0: i32, %arg1: i32) -> (i32, i32) {
    %c0_i32 = arith.constant 0 : i32
    %c0_i32_0 = arith.constant 0 : i32
    %c0_i32_1 = arith.constant 0 : i32
    return %c0_i32, %c0_i32_0 : i32, i32
  }
  func.func @transform_11(%arg0: i32, %arg1: i32) -> (i32, i32) {
    %c0_i32 = arith.constant 0 : i32
    %c0_i32_0 = arith.constant 0 : i32
    %c0_i32_1 = arith.constant 0 : i32
    return %c0_i32, %c0_i32_0 : i32, i32
  }
  func.func @transform_12(%arg0: i32, %arg1: i32) -> (i32, i32) {
    %c0_i32 = arith.constant 0 : i32
    %c0_i32_0 = arith.constant 0 : i32
    %c0_i32_1 = arith.constant 0 : i32
    return %c0_i32, %c0_i32_0 : i32, i32
  }
  func.func @transform_13(%arg0: i32, %arg1: i32) -> (i32, i32) {
    %c0_i32 = arith.constant 0 : i32
    %c0_i32_0 = arith.constant 0 : i32
    %c0_i32_1 = arith.constant 0 : i32
    return %c0_i32, %c0_i32_0 : i32, i32
  }
  func.func @transform_14(%arg0: i32, %arg1: i32) -> (i32, i32) {
    %c0_i32 = arith.constant 0 : i32
    %c0_i32_0 = arith.constant 0 : i32
    %c0_i32_1 = arith.constant 0 : i32
    return %c0_i32, %c0_i32_0 : i32, i32
  }
  func.func @transform_15(%arg0: i32, %arg1: i32) -> (i32, i32) {
    %c0_i32 = arith.constant 0 : i32
    %c0_i32_0 = arith.constant 0 : i32
    %c0_i32_1 = arith.constant 0 : i32
    return %c0_i32, %c0_i32_0 : i32, i32
  }
  func.func @transform_16(%arg0: i32, %arg1: i32) -> (i32, i32) {
    %c0_i32 = arith.constant 0 : i32
    %c0_i32_0 = arith.constant 0 : i32
    %c0_i32_1 = arith.constant 0 : i32
    return %c0_i32, %c0_i32_0 : i32, i32
  }
  func.func @transform_17(%arg0: i32, %arg1: i32) -> (i32, i32) {
    %c0_i32 = arith.constant 0 : i32
    %c0_i32_0 = arith.constant 0 : i32
    %c0_i32_1 = arith.constant 0 : i32
    return %c0_i32, %c0_i32_0 : i32, i32
  }
  func.func @transform_18(%arg0: i32, %arg1: i32) -> (i32, i32) {
    %c0_i32 = arith.constant 0 : i32
    %c0_i32_0 = arith.constant 0 : i32
    %c0_i32_1 = arith.constant 0 : i32
    return %c0_i32, %c0_i32_0 : i32, i32
  }
  func.func @transform_19(%arg0: i32, %arg1: i32) -> (i32, i32) {
    %c0_i32 = arith.constant 0 : i32
    %c0_i32_0 = arith.constant 0 : i32
    %c0_i32_1 = arith.constant 0 : i32
    return %c0_i32, %c0_i32_0 : i32, i32
  }
  func.func @transform_20(%arg0: i32, %arg1: i32) -> (i32, i32) {
    %c0_i32 = arith.constant 0 : i32
    %c0_i32_0 = arith.constant 0 : i32
    %c0_i32_1 = arith.constant 0 : i32
    return %c0_i32, %c0_i32_0 : i32, i32
  }
  func.func @transform_21(%arg0: i32, %arg1: i32) -> (i32, i32) {
    %c0_i32 = arith.constant 0 : i32
    %c0_i32_0 = arith.constant 0 : i32
    %c0_i32_1 = arith.constant 0 : i32
    return %c0_i32, %c0_i32_0 : i32, i32
  }
  func.func @transform_22(%arg0: i32, %arg1: i32) -> (i32, i32) {
    %c0_i32 = arith.constant 0 : i32
    %c0_i32_0 = arith.constant 0 : i32
    %c0_i32_1 = arith.constant 0 : i32
    return %c0_i32, %c0_i32_0 : i32, i32
  }
  func.func @transform_23(%arg0: i32, %arg1: i32) -> (i32, i32) {
    %c0_i32 = arith.constant 0 : i32
    %c0_i32_0 = arith.constant 0 : i32
    %c0_i32_1 = arith.constant 0 : i32
    return %c0_i32, %c0_i32_0 : i32, i32
  }
  func.func @transform_24(%arg0: i32, %arg1: i32) -> (i32, i32) {
    %c0_i32 = arith.constant 0 : i32
    %c0_i32_0 = arith.constant 0 : i32
    %c0_i32_1 = arith.constant 0 : i32
    return %c0_i32, %c0_i32_0 : i32, i32
  }
  func.func @transform_25(%arg0: i32, %arg1: i32) -> (i32, i32) {
    %c0_i32 = arith.constant 0 : i32
    %c0_i32_0 = arith.constant 0 : i32
    %c0_i32_1 = arith.constant 0 : i32
    return %c0_i32, %c0_i32_0 : i32, i32
  }
  func.func @transform_26(%arg0: i32, %arg1: i32) -> (i32, i32) {
    %c0_i32 = arith.constant 0 : i32
    %c0_i32_0 = arith.constant 0 : i32
    %c0_i32_1 = arith.constant 0 : i32
    return %c0_i32, %c0_i32_0 : i32, i32
  }
  func.func @transform_27(%arg0: i32, %arg1: i32) -> (i32, i32) {
    %c0_i32 = arith.constant 0 : i32
    %c0_i32_0 = arith.constant 0 : i32
    %c0_i32_1 = arith.constant 0 : i32
    return %c0_i32, %c0_i32_0 : i32, i32
  }
  func.func @transform_28(%arg0: i32, %arg1: i32) -> (i32, i32) {
    %c0_i32 = arith.constant 0 : i32
    %c0_i32_0 = arith.constant 0 : i32
    %c0_i32_1 = arith.constant 0 : i32
    return %c0_i32, %c0_i32_0 : i32, i32
  }
  func.func @transform_29(%arg0: i32, %arg1: i32) -> (i32, i32) {
    %c0_i32 = arith.constant 0 : i32
    %c0_i32_0 = arith.constant 0 : i32
    %c0_i32_1 = arith.constant 0 : i32
    return %c0_i32, %c0_i32_0 : i32, i32
  }
  func.func @transform_30(%arg0: i32, %arg1: i32) -> (i32, i32) {
    %c0_i32 = arith.constant 0 : i32
    %c0_i32_0 = arith.constant 0 : i32
    %c0_i32_1 = arith.constant 0 : i32
    return %c0_i32, %c0_i32_0 : i32, i32
  }
  func.func @transform_31(%arg0: i32, %arg1: i32) -> (i32, i32) {
    %c0_i32 = arith.constant 0 : i32
    %c0_i32_0 = arith.constant 0 : i32
    %c0_i32_1 = arith.constant 0 : i32
    return %c0_i32, %c0_i32_0 : i32, i32
  }
  func.func @transform_32(%arg0: i32, %arg1: i32) -> (i32, i32) {
    %c0_i32 = arith.constant 0 : i32
    %c0_i32_0 = arith.constant 0 : i32
    %c0_i32_1 = arith.constant 0 : i32
    return %c0_i32, %c0_i32_0 : i32, i32
  }
  func.func @transform_33(%arg0: i32, %arg1: i32) -> (i32, i32) {
    %c0_i32 = arith.constant 0 : i32
    %c0_i32_0 = arith.constant 0 : i32
    %c0_i32_1 = arith.constant 0 : i32
    return %c0_i32, %c0_i32_0 : i32, i32
  }
  func.func @transform_34(%arg0: i32, %arg1: i32) -> (i32, i32) {
    %c0_i32 = arith.constant 0 : i32
    %c0_i32_0 = arith.constant 0 : i32
    %c0_i32_1 = arith.constant 0 : i32
    return %c0_i32, %c0_i32_0 : i32, i32
  }
  func.func @transform_35(%arg0: i32, %arg1: i32) -> (i32, i32, i32, i32) {
    %c0_i32 = arith.constant 0 : i32
    %c0_i32_0 = arith.constant 0 : i32
    %c0_i32_1 = arith.constant 0 : i32
    return %arg0, %c0_i32, %c0_i32_0, %arg1 : i32, i32, i32, i32
  }
}

module attributes {stable_mosaic.version = 11 : i64} {
  func.func @kernel(%arg0: i32, %arg1: i32, %arg2: memref<1x2x1x32xf32, #tpu.memory_space<vmem>>, %arg3: memref<1x2x8x1xf32, #tpu.memory_space<vmem>>, %arg4: memref<2x32xf32, #tpu.memory_space<vmem>>, %arg5: memref<2x32xf32, #tpu.memory_space<vmem>>, %arg6: memref<1x32xf32, #tpu.memory_space<vmem>>, %arg7: memref<32x32xf32, #tpu.memory_space<vmem>>, %arg8: memref<1x32xf32, #tpu.memory_space<vmem>>, %arg9: memref<32x32xf32, #tpu.memory_space<vmem>>, %arg10: memref<1x32xf32, #tpu.memory_space<vmem>>, %arg11: memref<32x32xf32, #tpu.memory_space<vmem>>, %arg12: memref<1x32xf32, #tpu.memory_space<vmem>>, %arg13: memref<32x32xf32, #tpu.memory_space<vmem>>, %arg14: memref<1x32xf32, #tpu.memory_space<vmem>>, %arg15: memref<32x32xf32, #tpu.memory_space<vmem>>, %arg16: memref<1x32xf32, #tpu.memory_space<vmem>>, %arg17: memref<32x32xf32, #tpu.memory_space<vmem>>, %arg18: memref<1x32xf32, #tpu.memory_space<vmem>>, %arg19: memref<32x32xf32, #tpu.memory_space<vmem>>, %arg20: memref<1x32xf32, #tpu.memory_space<vmem>>, %arg21: memref<32x32xf32, #tpu.memory_space<vmem>>, %arg22: memref<1x32xf32, #tpu.memory_space<vmem>>, %arg23: memref<1x32xf32, #tpu.memory_space<vmem>>, %arg24: memref<1x1xf32, #tpu.memory_space<vmem>>, %arg25: memref<32x32xf32, #tpu.memory_space<vmem>>, %arg26: memref<1x32xf32, #tpu.memory_space<vmem>>, %arg27: memref<32x32xf32, #tpu.memory_space<vmem>>, %arg28: memref<1x32xf32, #tpu.memory_space<vmem>>, %arg29: memref<32x32xf32, #tpu.memory_space<vmem>>, %arg30: memref<1x32xf32, #tpu.memory_space<vmem>>, %arg31: memref<32x32xf32, #tpu.memory_space<vmem>>, %arg32: memref<1x32xf32, #tpu.memory_space<vmem>>, %arg33: memref<1x32xf32, #tpu.memory_space<vmem>>, %arg34: memref<1x1xf32, #tpu.memory_space<vmem>>, %arg35: memref<1x32xf32, #tpu.memory_space<vmem>>, %arg36: memref<1x32xf32, #tpu.memory_space<vmem>>, %arg37: memref<1x2x1x8xf32, #tpu.memory_space<vmem>>) attributes {dimension_semantics = [#tpu.dimension_semantics<parallel>, #tpu.dimension_semantics<parallel>], iteration_bounds = array<i64: 2, 1>, scalar_prefetch = 0 : i64, scratch_operands = 0 : i64, tpu.core_type = #tpu.core_type<tc>, window_params = [{transform_indices = @transform_0, window_bounds = array<i64: 1, 2, 1, 32>}, {transform_indices = @transform_1, window_bounds = array<i64: 1, 2, 8, 1>}, {pipeline_mode = #tpu.pipeline_mode<synchronous>, transform_indices = @transform_2, window_bounds = array<i64: 2, 32>}, {pipeline_mode = #tpu.pipeline_mode<synchronous>, transform_indices = @transform_3, window_bounds = array<i64: 2, 32>}, {pipeline_mode = #tpu.pipeline_mode<synchronous>, transform_indices = @transform_4, window_bounds = array<i64: 1, 32>}, {pipeline_mode = #tpu.pipeline_mode<synchronous>, transform_indices = @transform_5, window_bounds = array<i64: 32, 32>}, {pipeline_mode = #tpu.pipeline_mode<synchronous>, transform_indices = @transform_6, window_bounds = array<i64: 1, 32>}, {pipeline_mode = #tpu.pipeline_mode<synchronous>, transform_indices = @transform_7, window_bounds = array<i64: 32, 32>}, {pipeline_mode = #tpu.pipeline_mode<synchronous>, transform_indices = @transform_8, window_bounds = array<i64: 1, 32>}, {pipeline_mode = #tpu.pipeline_mode<synchronous>, transform_indices = @transform_9, window_bounds = array<i64: 32, 32>}, {pipeline_mode = #tpu.pipeline_mode<synchronous>, transform_indices = @transform_10, window_bounds = array<i64: 1, 32>}, {pipeline_mode = #tpu.pipeline_mode<synchronous>, transform_indices = @transform_11, window_bounds = array<i64: 32, 32>}, {pipeline_mode = #tpu.pipeline_mode<synchronous>, transform_indices = @transform_12, window_bounds = array<i64: 1, 32>}, {pipeline_mode = #tpu.pipeline_mode<synchronous>, transform_indices = @transform_13, window_bounds = array<i64: 32, 32>}, {pipeline_mode = #tpu.pipeline_mode<synchronous>, transform_indices = @transform_14, window_bounds = array<i64: 1, 32>}, {pipeline_mode = #tpu.pipeline_mode<synchronous>, transform_indices = @transform_15, window_bounds = array<i64: 32, 32>}, {pipeline_mode = #tpu.pipeline_mode<synchronous>, transform_indices = @transform_16, window_bounds = array<i64: 1, 32>}, {pipeline_mode = #tpu.pipeline_mode<synchronous>, transform_indices = @transform_17, window_bounds = array<i64: 32, 32>}, {pipeline_mode = #tpu.pipeline_mode<synchronous>, transform_indices = @transform_18, window_bounds = array<i64: 1, 32>}, {pipeline_mode = #tpu.pipeline_mode<synchronous>, transform_indices = @transform_19, window_bounds = array<i64: 32, 32>}, {pipeline_mode = #tpu.pipeline_mode<synchronous>, transform_indices = @transform_20, window_bounds = array<i64: 1, 32>}, {pipeline_mode = #tpu.pipeline_mode<synchronous>, transform_indices = @transform_21, window_bounds = array<i64: 1, 32>}, {pipeline_mode = #tpu.pipeline_mode<synchronous>, transform_indices = @transform_22, window_bounds = array<i64: 1, 1>}, {pipeline_mode = #tpu.pipeline_mode<synchronous>, transform_indices = @transform_23, window_bounds = array<i64: 32, 32>}, {pipeline_mode = #tpu.pipeline_mode<synchronous>, transform_indices = @transform_24, window_bounds = array<i64: 1, 32>}, {pipeline_mode = #tpu.pipeline_mode<synchronous>, transform_indices = @transform_25, window_bounds = array<i64: 32, 32>}, {pipeline_mode = #tpu.pipeline_mode<synchronous>, transform_indices = @transform_26, window_bounds = array<i64: 1, 32>}, {pipeline_mode = #tpu.pipeline_mode<synchronous>, transform_indices = @transform_27, window_bounds = array<i64: 32, 32>}, {pipeline_mode = #tpu.pipeline_mode<synchronous>, transform_indices = @transform_28, window_bounds = array<i64: 1, 32>}, {pipeline_mode = #tpu.pipeline_mode<synchronous>, transform_indices = @transform_29, window_bounds = array<i64: 32, 32>}, {pipeline_mode = #tpu.pipeline_mode<synchronous>, transform_indices = @transform_30, window_bounds = array<i64: 1, 32>}, {pipeline_mode = #tpu.pipeline_mode<synchronous>, transform_indices = @transform_31, window_bounds = array<i64: 1, 32>}, {pipeline_mode = #tpu.pipeline_mode<synchronous>, transform_indices = @transform_32, window_bounds = array<i64: 1, 1>}, {pipeline_mode = #tpu.pipeline_mode<synchronous>, transform_indices = @transform_33, window_bounds = array<i64: 1, 32>}, {pipeline_mode = #tpu.pipeline_mode<synchronous>, transform_indices = @transform_34, window_bounds = array<i64: 1, 32>}, {transform_indices = @transform_35, window_bounds = array<i64: 1, 2, 1, 8>}]} {
    %c0 = arith.constant 0 : index
    %c0_0 = arith.constant 0 : index
    %0 = vector.load %arg6[%c0, %c0_0] : memref<1x32xf32, #tpu.memory_space<vmem>>, vector<1x32xf32>
    %c0_1 = arith.constant 0 : index
    %c0_2 = arith.constant 0 : index
    %c0_3 = arith.constant 0 : index
    %c0_4 = arith.constant 0 : index
    %1 = vector.load %arg2[%c0_1, %c0_2, %c0_3, %c0_4] : memref<1x2x1x32xf32, #tpu.memory_space<vmem>>, vector<1x1x1x32xf32>
    %2 = vector.shape_cast %1 : vector<1x1x1x32xf32> to vector<1x32xf32>
    %c0_5 = arith.constant 0 : index
    %c1 = arith.constant 1 : index
    %c0_6 = arith.constant 0 : index
    %c0_7 = arith.constant 0 : index
    %3 = vector.load %arg2[%c0_5, %c1, %c0_6, %c0_7] : memref<1x2x1x32xf32, #tpu.memory_space<vmem>>, vector<1x1x1x32xf32>
    %4 = vector.shape_cast %3 : vector<1x1x1x32xf32> to vector<1x32xf32>
    %c0_8 = arith.constant 0 : index
    %c0_9 = arith.constant 0 : index
    %c0_10 = arith.constant 0 : index
    %c0_11 = arith.constant 0 : index
    %5 = vector.load %arg3[%c0_8, %c0_9, %c0_10, %c0_11] : memref<1x2x8x1xf32, #tpu.memory_space<vmem>>, vector<1x1x8x1xf32>
    %6 = vector.shape_cast %5 : vector<1x1x8x1xf32> to vector<8x1xf32>
    %c0_12 = arith.constant 0 : index
    %c1_13 = arith.constant 1 : index
    %c0_14 = arith.constant 0 : index
    %c0_15 = arith.constant 0 : index
    %7 = vector.load %arg3[%c0_12, %c1_13, %c0_14, %c0_15] : memref<1x2x8x1xf32, #tpu.memory_space<vmem>>, vector<1x1x8x1xf32>
    %8 = vector.shape_cast %7 : vector<1x1x8x1xf32> to vector<8x1xf32>
    %c0_16 = arith.constant 0 : index
    %c0_17 = arith.constant 0 : index
    %9 = vector.load %arg4[%c0_16, %c0_17] : memref<2x32xf32, #tpu.memory_space<vmem>>, vector<2x32xf32>
    %10 = vector.extract_strided_slice %9 {offsets = [0, 0], sizes = [1, 32], strides = [1, 1]} : vector<2x32xf32> to vector<1x32xf32>
    %11 = vector.broadcast %6 : vector<8x1xf32> to vector<8x32xf32>
    %12 = vector.broadcast %10 : vector<1x32xf32> to vector<8x32xf32>
    %13 = arith.mulf %11, %12 : vector<8x32xf32>
    %14 = vector.extract_strided_slice %9 {offsets = [1, 0], sizes = [1, 32], strides = [1, 1]} : vector<2x32xf32> to vector<1x32xf32>
    %15 = vector.broadcast %8 : vector<8x1xf32> to vector<8x32xf32>
    %16 = vector.broadcast %14 : vector<1x32xf32> to vector<8x32xf32>
    %17 = arith.mulf %15, %16 : vector<8x32xf32>
    %18 = arith.addf %13, %17 : vector<8x32xf32>
    %19 = vector.broadcast %0 : vector<1x32xf32> to vector<8x32xf32>
    %20 = arith.addf %18, %19 : vector<8x32xf32>
    %21 = math.sin %20 : vector<8x32xf32>
    %c0_18 = arith.constant 0 : index
    %c0_19 = arith.constant 0 : index
    %22 = vector.load %arg7[%c0_18, %c0_19] : memref<32x32xf32, #tpu.memory_space<vmem>>, vector<32x32xf32>
    %c0_20 = arith.constant 0 : index
    %c0_21 = arith.constant 0 : index
    %23 = vector.load %arg8[%c0_20, %c0_21] : memref<1x32xf32, #tpu.memory_space<vmem>>, vector<1x32xf32>
    %c0_22 = arith.constant 0 : index
    %c0_23 = arith.constant 0 : index
    %24 = vector.load %arg9[%c0_22, %c0_23] : memref<32x32xf32, #tpu.memory_space<vmem>>, vector<32x32xf32>
    %c0_24 = arith.constant 0 : index
    %c0_25 = arith.constant 0 : index
    %25 = vector.load %arg10[%c0_24, %c0_25] : memref<1x32xf32, #tpu.memory_space<vmem>>, vector<1x32xf32>
    %c0_26 = arith.constant 0 : index
    %c0_27 = arith.constant 0 : index
    %26 = vector.load %arg11[%c0_26, %c0_27] : memref<32x32xf32, #tpu.memory_space<vmem>>, vector<32x32xf32>
    %c0_28 = arith.constant 0 : index
    %c0_29 = arith.constant 0 : index
    %27 = vector.load %arg12[%c0_28, %c0_29] : memref<1x32xf32, #tpu.memory_space<vmem>>, vector<1x32xf32>
    %c0_30 = arith.constant 0 : index
    %c0_31 = arith.constant 0 : index
    %28 = vector.load %arg13[%c0_30, %c0_31] : memref<32x32xf32, #tpu.memory_space<vmem>>, vector<32x32xf32>
    %c0_32 = arith.constant 0 : index
    %c0_33 = arith.constant 0 : index
    %29 = vector.load %arg14[%c0_32, %c0_33] : memref<1x32xf32, #tpu.memory_space<vmem>>, vector<1x32xf32>
    %cst = arith.constant dense<0.000000e+00> : vector<8x32xf32>
    %30 = tpu.matmul %21, %22, %cst {dimension_numbers = #tpu.dot_dimension_numbers<[1], [0], [0], [1], [0, 0, 1, 1], [], []>} : vector<8x32xf32>, vector<32x32xf32>, vector<8x32xf32> -> vector<8x32xf32>
    %31 = vector.broadcast %23 : vector<1x32xf32> to vector<8x32xf32>
    %32 = arith.addf %30, %31 : vector<8x32xf32>
    %cst_34 = arith.constant 0.000000e+00 : f32
    %33 = vector.broadcast %cst_34 : f32 to vector<8x32xf32>
    %34 = arith.maximumf %32, %33 : vector<8x32xf32>
    %cst_35 = arith.constant dense<0.000000e+00> : vector<8x32xf32>
    %35 = tpu.matmul %34, %24, %cst_35 {dimension_numbers = #tpu.dot_dimension_numbers<[1], [0], [0], [1], [0, 0, 1, 1], [], []>} : vector<8x32xf32>, vector<32x32xf32>, vector<8x32xf32> -> vector<8x32xf32>
    %36 = vector.broadcast %25 : vector<1x32xf32> to vector<8x32xf32>
    %37 = arith.addf %35, %36 : vector<8x32xf32>
    %cst_36 = arith.constant 0.000000e+00 : f32
    %38 = vector.broadcast %cst_36 : f32 to vector<8x32xf32>
    %39 = arith.maximumf %37, %38 : vector<8x32xf32>
    %40 = arith.addf %34, %39 : vector<8x32xf32>
    %cst_37 = arith.constant dense<0.000000e+00> : vector<8x32xf32>
    %41 = tpu.matmul %40, %26, %cst_37 {dimension_numbers = #tpu.dot_dimension_numbers<[1], [0], [0], [1], [0, 0, 1, 1], [], []>} : vector<8x32xf32>, vector<32x32xf32>, vector<8x32xf32> -> vector<8x32xf32>
    %42 = vector.broadcast %27 : vector<1x32xf32> to vector<8x32xf32>
    %43 = arith.addf %41, %42 : vector<8x32xf32>
    %cst_38 = arith.constant 0.000000e+00 : f32
    %44 = vector.broadcast %cst_38 : f32 to vector<8x32xf32>
    %45 = arith.maximumf %43, %44 : vector<8x32xf32>
    %46 = arith.addf %40, %45 : vector<8x32xf32>
    %cst_39 = arith.constant dense<0.000000e+00> : vector<8x32xf32>
    %47 = tpu.matmul %46, %28, %cst_39 {dimension_numbers = #tpu.dot_dimension_numbers<[1], [0], [0], [1], [0, 0, 1, 1], [], []>} : vector<8x32xf32>, vector<32x32xf32>, vector<8x32xf32> -> vector<8x32xf32>
    %48 = vector.broadcast %29 : vector<1x32xf32> to vector<8x32xf32>
    %49 = arith.addf %47, %48 : vector<8x32xf32>
    %50 = vector.broadcast %2 : vector<1x32xf32> to vector<8x32xf32>
    %51 = arith.mulf %50, %49 : vector<8x32xf32>
    %c0_40 = arith.constant 0 : index
    %c0_41 = arith.constant 0 : index
    %52 = vector.load %arg15[%c0_40, %c0_41] : memref<32x32xf32, #tpu.memory_space<vmem>>, vector<32x32xf32>
    %c0_42 = arith.constant 0 : index
    %c0_43 = arith.constant 0 : index
    %53 = vector.load %arg16[%c0_42, %c0_43] : memref<1x32xf32, #tpu.memory_space<vmem>>, vector<1x32xf32>
    %c0_44 = arith.constant 0 : index
    %c0_45 = arith.constant 0 : index
    %54 = vector.load %arg17[%c0_44, %c0_45] : memref<32x32xf32, #tpu.memory_space<vmem>>, vector<32x32xf32>
    %c0_46 = arith.constant 0 : index
    %c0_47 = arith.constant 0 : index
    %55 = vector.load %arg18[%c0_46, %c0_47] : memref<1x32xf32, #tpu.memory_space<vmem>>, vector<1x32xf32>
    %c0_48 = arith.constant 0 : index
    %c0_49 = arith.constant 0 : index
    %56 = vector.load %arg19[%c0_48, %c0_49] : memref<32x32xf32, #tpu.memory_space<vmem>>, vector<32x32xf32>
    %c0_50 = arith.constant 0 : index
    %c0_51 = arith.constant 0 : index
    %57 = vector.load %arg20[%c0_50, %c0_51] : memref<1x32xf32, #tpu.memory_space<vmem>>, vector<1x32xf32>
    %c0_52 = arith.constant 0 : index
    %c0_53 = arith.constant 0 : index
    %58 = vector.load %arg21[%c0_52, %c0_53] : memref<32x32xf32, #tpu.memory_space<vmem>>, vector<32x32xf32>
    %c0_54 = arith.constant 0 : index
    %c0_55 = arith.constant 0 : index
    %59 = vector.load %arg22[%c0_54, %c0_55] : memref<1x32xf32, #tpu.memory_space<vmem>>, vector<1x32xf32>
    %c0_56 = arith.constant 0 : index
    %c0_57 = arith.constant 0 : index
    %60 = vector.load %arg23[%c0_56, %c0_57] : memref<1x32xf32, #tpu.memory_space<vmem>>, vector<1x32xf32>
    %c0_58 = arith.constant 0 : index
    %c0_59 = arith.constant 0 : index
    %61 = vector.load %arg24[%c0_58, %c0_59] : memref<1x1xf32, #tpu.memory_space<vmem>>, vector<1x1xf32>
    %cst_60 = arith.constant dense<0.000000e+00> : vector<8x32xf32>
    %62 = tpu.matmul %51, %52, %cst_60 {dimension_numbers = #tpu.dot_dimension_numbers<[1], [0], [0], [1], [0, 0, 1, 1], [], []>} : vector<8x32xf32>, vector<32x32xf32>, vector<8x32xf32> -> vector<8x32xf32>
    %63 = vector.broadcast %53 : vector<1x32xf32> to vector<8x32xf32>
    %64 = arith.addf %62, %63 : vector<8x32xf32>
    %cst_61 = arith.constant 0.000000e+00 : f32
    %65 = vector.broadcast %cst_61 : f32 to vector<8x32xf32>
    %66 = arith.maximumf %64, %65 : vector<8x32xf32>
    %cst_62 = arith.constant dense<0.000000e+00> : vector<8x32xf32>
    %67 = tpu.matmul %66, %54, %cst_62 {dimension_numbers = #tpu.dot_dimension_numbers<[1], [0], [0], [1], [0, 0, 1, 1], [], []>} : vector<8x32xf32>, vector<32x32xf32>, vector<8x32xf32> -> vector<8x32xf32>
    %68 = vector.broadcast %55 : vector<1x32xf32> to vector<8x32xf32>
    %69 = arith.addf %67, %68 : vector<8x32xf32>
    %cst_63 = arith.constant 0.000000e+00 : f32
    %70 = vector.broadcast %cst_63 : f32 to vector<8x32xf32>
    %71 = arith.maximumf %69, %70 : vector<8x32xf32>
    %72 = arith.addf %66, %71 : vector<8x32xf32>
    %cst_64 = arith.constant dense<0.000000e+00> : vector<8x32xf32>
    %73 = tpu.matmul %72, %56, %cst_64 {dimension_numbers = #tpu.dot_dimension_numbers<[1], [0], [0], [1], [0, 0, 1, 1], [], []>} : vector<8x32xf32>, vector<32x32xf32>, vector<8x32xf32> -> vector<8x32xf32>
    %74 = vector.broadcast %57 : vector<1x32xf32> to vector<8x32xf32>
    %75 = arith.addf %73, %74 : vector<8x32xf32>
    %cst_65 = arith.constant 0.000000e+00 : f32
    %76 = vector.broadcast %cst_65 : f32 to vector<8x32xf32>
    %77 = arith.maximumf %75, %76 : vector<8x32xf32>
    %78 = arith.addf %72, %77 : vector<8x32xf32>
    %cst_66 = arith.constant dense<0.000000e+00> : vector<8x32xf32>
    %79 = tpu.matmul %78, %58, %cst_66 {dimension_numbers = #tpu.dot_dimension_numbers<[1], [0], [0], [1], [0, 0, 1, 1], [], []>} : vector<8x32xf32>, vector<32x32xf32>, vector<8x32xf32> -> vector<8x32xf32>
    %80 = vector.broadcast %59 : vector<1x32xf32> to vector<8x32xf32>
    %81 = arith.addf %79, %80 : vector<8x32xf32>
    %cst_67 = arith.constant 0.000000e+00 : f32
    %82 = vector.broadcast %cst_67 : f32 to vector<8x32xf32>
    %83 = arith.maximumf %81, %82 : vector<8x32xf32>
    %84 = arith.addf %78, %83 : vector<8x32xf32>
    %85 = vector.broadcast %60 : vector<1x32xf32> to vector<8x32xf32>
    %86 = arith.mulf %84, %85 : vector<8x32xf32>
    %cst_68 = arith.constant dense<0.000000e+00> : vector<8xf32>
    %87 = vector.multi_reduction <add>, %86, %cst_68 [1] : vector<8x32xf32> to vector<8xf32>
    %88 = vector.shape_cast %87 : vector<8xf32> to vector<8x1xf32>
    %89 = vector.broadcast %61 : vector<1x1xf32> to vector<8x1xf32>
    %90 = arith.addf %88, %89 : vector<8x1xf32>
    %91 = vector.shape_cast %90 : vector<8x1xf32> to vector<1x8xf32>
    %c0_69 = arith.constant 0 : index
    %c0_70 = arith.constant 0 : index
    %c0_71 = arith.constant 0 : index
    %c0_72 = arith.constant 0 : index
    %92 = vector.load %arg37[%c0_69, %c0_70, %c0_71, %c0_72] : memref<1x2x1x8xf32, #tpu.memory_space<vmem>>, vector<1x1x1x8xf32>
    %93 = vector.shape_cast %92 : vector<1x1x1x8xf32> to vector<1x8xf32>
    %94 = vector.shape_cast %91 : vector<1x8xf32> to vector<1x1x1x8xf32>
    tpu.vector_store %arg37[%c0_69, %c0_70, %c0_71, %c0_72], %94 {strides = array<i32>} : memref<1x2x1x8xf32, #tpu.memory_space<vmem>>, vector<1x1x1x8xf32>,
    %c0_73 = arith.constant 0 : index
    %c0_74 = arith.constant 0 : index
    %95 = vector.load %arg5[%c0_73, %c0_74] : memref<2x32xf32, #tpu.memory_space<vmem>>, vector<2x32xf32>
    %96 = vector.extract_strided_slice %95 {offsets = [0, 0], sizes = [1, 32], strides = [1, 1]} : vector<2x32xf32> to vector<1x32xf32>
    %97 = vector.broadcast %90 : vector<8x1xf32> to vector<8x32xf32>
    %98 = vector.broadcast %96 : vector<1x32xf32> to vector<8x32xf32>
    %99 = arith.mulf %97, %98 : vector<8x32xf32>
    %100 = vector.extract_strided_slice %95 {offsets = [1, 0], sizes = [1, 32], strides = [1, 1]} : vector<2x32xf32> to vector<1x32xf32>
    %101 = vector.broadcast %8 : vector<8x1xf32> to vector<8x32xf32>
    %102 = vector.broadcast %100 : vector<1x32xf32> to vector<8x32xf32>
    %103 = arith.mulf %101, %102 : vector<8x32xf32>
    %104 = arith.addf %99, %103 : vector<8x32xf32>
    %105 = vector.broadcast %0 : vector<1x32xf32> to vector<8x32xf32>
    %106 = arith.addf %104, %105 : vector<8x32xf32>
    %107 = math.sin %106 : vector<8x32xf32>
    %108 = vector.broadcast %4 : vector<1x32xf32> to vector<8x32xf32>
    %109 = arith.addf %108, %107 : vector<8x32xf32>
    %c0_75 = arith.constant 0 : index
    %c0_76 = arith.constant 0 : index
    %110 = vector.load %arg35[%c0_75, %c0_76] : memref<1x32xf32, #tpu.memory_space<vmem>>, vector<1x32xf32>
    %c0_77 = arith.constant 0 : index
    %c0_78 = arith.constant 0 : index
    %111 = vector.load %arg36[%c0_77, %c0_78] : memref<1x32xf32, #tpu.memory_space<vmem>>, vector<1x32xf32>
    %cst_79 = arith.constant dense<0.000000e+00> : vector<8xf32>
    %112 = vector.multi_reduction <add>, %109, %cst_79 [1] : vector<8x32xf32> to vector<8xf32>
    %113 = vector.shape_cast %112 : vector<8xf32> to vector<8x1xf32>
    %cst_80 = arith.constant 3.200000e+01 : f32
    %114 = vector.broadcast %cst_80 : f32 to vector<8x1xf32>
    %115 = arith.divf %113, %114 : vector<8x1xf32>
    %116 = vector.broadcast %115 : vector<8x1xf32> to vector<8x32xf32>
    %117 = arith.subf %109, %116 : vector<8x32xf32>
    %118 = arith.mulf %117, %117 : vector<8x32xf32>
    %cst_81 = arith.constant dense<0.000000e+00> : vector<8xf32>
    %119 = vector.multi_reduction <add>, %118, %cst_81 [1] : vector<8x32xf32> to vector<8xf32>
    %120 = vector.shape_cast %119 : vector<8xf32> to vector<8x1xf32>
    %cst_82 = arith.constant 3.200000e+01 : f32
    %121 = vector.broadcast %cst_82 : f32 to vector<8x1xf32>
    %122 = arith.divf %120, %121 : vector<8x1xf32>
    %123 = vector.broadcast %115 : vector<8x1xf32> to vector<8x32xf32>
    %124 = arith.subf %109, %123 : vector<8x32xf32>
    %cst_83 = arith.constant 9.99999974E-6 : f32
    %125 = vector.broadcast %cst_83 : f32 to vector<8x1xf32>
    %126 = arith.addf %122, %125 : vector<8x1xf32>
    %127 = math.rsqrt %126 : vector<8x1xf32>
    %128 = vector.broadcast %127 : vector<8x1xf32> to vector<8x32xf32>
    %129 = arith.mulf %124, %128 : vector<8x32xf32>
    %130 = vector.broadcast %110 : vector<1x32xf32> to vector<8x32xf32>
    %131 = arith.mulf %129, %130 : vector<8x32xf32>
    %132 = vector.broadcast %111 : vector<1x32xf32> to vector<8x32xf32>
    %133 = arith.addf %131, %132 : vector<8x32xf32>
    %134 = arith.mulf %133, %107 : vector<8x32xf32>
    %c0_84 = arith.constant 0 : index
    %c0_85 = arith.constant 0 : index
    %135 = vector.load %arg25[%c0_84, %c0_85] : memref<32x32xf32, #tpu.memory_space<vmem>>, vector<32x32xf32>
    %c0_86 = arith.constant 0 : index
    %c0_87 = arith.constant 0 : index
    %136 = vector.load %arg26[%c0_86, %c0_87] : memref<1x32xf32, #tpu.memory_space<vmem>>, vector<1x32xf32>
    %c0_88 = arith.constant 0 : index
    %c0_89 = arith.constant 0 : index
    %137 = vector.load %arg27[%c0_88, %c0_89] : memref<32x32xf32, #tpu.memory_space<vmem>>, vector<32x32xf32>
    %c0_90 = arith.constant 0 : index
    %c0_91 = arith.constant 0 : index
    %138 = vector.load %arg28[%c0_90, %c0_91] : memref<1x32xf32, #tpu.memory_space<vmem>>, vector<1x32xf32>
    %c0_92 = arith.constant 0 : index
    %c0_93 = arith.constant 0 : index
    %139 = vector.load %arg29[%c0_92, %c0_93] : memref<32x32xf32, #tpu.memory_space<vmem>>, vector<32x32xf32>
    %c0_94 = arith.constant 0 : index
    %c0_95 = arith.constant 0 : index
    %140 = vector.load %arg30[%c0_94, %c0_95] : memref<1x32xf32, #tpu.memory_space<vmem>>, vector<1x32xf32>
    %c0_96 = arith.constant 0 : index
    %c0_97 = arith.constant 0 : index
    %141 = vector.load %arg31[%c0_96, %c0_97] : memref<32x32xf32, #tpu.memory_space<vmem>>, vector<32x32xf32>
    %c0_98 = arith.constant 0 : index
    %c0_99 = arith.constant 0 : index
    %142 = vector.load %arg32[%c0_98, %c0_99] : memref<1x32xf32, #tpu.memory_space<vmem>>, vector<1x32xf32>
    %c0_100 = arith.constant 0 : index
    %c0_101 = arith.constant 0 : index
    %143 = vector.load %arg33[%c0_100, %c0_101] : memref<1x32xf32, #tpu.memory_space<vmem>>, vector<1x32xf32>
    %c0_102 = arith.constant 0 : index
    %c0_103 = arith.constant 0 : index
    %144 = vector.load %arg34[%c0_102, %c0_103] : memref<1x1xf32, #tpu.memory_space<vmem>>, vector<1x1xf32>
    %cst_104 = arith.constant dense<0.000000e+00> : vector<8x32xf32>
    %145 = tpu.matmul %134, %135, %cst_104 {dimension_numbers = #tpu.dot_dimension_numbers<[1], [0], [0], [1], [0, 0, 1, 1], [], []>} : vector<8x32xf32>, vector<32x32xf32>, vector<8x32xf32> -> vector<8x32xf32>
    %146 = vector.broadcast %136 : vector<1x32xf32> to vector<8x32xf32>
    %147 = arith.addf %145, %146 : vector<8x32xf32>
    %cst_105 = arith.constant 0.000000e+00 : f32
    %148 = vector.broadcast %cst_105 : f32 to vector<8x32xf32>
    %149 = arith.maximumf %147, %148 : vector<8x32xf32>
    %cst_106 = arith.constant dense<0.000000e+00> : vector<8x32xf32>
    %150 = tpu.matmul %149, %137, %cst_106 {dimension_numbers = #tpu.dot_dimension_numbers<[1], [0], [0], [1], [0, 0, 1, 1], [], []>} : vector<8x32xf32>, vector<32x32xf32>, vector<8x32xf32> -> vector<8x32xf32>
    %151 = vector.broadcast %138 : vector<1x32xf32> to vector<8x32xf32>
    %152 = arith.addf %150, %151 : vector<8x32xf32>
    %cst_107 = arith.constant 0.000000e+00 : f32
    %153 = vector.broadcast %cst_107 : f32 to vector<8x32xf32>
    %154 = arith.maximumf %152, %153 : vector<8x32xf32>
    %155 = arith.addf %149, %154 : vector<8x32xf32>
    %cst_108 = arith.constant dense<0.000000e+00> : vector<8x32xf32>
    %156 = tpu.matmul %155, %139, %cst_108 {dimension_numbers = #tpu.dot_dimension_numbers<[1], [0], [0], [1], [0, 0, 1, 1], [], []>} : vector<8x32xf32>, vector<32x32xf32>, vector<8x32xf32> -> vector<8x32xf32>
    %157 = vector.broadcast %140 : vector<1x32xf32> to vector<8x32xf32>
    %158 = arith.addf %156, %157 : vector<8x32xf32>
    %cst_109 = arith.constant 0.000000e+00 : f32
    %159 = vector.broadcast %cst_109 : f32 to vector<8x32xf32>
    %160 = arith.maximumf %158, %159 : vector<8x32xf32>
    %161 = arith.addf %155, %160 : vector<8x32xf32>
    %cst_110 = arith.constant dense<0.000000e+00> : vector<8x32xf32>
    %162 = tpu.matmul %161, %141, %cst_110 {dimension_numbers = #tpu.dot_dimension_numbers<[1], [0], [0], [1], [0, 0, 1, 1], [], []>} : vector<8x32xf32>, vector<32x32xf32>, vector<8x32xf32> -> vector<8x32xf32>
    %163 = vector.broadcast %142 : vector<1x32xf32> to vector<8x32xf32>
    %164 = arith.addf %162, %163 : vector<8x32xf32>
    %cst_111 = arith.constant 0.000000e+00 : f32
    %165 = vector.broadcast %cst_111 : f32 to vector<8x32xf32>
    %166 = arith.maximumf %164, %165 : vector<8x32xf32>
    %167 = arith.addf %161, %166 : vector<8x32xf32>
    %168 = vector.broadcast %143 : vector<1x32xf32> to vector<8x32xf32>
    %169 = arith.mulf %167, %168 : vector<8x32xf32>
    %cst_112 = arith.constant dense<0.000000e+00> : vector<8xf32>
    %170 = vector.multi_reduction <add>, %169, %cst_112 [1] : vector<8x32xf32> to vector<8xf32>
    %171 = vector.shape_cast %170 : vector<8xf32> to vector<8x1xf32>
    %172 = vector.broadcast %144 : vector<1x1xf32> to vector<8x1xf32>
    %173 = arith.addf %171, %172 : vector<8x1xf32>
    %174 = vector.shape_cast %173 : vector<8x1xf32> to vector<1x8xf32>
    %c0_113 = arith.constant 0 : index
    %c1_114 = arith.constant 1 : index
    %c0_115 = arith.constant 0 : index
    %c0_116 = arith.constant 0 : index
    %175 = vector.load %arg37[%c0_113, %c1_114, %c0_115, %c0_116] : memref<1x2x1x8xf32, #tpu.memory_space<vmem>>, vector<1x1x1x8xf32>
    %176 = vector.shape_cast %175 : vector<1x1x1x8xf32> to vector<1x8xf32>
    %177 = vector.shape_cast %174 : vector<1x8xf32> to vector<1x1x1x8xf32>
    tpu.vector_store %arg37[%c0_113, %c1_114, %c0_115, %c0_116], %177 {strides = array<i32>} : memref<1x2x1x8xf32, #tpu.memory_space<vmem>>, vector<1x1x1x8xf32>,
    return
  }
  func.func @transform_0(%arg0: i32, %arg1: i32) -> (i32, i32, i32, i32) {
    %c0_i32 = arith.constant 0 : i32
    %c0_i32_0 = arith.constant 0 : i32
    %c0_i32_1 = arith.constant 0 : i32
    %c0_i32_2 = arith.constant 0 : i32
    return %arg0, %c0_i32, %c0_i32_0, %c0_i32_1 : i32, i32, i32, i32
  }
  func.func @transform_1(%arg0: i32, %arg1: i32) -> (i32, i32, i32, i32) {
    %c0_i32 = arith.constant 0 : i32
    %c0_i32_0 = arith.constant 0 : i32
    %c0_i32_1 = arith.constant 0 : i32
    return %arg0, %c0_i32, %arg1, %c0_i32_0 : i32, i32, i32, i32
  }
  func.func @transform_2(%arg0: i32, %arg1: i32) -> (i32, i32) {
    %c0_i32 = arith.constant 0 : i32
    %c0_i32_0 = arith.constant 0 : i32
    %c0_i32_1 = arith.constant 0 : i32
    return %c0_i32, %c0_i32_0 : i32, i32
  }
  func.func @transform_3(%arg0: i32, %arg1: i32) -> (i32, i32) {
    %c0_i32 = arith.constant 0 : i32
    %c0_i32_0 = arith.constant 0 : i32
    %c0_i32_1 = arith.constant 0 : i32
    return %c0_i32, %c0_i32_0 : i32, i32
  }
  func.func @transform_4(%arg0: i32, %arg1: i32) -> (i32, i32) {
    %c0_i32 = arith.constant 0 : i32
    %c0_i32_0 = arith.constant 0 : i32
    %c0_i32_1 = arith.constant 0 : i32
    return %c0_i32, %c0_i32_0 : i32, i32
  }
  func.func @transform_5(%arg0: i32, %arg1: i32) -> (i32, i32) {
    %c0_i32 = arith.constant 0 : i32
    %c0_i32_0 = arith.constant 0 : i32
    %c0_i32_1 = arith.constant 0 : i32
    return %c0_i32, %c0_i32_0 : i32, i32
  }
  func.func @transform_6(%arg0: i32, %arg1: i32) -> (i32, i32) {
    %c0_i32 = arith.constant 0 : i32
    %c0_i32_0 = arith.constant 0 : i32
    %c0_i32_1 = arith.constant 0 : i32
    return %c0_i32, %c0_i32_0 : i32, i32
  }
  func.func @transform_7(%arg0: i32, %arg1: i32) -> (i32, i32) {
    %c0_i32 = arith.constant 0 : i32
    %c0_i32_0 = arith.constant 0 : i32
    %c0_i32_1 = arith.constant 0 : i32
    return %c0_i32, %c0_i32_0 : i32, i32
  }
  func.func @transform_8(%arg0: i32, %arg1: i32) -> (i32, i32) {
    %c0_i32 = arith.constant 0 : i32
    %c0_i32_0 = arith.constant 0 : i32
    %c0_i32_1 = arith.constant 0 : i32
    return %c0_i32, %c0_i32_0 : i32, i32
  }
  func.func @transform_9(%arg0: i32, %arg1: i32) -> (i32, i32) {
    %c0_i32 = arith.constant 0 : i32
    %c0_i32_0 = arith.constant 0 : i32
    %c0_i32_1 = arith.constant 0 : i32
    return %c0_i32, %c0_i32_0 : i32, i32
  }
  func.func @transform_10(%arg0: i32, %arg1: i32) -> (i32, i32) {
    %c0_i32 = arith.constant 0 : i32
    %c0_i32_0 = arith.constant 0 : i32
    %c0_i32_1 = arith.constant 0 : i32
    return %c0_i32, %c0_i32_0 : i32, i32
  }
  func.func @transform_11(%arg0: i32, %arg1: i32) -> (i32, i32) {
    %c0_i32 = arith.constant 0 : i32
    %c0_i32_0 = arith.constant 0 : i32
    %c0_i32_1 = arith.constant 0 : i32
    return %c0_i32, %c0_i32_0 : i32, i32
  }
  func.func @transform_12(%arg0: i32, %arg1: i32) -> (i32, i32) {
    %c0_i32 = arith.constant 0 : i32
    %c0_i32_0 = arith.constant 0 : i32
    %c0_i32_1 = arith.constant 0 : i32
    return %c0_i32, %c0_i32_0 : i32, i32
  }
  func.func @transform_13(%arg0: i32, %arg1: i32) -> (i32, i32) {
    %c0_i32 = arith.constant 0 : i32
    %c0_i32_0 = arith.constant 0 : i32
    %c0_i32_1 = arith.constant 0 : i32
    return %c0_i32, %c0_i32_0 : i32, i32
  }
  func.func @transform_14(%arg0: i32, %arg1: i32) -> (i32, i32) {
    %c0_i32 = arith.constant 0 : i32
    %c0_i32_0 = arith.constant 0 : i32
    %c0_i32_1 = arith.constant 0 : i32
    return %c0_i32, %c0_i32_0 : i32, i32
  }
  func.func @transform_15(%arg0: i32, %arg1: i32) -> (i32, i32) {
    %c0_i32 = arith.constant 0 : i32
    %c0_i32_0 = arith.constant 0 : i32
    %c0_i32_1 = arith.constant 0 : i32
    return %c0_i32, %c0_i32_0 : i32, i32
  }
  func.func @transform_16(%arg0: i32, %arg1: i32) -> (i32, i32) {
    %c0_i32 = arith.constant 0 : i32
    %c0_i32_0 = arith.constant 0 : i32
    %c0_i32_1 = arith.constant 0 : i32
    return %c0_i32, %c0_i32_0 : i32, i32
  }
  func.func @transform_17(%arg0: i32, %arg1: i32) -> (i32, i32) {
    %c0_i32 = arith.constant 0 : i32
    %c0_i32_0 = arith.constant 0 : i32
    %c0_i32_1 = arith.constant 0 : i32
    return %c0_i32, %c0_i32_0 : i32, i32
  }
  func.func @transform_18(%arg0: i32, %arg1: i32) -> (i32, i32) {
    %c0_i32 = arith.constant 0 : i32
    %c0_i32_0 = arith.constant 0 : i32
    %c0_i32_1 = arith.constant 0 : i32
    return %c0_i32, %c0_i32_0 : i32, i32
  }
  func.func @transform_19(%arg0: i32, %arg1: i32) -> (i32, i32) {
    %c0_i32 = arith.constant 0 : i32
    %c0_i32_0 = arith.constant 0 : i32
    %c0_i32_1 = arith.constant 0 : i32
    return %c0_i32, %c0_i32_0 : i32, i32
  }
  func.func @transform_20(%arg0: i32, %arg1: i32) -> (i32, i32) {
    %c0_i32 = arith.constant 0 : i32
    %c0_i32_0 = arith.constant 0 : i32
    %c0_i32_1 = arith.constant 0 : i32
    return %c0_i32, %c0_i32_0 : i32, i32
  }
  func.func @transform_21(%arg0: i32, %arg1: i32) -> (i32, i32) {
    %c0_i32 = arith.constant 0 : i32
    %c0_i32_0 = arith.constant 0 : i32
    %c0_i32_1 = arith.constant 0 : i32
    return %c0_i32, %c0_i32_0 : i32, i32
  }
  func.func @transform_22(%arg0: i32, %arg1: i32) -> (i32, i32) {
    %c0_i32 = arith.constant 0 : i32
    %c0_i32_0 = arith.constant 0 : i32
    %c0_i32_1 = arith.constant 0 : i32
    return %c0_i32, %c0_i32_0 : i32, i32
  }
  func.func @transform_23(%arg0: i32, %arg1: i32) -> (i32, i32) {
    %c0_i32 = arith.constant 0 : i32
    %c0_i32_0 = arith.constant 0 : i32
    %c0_i32_1 = arith.constant 0 : i32
    return %c0_i32, %c0_i32_0 : i32, i32
  }
  func.func @transform_24(%arg0: i32, %arg1: i32) -> (i32, i32) {
    %c0_i32 = arith.constant 0 : i32
    %c0_i32_0 = arith.constant 0 : i32
    %c0_i32_1 = arith.constant 0 : i32
    return %c0_i32, %c0_i32_0 : i32, i32
  }
  func.func @transform_25(%arg0: i32, %arg1: i32) -> (i32, i32) {
    %c0_i32 = arith.constant 0 : i32
    %c0_i32_0 = arith.constant 0 : i32
    %c0_i32_1 = arith.constant 0 : i32
    return %c0_i32, %c0_i32_0 : i32, i32
  }
  func.func @transform_26(%arg0: i32, %arg1: i32) -> (i32, i32) {
    %c0_i32 = arith.constant 0 : i32
    %c0_i32_0 = arith.constant 0 : i32
    %c0_i32_1 = arith.constant 0 : i32
    return %c0_i32, %c0_i32_0 : i32, i32
  }
  func.func @transform_27(%arg0: i32, %arg1: i32) -> (i32, i32) {
    %c0_i32 = arith.constant 0 : i32
    %c0_i32_0 = arith.constant 0 : i32
    %c0_i32_1 = arith.constant 0 : i32
    return %c0_i32, %c0_i32_0 : i32, i32
  }
  func.func @transform_28(%arg0: i32, %arg1: i32) -> (i32, i32) {
    %c0_i32 = arith.constant 0 : i32
    %c0_i32_0 = arith.constant 0 : i32
    %c0_i32_1 = arith.constant 0 : i32
    return %c0_i32, %c0_i32_0 : i32, i32
  }
  func.func @transform_29(%arg0: i32, %arg1: i32) -> (i32, i32) {
    %c0_i32 = arith.constant 0 : i32
    %c0_i32_0 = arith.constant 0 : i32
    %c0_i32_1 = arith.constant 0 : i32
    return %c0_i32, %c0_i32_0 : i32, i32
  }
  func.func @transform_30(%arg0: i32, %arg1: i32) -> (i32, i32) {
    %c0_i32 = arith.constant 0 : i32
    %c0_i32_0 = arith.constant 0 : i32
    %c0_i32_1 = arith.constant 0 : i32
    return %c0_i32, %c0_i32_0 : i32, i32
  }
  func.func @transform_31(%arg0: i32, %arg1: i32) -> (i32, i32) {
    %c0_i32 = arith.constant 0 : i32
    %c0_i32_0 = arith.constant 0 : i32
    %c0_i32_1 = arith.constant 0 : i32
    return %c0_i32, %c0_i32_0 : i32, i32
  }
  func.func @transform_32(%arg0: i32, %arg1: i32) -> (i32, i32) {
    %c0_i32 = arith.constant 0 : i32
    %c0_i32_0 = arith.constant 0 : i32
    %c0_i32_1 = arith.constant 0 : i32
    return %c0_i32, %c0_i32_0 : i32, i32
  }
  func.func @transform_33(%arg0: i32, %arg1: i32) -> (i32, i32) {
    %c0_i32 = arith.constant 0 : i32
    %c0_i32_0 = arith.constant 0 : i32
    %c0_i32_1 = arith.constant 0 : i32
    return %c0_i32, %c0_i32_0 : i32, i32
  }
  func.func @transform_34(%arg0: i32, %arg1: i32) -> (i32, i32) {
    %c0_i32 = arith.constant 0 : i32
    %c0_i32_0 = arith.constant 0 : i32
    %c0_i32_1 = arith.constant 0 : i32
    return %c0_i32, %c0_i32_0 : i32, i32
  }
  func.func @transform_35(%arg0: i32, %arg1: i32) -> (i32, i32, i32, i32) {
    %c0_i32 = arith.constant 0 : i32
    %c0_i32_0 = arith.constant 0 : i32
    %c0_i32_1 = arith.constant 0 : i32
    return %arg0, %c0_i32, %c0_i32_0, %arg1 : i32, i32, i32, i32
  }
}

</mosaic_0001>

<bundles_post_ra>
// kernel: tpu_custom_call.1
= control target key start
LH: loop header
LB: loop body
LE: loop exit
PB: predicated region body
PF: predicated region fallthrough
CT: control target
= control target key end

     0   :  { %s5327_s6 = smov 1   ;;  %s5328_s10 = smov 2   ;;  %s6422_s0 = inlined_call_operand.smem [shape: u32[36], index: -1, kind: input, shape index: {}] }
   0x1   :  { %s5420_s5 = sld [smem:[%s6422_s0]]   ;;  %s5329_s14 = smov 3  }
   0x2   :  { %s5425_s9 = sld [smem:[%s6422_s0 + %s5327_s6]]   ;;  %s5330_s18 = smov 4  }
   0x3   :  { %s5430_s13 = sld [smem:[%s6422_s0 + %s5328_s10]]   ;;  %s5331_s22 = smov 5  }
   0x4   :  { %s5435_s17 = sld [smem:[%s6422_s0 + %s5329_s14]]   ;;  %s5332_s26 = smov 6  }
   0x5   :  { %s5440_s21 = sld [smem:[%s6422_s0 + %s5330_s18]]   ;;  %s5333_s30 = smov 7  }
   0x6   :  { %s5445_s25 = sld [smem:[%s6422_s0 + %s5331_s22]]   ;;  %s5334_s4 = smov 8  }
   0x7   :  { %6480 = sst [smem:[#allocation75_spill]] %s5420_s5  ;;  %s5335_s10 = smov 9  }
   0x8   :  { %6481 = sst [smem:[#allocation76_spill]] %s5425_s9  ;;  %s5336_s15 = smov 10  }
   0x9   :  { %6482 = sst [smem:[#allocation77_spill]] %s5430_s13  ;;  %s5337_s20 = smov 11  }
   0xa   :  { %6483 = sst [smem:[#allocation78_spill]] %s5435_s17  ;;  %s5339_s1 = smov 13  }
   0xb   :  { %6484 = sst [smem:[#allocation79_spill]] %s5440_s21  ;;  %s5340_s7 = smov 14  }
   0xc   :  { %6485 = sst [smem:[#allocation80_spill]] %s5445_s25  ;;  %s5342_s22 = smov 16  }
   0xd   :  { %s5450_s29 = sld [smem:[%s6422_s0 + %s5332_s26]]   ;;  %s5338_s26 = smov 12  }
   0xe   :  { %s5455_s3 = sld [smem:[%s6422_s0 + %s5333_s30]]   ;;  %s5343_s28 = smov 17  }
   0xf   :  { %s5460_s8 = sld [smem:[%s6422_s0 + %s5334_s4]]   ;;  %s5349_s16 = smov 23  }
  0x10   :  { %s5465_s14 = sld [smem:[%s6422_s0 + %s5335_s10]]   ;;  %s5350_s23 = smov 24  }
  0x11   :  { %s5470_s19 = sld [smem:[%s6422_s0 + %s5336_s15]]   ;;  %s5341_s15 = smov 15  }
  0x12   :  { %s5475_s24 = sld [smem:[%s6422_s0 + %s5337_s20]]   ;;  %s5352_s10 = smov 26  }
  0x13   :  { %6486 = sst [smem:[#allocation81_spill]] %s5450_s29 }
  0x14   :  { %6487 = sst [smem:[#allocation82_spill]] %s5455_s3 }
  0x15   :  { %6488 = sst [smem:[#allocation83_spill]] %s5460_s8 }
  0x16   :  { %6489 = sst [smem:[#allocation84_spill]] %s5465_s14 }
  0x17   :  { %6490 = sst [smem:[#allocation85_spill]] %s5470_s19 }
  0x18   :  { %6491 = sst [smem:[#allocation86_spill]] %s5475_s24 }
  0x19   :  { %s5480_s30 = sld [smem:[%s6422_s0 + %s5338_s26]]  }
  0x1a   :  { %s5485_s6 = sld [smem:[%s6422_s0 + %s5339_s1]]   ;;  %s5351_s1 = smov 25  }
  0x1b   :  { %s5490_s12 = sld [smem:[%s6422_s0 + %s5340_s7]]   ;;  %s5344_s7 = smov 18  }
  0x1c   :  { %s5495_s20 = sld [smem:[%s6422_s0 + %s5341_s15]]   ;;  %s5345_s15 = smov 19  }
  0x1d   :  { %s5500_s27 = sld [smem:[%s6422_s0 + %s5342_s22]]   ;;  %s5346_s22 = smov 20  }
  0x1e   :  { %s5505_s4 = sld [smem:[%s6422_s0 + %s5343_s28]]   ;;  %s5347_s28 = smov 21  }
  0x1f   :  { %6492 = sst [smem:[#allocation87_spill]] %s5480_s30 }
  0x20   :  { %6493 = sst [smem:[#allocation88_spill]] %s5485_s6 }
  0x21   :  { %6494 = sst [smem:[#allocation89_spill]] %s5490_s12 }
  0x22   :  { %6495 = sst [smem:[#allocation90_spill]] %s5495_s20 }
  0x23   :  { %6496 = sst [smem:[#allocation91_spill]] %s5500_s27 }
  0x24   :  { %6497 = sst [smem:[#allocation92_spill]] %s5505_s4 }
  0x25   :  { %s5510_s9 = sld [smem:[%s6422_s0 + %s5344_s7]]   ;;  %s5348_s7 = smov 22  }
  0x26   :  { %s5515_s5 = sld [smem:[%s6422_s0 + %s5345_s15]]   ;;  %s5357_s15 = smov 31  }
  0x27   :  { %s5520_s27 = sld [smem:[%s6422_s0 + %s5346_s22]]  }
  0x28   :  { %s5525_s12 = sld [smem:[%s6422_s0 + %s5347_s28]]  }
  0x29   :  { %s5533_s30 = sld [smem:[%s6422_s0 + %s5349_s16]]   ;;  %s5353_s16 = smov 27  }
  0x2a   :  { %s5543_s19 = sld [smem:[%s6422_s0 + %s5351_s1]]   ;;  %s5355_s1 = smov 29  }
  0x2b   :  { %6498 = sst [smem:[#allocation93_spill]] %s5510_s9 }
  0x2c   :  { %6499 = sst [smem:[#allocation94_spill]] %s5515_s5 }
  0x2d   :  { %6500 = sst [smem:[#allocation95_spill]] %s5520_s27 }
  0x2e   :  { %6501 = sst [smem:[#allocation96_spill]] %s5525_s12 }
  0x2f   :  { %s3392_s9 = sld [smem:[%s6422_s0 + %s5348_s7]]  }
  0x30   :  { %6502 = sst [smem:[#allocation97_spill]] %s5533_s30 }
  0x31   :  { %s5538_s27 = sld [smem:[%s6422_s0 + %s5350_s23]]   ;;  %s5354_s23 = smov 28  }
  0x32   :  { %6504 = sst [smem:[#allocation99_spill]] %s5543_s19  ;;  %s5360_s19 = smov 35  }
  0x33   :  { %s5548_s8 = sld [smem:[%s6422_s0 + %s5352_s10]]   ;;  %s5356_s10 = smov 30  }
  0x34   :  { %s5553_s30 = sld [smem:[%s6422_s0 + %s5353_s16]]  }
  0x35   :  { %s5558_s29 = sld [smem:[%s6422_s0 + %s5354_s23]]   ;;  %v76_v0 = vstv %s3392_s9  ;;  %s5358_s9 = smov 33  }
  0x36   :  { %s5563_s7 = sld [smem:[%s6422_s0 + %s5355_s1]]   ;;  %77 = vst [vmem:[#allocation2] sm:$0x1] %v76_v0  ;;  %s5359_s1 = smov 34  }
  0x37   :  { %6503 = sst [smem:[#allocation98_spill]] %s5538_s27 }
  0x38   :  { %s5568_s16 = sld [smem:[%s6422_s0 + %s5356_s10]]  }
  0x39   :  { %6505 = sst [smem:[#allocation100_spill]] %s5548_s8 }
  0x3a   :  { %6506 = sst [smem:[#allocation101_spill]] %s5553_s30  ;;  %s5361_s30 = smov 32  }
  0x3b   :  { %s5573_s23 = sld [smem:[%s6422_s0 + %s5357_s15]]  }
  0x3c   :  { %6507 = sst [smem:[#allocation102_spill]] %s5563_s7 }
  0x3d   :  { %s5578_s28 = sld [smem:[%s6422_s0 + %s5358_s9]]  }
  0x3e   :  { %6508 = sst [smem:[#allocation103_spill]] %s5568_s16 }
  0x3f   :  { %s5583_s21 = sld [smem:[%s6422_s0 + %s5359_s1]]  }
  0x40   :  { %s5588_s16 = sld [smem:[%s6422_s0 + %s5360_s19]]  }
  0x41   :  { %6509 = sst [smem:[#allocation104_spill]] %s5573_s23 }
  0x42   :  { %s3402_s23 = sld [smem:[%s6422_s0 + %s5361_s30]]  }
  0x43   :  { %6510 = sst [smem:[#allocation105_spill]] %s5578_s28 }
  0x45   :  { %6511 = sst [smem:[#allocation106_spill]] %s5583_s21 }
  0x46   :  { %6512 = sst [smem:[#allocation107_spill]] %s5588_s16 }
  0x48   :  { %v78_v1 = vstv %s3402_s23 }
  0x49   :  { %79 = vst [vmem:[#allocation3] sm:$0x1] %v78_v1 }
  0x4a   :  { %80 = vsyncpa [#allocation5], 0 }
  0x4b   :  { %82 = vsyncpa [#allocation5 + $0x1], 0 }
  0x4c   :  { %83 = vsyncpa [#allocation8], 0 }
  0x4d   :  { %85 = vsyncpa [#allocation8 + $0x1], 0 }
  0x4e   :  { %86 = vsyncpa [#allocation11], 0 }
  0x4f   :  { %87 = vsyncpa [#allocation14], 0 }
  0x50   :  { %88 = vsyncpa [#allocation17], 0 }
  0x51   :  { %89 = vsyncpa [#allocation20], 0 }
  0x52   :  { %90 = vsyncpa [#allocation23], 0 }
  0x53   :  { %91 = vsyncpa [#allocation26], 0 }
  0x54   :  { %92 = vsyncpa [#allocation29], 0 }
  0x55   :  { %93 = vsyncpa [#allocation32], 0 }
  0x56   :  { %94 = vsyncpa [#allocation35], 0 }
  0x57   :  { %95 = vsyncpa [#allocation38], 0 }
  0x58   :  { %96 = vsyncpa [#allocation41], 0 }
  0x59   :  { %97 = vsyncpa [#allocation44], 0 }
  0x5a   :  { %98 = vsyncpa [#allocation47], 0 }
  0x5b   :  { %99 = vsyncpa [#allocation50], 0 }
  0x5c   :  { %100 = vsyncpa [#allocation53], 0 }
  0x5d   :  { %101 = vsyncpa [#allocation6], 0 }
  0x5e   :  { %103 = vsyncpa [#allocation6 + $0x1], 0  ;;  %s5593_s0 = smov 0   ;;  %s5595_s7 = smov 0  }
  0x5f   :  { %s5597_s23 = smov 0   ;;  %s5599_s9 = smov 0  }
  0x60   :  { %s5601_s22 = smov 0   ;;  %s5603_s26 = smov 0  }
  0x61 LB: > { %s6513_s28 = sld [smem:[#allocation105_spill]]  ;;  %s6514_s27 = sld [smem:[#allocation98_spill]]  ;;  %s5313_s23 = sphi %s5597_s23, %s6599_s23   ;;  %s5309_s7 = sphi %s5595_s7, %s6598_s7   ;;  %s5305_s0 = sphi %s5593_s0, %s6597_s0   ;;  %s5325_s26 = sphi %s5603_s26, %s109_s26   ;;  %s5321_s22 = sphi %s5601_s22, %s6601_s22   ;;  %s5317_s9 = sphi %s5599_s9, %s6600_s9  }
  0x62   : > { %s6515_s25 = sld [smem:[#allocation80_spill]]  ;;  %s6516_s24 = sld [smem:[#allocation86_spill]] }
  0x63   : > { %s6517_s21 = sld [smem:[#allocation106_spill]]  ;;  %s6519_s14 = sld [smem:[#allocation84_spill]] }
  0x64   : > { %s6518_s20 = sld [smem:[#allocation90_spill]]  ;;  %s6520_s12 = sld [smem:[#allocation96_spill]] }
  0x65   : > { %s6521_s8 = sld [smem:[#allocation100_spill]]  ;;  %s6522_s6 = sld [smem:[#allocation88_spill]] }
  0x66   : > { %s6523_s5 = sld [smem:[#allocation94_spill]]  ;;  %s6524_s4 = sld [smem:[#allocation92_spill]] }
  0x67   : > { %s6525_s3 = sld [smem:[#allocation82_spill]]  ;;  %s6526_s17 = sld [smem:[#allocation78_spill]] }
  0x68   : > { %s6527_s13 = sld [smem:[#allocation77_spill]]  ;;  %6528 = sst [smem:[#allocation108_spill]] %s5317_s9 }
  0x69   : > { %s5624_s1 = sadd.s32 4294967295, %s5325_s26   ;;  %p3408_p0 = scmp.ge.s32.totalorder %s5325_s26, 1 }
  0x6a   : > { %p6441_p1 = scmp.eq.s32.totalorder %s5624_s1, 0  ;;  %p901_p2 = scmp.lt.s32.totalorder %s5325_s26, 3 }
  0x6b   : > { %s5362_s19 = smov [#allocation9]   ;;  %s5363_s11 = smov [#allocation10]  }
  0x6c   : > { %p5629_p3 = pnand %p3408_p0, %p901_p2  ;;  %s914_s10 = sshll.u32 %s5362_s19, 4  ;;  %s915_s10 = int_to_ptr.vmem [resolvable:$true] %s914_s10 }
  0x6d   : > { %s925_s30 = sshll.u32 %s5363_s11, 4  ;;  %s5364_s18 = smov [#allocation13]   ;;  %s5642_s30 = int_to_ptr.vmem [resolvable:$true] %s925_s30 }
  0x6e   : > { %s6529_s2 = scalar_select %p5629_p3, 1, 0 }
  0x6f   : > { %p3936_p5 = pneg %p5629_p3  ;;  %s946_s16 = sshll.u32 %s5364_s18, 4  ;;  %s5644_s16 = int_to_ptr.vmem [resolvable:$true] %s946_s16 }
  0x70   : > { %6530 = sst [smem:[#allocation109_spill]] %s6529_s2  ;;  %s4247_s19 = scalar_lea.hbm %s6527_s13, 32 }
  0x71   : > { %p5638_p6 = pnand %p3936_p5, %p6441_p1  ;;  %p4248_p7 = scmp.ne.s32.totalorder %s6527_s13, %s4247_s19 }
  0x72   : > { %p4254_p11 = scmp.lt.u32.totalorder %s4247_s19, %s6527_s13 }
  0x73   : > { %p5650_p8 = pneg %p5638_p6 }
  0x75   : > { %p4250_p9 = pnand %p5650_p8, %p4248_p7 }
  0x77   : > { %p4251_p10 = pneg %p4250_p9 }
  0x79   : > { %p4256_p12 = pnand %p4254_p11, %p4251_p10 }
  0x7b   : > { %4259 = shalt.err (!%p4256_p12)
}
  0x7c   : > { %s4260_s11 = scalar_lea.vmem %s915_s10, 32  ;;  %p4268_p5 = scmp.lt.s32.totalorder %s915_s10, %s915_s10 }
  0x7d   : > { %p4261_p13 = scmp.ne.s32.totalorder %s915_s10, %s4260_s11  ;;  %p4269_p4 = scmp.lt.s32.totalorder %s4260_s11, %s4260_s11 }
  0x7f   : > { %p4263_p0 = pnand %p4261_p13, %p5650_p8  ;;  %p4270_p1 = por %p4269_p4, %p4268_p5 }
  0x81   : > { %p4264_p2 = pneg %p4263_p0 }
  0x83   : > { %p4271_p3 = pnand %p4270_p1, %p4264_p2 }
  0x85   : > { %4274 = shalt.err (!%p4271_p3)
}
  0x86   : > { %3939 = dma.hbm_to_vmem [thread:$0]  (!%p5638_p6), %s6527_s13, 32, %s915_s10, [#allocation8]  }
  0x87   : > { %s4275_s18 = scalar_lea.hbm %s6526_s17, 32 }
  0x88   : > { %p4276_p7 = scmp.ne.s32.totalorder %s6526_s17, %s4275_s18  ;;  %p4282_p11 = scmp.lt.u32.totalorder %s4275_s18, %s6526_s17 }
  0x8a   : > { %p4278_p9 = pnand %p4276_p7, %p5650_p8 }
  0x8c   : > { %p4279_p10 = pneg %p4278_p9 }
  0x8e   : > { %p4284_p12 = pnand %p4282_p11, %p4279_p10 }
  0x90   : > { %4287 = shalt.err (!%p4284_p12)
}
  0x91   : > { %s4288_s19 = scalar_lea.vmem %s5642_s30, 32  ;;  %p4296_p13 = scmp.lt.s32.totalorder %s5642_s30, %s5642_s30 }
  0x92   : > { %p4289_p1 = scmp.ne.s32.totalorder %s5642_s30, %s4288_s19  ;;  %p4297_p0 = scmp.lt.s32.totalorder %s4288_s19, %s4288_s19 }
  0x94   : > { %p4291_p3 = pnand %p4289_p1, %p5650_p8  ;;  %p4298_p2 = por %p4297_p0, %p4296_p13 }
  0x96   : > { %p4292_p4 = pneg %p4291_p3 }
  0x98   : > { %p4299_p5 = pnand %p4298_p2, %p4292_p4 }
  0x9a   : > { %4302 = shalt.err (!%p4299_p5)
}
  0x9b   : > { %3942 = dma.hbm_to_vmem [thread:$0]  (!%p5638_p6), %s6526_s17, 32, %s5642_s30, [#allocation11]  }
  0x9c   : > { %s4303_s10 = scalar_lea.hbm %s6515_s25, 512 }
  0x9d   : > { %p4304_p7 = scmp.ne.s32.totalorder %s6515_s25, %s4303_s10  ;;  %p4310_p11 = scmp.lt.u32.totalorder %s4303_s10, %s6515_s25 }
  0x9f   : > { %p4306_p9 = pnand %p4304_p7, %p5650_p8 }
  0xa1   : > { %p4307_p10 = pneg %p4306_p9 }
  0xa3   : > { %p4312_p12 = pnand %p4310_p11, %p4307_p10 }
  0xa5   : > { %4315 = shalt.err (!%p4312_p12)
}
  0xa6   : > { %s4316_s11 = scalar_lea.vmem %s5644_s16, 512  ;;  %p4324_p13 = scmp.lt.s32.totalorder %s5644_s16, %s5644_s16 }
  0xa7   : > { %p4317_p1 = scmp.ne.s32.totalorder %s5644_s16, %s4316_s11  ;;  %p4325_p0 = scmp.lt.s32.totalorder %s4316_s11, %s4316_s11 }
  0xa9   : > { %p4319_p3 = pnand %p4317_p1, %p5650_p8  ;;  %p4326_p2 = por %p4325_p0, %p4324_p13 }
  0xab   : > { %p4320_p4 = pneg %p4319_p3 }
  0xad   : > { %p4327_p5 = pnand %p4326_p2, %p4320_p4 }
  0xaf   : > { %4330 = shalt.err (!%p4327_p5)
}
  0xb0   : > { %s6446_s30 = smov 128   ;;  %s6448_s18 = smov 8  }
  0xb1   : > { %3948 = dma.hbm_to_vmem [thread:$0]  (!%p5638_p6), %s6515_s25, 512, %s5644_s16, [#allocation14], %s6446_s30, %s6446_s30, %s6448_s18  }
  0xb2   : > { %s5367_s19 = smov [#allocation16]   ;;  %s5368_s11 = smov [#allocation19]  }
  0xb3   : > { %s970_s10 = sshll.u32 %s5367_s19, 4  ;;  %s994_s13 = sshll.u32 %s5368_s11, 4  ;;  %s971_s10 = int_to_ptr.vmem [resolvable:$true] %s970_s10  ;;  %s995_s13 = int_to_ptr.vmem [resolvable:$true] %s994_s13 }
  0xb4   : > { %s4331_s17 = scalar_lea.hbm %s6525_s3, 512 }
  0xb5   : > { %p4332_p7 = scmp.ne.s32.totalorder %s6525_s3, %s4331_s17  ;;  %p4338_p11 = scmp.lt.u32.totalorder %s4331_s17, %s6525_s3 }
  0xb7   : > { %p4334_p9 = pnand %p4332_p7, %p5650_p8 }
  0xb9   : > { %p4335_p10 = pneg %p4334_p9 }
  0xbb   : > { %p4340_p12 = pnand %p4338_p11, %p4335_p10 }
  0xbd   : > { %4343 = shalt.err (!%p4340_p12)
}
  0xbe   : > { %s4344_s2 = scalar_lea.vmem %s971_s10, 512  ;;  %p4352_p13 = scmp.lt.s32.totalorder %s971_s10, %s971_s10 }
  0xbf   : > { %p4345_p1 = scmp.ne.s32.totalorder %s971_s10, %s4344_s2  ;;  %p4353_p0 = scmp.lt.s32.totalorder %s4344_s2, %s4344_s2 }
  0xc1   : > { %p4347_p3 = pnand %p4345_p1, %p5650_p8  ;;  %p4354_p2 = por %p4353_p0, %p4352_p13 }
  0xc3   : > { %p4348_p4 = pneg %p4347_p3 }
  0xc5   : > { %p4355_p5 = pnand %p4354_p2, %p4348_p4 }
  0xc7   : > { %4358 = shalt.err (!%p4355_p5)
}
  0xc8   : > { %3954 = dma.hbm_to_vmem [thread:$0]  (!%p5638_p6), %s6525_s3, 512, %s971_s10, [#allocation17], %s6446_s30, %s6446_s30, %s6448_s18  }
  0xc9   : > { %s4359_s17 = scalar_lea.hbm %s6519_s14, 512 }
  0xca   : > { %p4360_p7 = scmp.ne.s32.totalorder %s6519_s14, %s4359_s17  ;;  %p4366_p11 = scmp.lt.u32.totalorder %s4359_s17, %s6519_s14 }
  0xcc   : > { %p4362_p9 = pnand %p4360_p7, %p5650_p8 }
  0xce   : > { %p4363_p10 = pneg %p4362_p9 }
  0xd0   : > { %p4368_p12 = pnand %p4366_p11, %p4363_p10 }
  0xd2   : > { %4371 = shalt.err (!%p4368_p12)
}
  0xd3   : > { %s4372_s16 = scalar_lea.vmem %s995_s13, 512  ;;  %p4380_p13 = scmp.lt.s32.totalorder %s995_s13, %s995_s13 }
  0xd4   : > { %p4373_p1 = scmp.ne.s32.totalorder %s995_s13, %s4372_s16  ;;  %p4381_p0 = scmp.lt.s32.totalorder %s4372_s16, %s4372_s16 }
  0xd6   : > { %p4375_p3 = pnand %p4373_p1, %p5650_p8  ;;  %p4382_p2 = por %p4381_p0, %p4380_p13 }
  0xd8   : > { %p4376_p4 = pneg %p4375_p3 }
  0xda   : > { %p4383_p5 = pnand %p4382_p2, %p4376_p4 }
  0xdc   : > { %4386 = shalt.err (!%p4383_p5)
}
  0xdd   : > { %3960 = dma.hbm_to_vmem [thread:$0]  (!%p5638_p6), %s6519_s14, 512, %s995_s13, [#allocation20], %s6446_s30, %s6446_s30, %s6448_s18  }
  0xde   : > { %s5369_s2 = smov [#allocation22]   ;;  %s5370_s10 = smov [#allocation25]  }
  0xdf   : > { %s1018_s19 = sshll.u32 %s5369_s2, 4  ;;  %s1042_s11 = sshll.u32 %s5370_s10, 4  ;;  %s1019_s19 = int_to_ptr.vmem [resolvable:$true] %s1018_s19  ;;  %s1043_s11 = int_to_ptr.vmem [resolvable:$true] %s1042_s11 }
  0xe0   : > { %s4387_s17 = scalar_lea.hbm %s6516_s24, 512 }
  0xe1   : > { %p4388_p7 = scmp.ne.s32.totalorder %s6516_s24, %s4387_s17  ;;  %p4394_p11 = scmp.lt.u32.totalorder %s4387_s17, %s6516_s24 }
  0xe3   : > { %p4390_p9 = pnand %p4388_p7, %p5650_p8 }
  0xe5   : > { %p4391_p10 = pneg %p4390_p9 }
  0xe7   : > { %p4396_p12 = pnand %p4394_p11, %p4391_p10 }
  0xe9   : > { %4399 = shalt.err (!%p4396_p12)
}
  0xea   : > { %s4400_s16 = scalar_lea.vmem %s1019_s19, 512  ;;  %p4408_p13 = scmp.lt.s32.totalorder %s1019_s19, %s1019_s19 }
  0xeb   : > { %p4401_p1 = scmp.ne.s32.totalorder %s1019_s19, %s4400_s16  ;;  %p4409_p0 = scmp.lt.s32.totalorder %s4400_s16, %s4400_s16 }
  0xed   : > { %p4403_p3 = pnand %p4401_p1, %p5650_p8  ;;  %p4410_p2 = por %p4409_p0, %p4408_p13 }
  0xef   : > { %p4404_p4 = pneg %p4403_p3 }
  0xf1   : > { %p4411_p5 = pnand %p4410_p2, %p4404_p4 }
  0xf3   : > { %4414 = shalt.err (!%p4411_p5)
}
  0xf4   : > { %3966 = dma.hbm_to_vmem [thread:$0]  (!%p5638_p6), %s6516_s24, 512, %s1019_s19, [#allocation23], %s6446_s30, %s6446_s30, %s6448_s18  }
  0xf5   : > { %s4415_s13 = scalar_lea.hbm %s6522_s6, 512 }
  0xf6   : > { %p4416_p7 = scmp.ne.s32.totalorder %s6522_s6, %s4415_s13  ;;  %p4422_p11 = scmp.lt.u32.totalorder %s4415_s13, %s6522_s6 }
  0xf8   : > { %p4418_p9 = pnand %p4416_p7, %p5650_p8 }
  0xfa   : > { %p4419_p10 = pneg %p4418_p9 }
  0xfc   : > { %p4424_p12 = pnand %p4422_p11, %p4419_p10 }
  0xfe   : > { %4427 = shalt.err (!%p4424_p12)
}
  0xff   : > { %s4428_s2 = scalar_lea.vmem %s1043_s11, 512  ;;  %p4436_p13 = scmp.lt.s32.totalorder %s1043_s11, %s1043_s11 }
 0x100   : > { %p4429_p1 = scmp.ne.s32.totalorder %s1043_s11, %s4428_s2  ;;  %p4437_p0 = scmp.lt.s32.totalorder %s4428_s2, %s4428_s2 }
 0x102   : > { %p4431_p3 = pnand %p4429_p1, %p5650_p8  ;;  %p4438_p2 = por %p4437_p0, %p4436_p13 }
 0x104   : > { %p4432_p4 = pneg %p4431_p3 }
 0x106   : > { %p4439_p5 = pnand %p4438_p2, %p4432_p4 }
 0x108   : > { %4442 = shalt.err (!%p4439_p5)
}
 0x109   : > { %3972 = dma.hbm_to_vmem [thread:$0]  (!%p5638_p6), %s6522_s6, 512, %s1043_s11, [#allocation26], %s6446_s30, %s6446_s30, %s6448_s18  }
 0x10a   : > { %s5371_s19 = smov [#allocation28]   ;;  %s5372_s17 = smov [#allocation31]  }
 0x10b   : > { %s1066_s10 = sshll.u32 %s5371_s19, 4  ;;  %s1090_s16 = sshll.u32 %s5372_s17, 4  ;;  %s1067_s10 = int_to_ptr.vmem [resolvable:$true] %s1066_s10  ;;  %s1091_s16 = int_to_ptr.vmem [resolvable:$true] %s1090_s16 }
 0x10c   : > { %s4443_s13 = scalar_lea.hbm %s6518_s20, 512 }
 0x10d   : > { %p4444_p7 = scmp.ne.s32.totalorder %s6518_s20, %s4443_s13  ;;  %p4450_p11 = scmp.lt.u32.totalorder %s4443_s13, %s6518_s20 }
 0x10f   : > { %p4446_p9 = pnand %p4444_p7, %p5650_p8 }
 0x111   : > { %p4447_p10 = pneg %p4446_p9 }
 0x113   : > { %p4452_p12 = pnand %p4450_p11, %p4447_p10 }
 0x115   : > { %4455 = shalt.err (!%p4452_p12)
}
 0x116   : > { %s4456_s2 = scalar_lea.vmem %s1067_s10, 512  ;;  %p4464_p13 = scmp.lt.s32.totalorder %s1067_s10, %s1067_s10 }
 0x117   : > { %p4457_p1 = scmp.ne.s32.totalorder %s1067_s10, %s4456_s2  ;;  %p4465_p0 = scmp.lt.s32.totalorder %s4456_s2, %s4456_s2 }
 0x119   : > { %p4459_p3 = pnand %p4457_p1, %p5650_p8  ;;  %p4466_p2 = por %p4465_p0, %p4464_p13 }
 0x11b   : > { %p4460_p4 = pneg %p4459_p3 }
 0x11d   : > { %p4467_p5 = pnand %p4466_p2, %p4460_p4 }
 0x11f   : > { %4470 = shalt.err (!%p4467_p5)
}
 0x120   : > { %3978 = dma.hbm_to_vmem [thread:$0]  (!%p5638_p6), %s6518_s20, 512, %s1067_s10, [#allocation29], %s6446_s30, %s6446_s30, %s6448_s18  }
 0x121   : > { %s4471_s11 = scalar_lea.hbm %s6524_s4, 512 }
 0x122   : > { %p4472_p7 = scmp.ne.s32.totalorder %s6524_s4, %s4471_s11  ;;  %p4478_p11 = scmp.lt.u32.totalorder %s4471_s11, %s6524_s4 }
 0x124   : > { %p4474_p9 = pnand %p4472_p7, %p5650_p8 }
 0x126   : > { %p4475_p10 = pneg %p4474_p9 }
 0x128   : > { %p4480_p12 = pnand %p4478_p11, %p4475_p10 }
 0x12a   : > { %4483 = shalt.err (!%p4480_p12)
}
 0x12b   : > { %s4484_s19 = scalar_lea.vmem %s1091_s16, 512  ;;  %p4492_p13 = scmp.lt.s32.totalorder %s1091_s16, %s1091_s16 }
 0x12c   : > { %p4485_p1 = scmp.ne.s32.totalorder %s1091_s16, %s4484_s19  ;;  %p4493_p0 = scmp.lt.s32.totalorder %s4484_s19, %s4484_s19 }
 0x12e   : > { %p4487_p3 = pnand %p4485_p1, %p5650_p8  ;;  %p4494_p2 = por %p4493_p0, %p4492_p13 }
 0x130   : > { %p4488_p4 = pneg %p4487_p3 }
 0x132   : > { %p4495_p5 = pnand %p4494_p2, %p4488_p4 }
 0x134   : > { %4498 = shalt.err (!%p4495_p5)
}
 0x135   : > { %3984 = dma.hbm_to_vmem [thread:$0]  (!%p5638_p6), %s6524_s4, 512, %s1091_s16, [#allocation32], %s6446_s30, %s6446_s30, %s6448_s18  }
 0x136   : > { %s5373_s10 = smov [#allocation34]   ;;  %s5374_s13 = smov [#allocation37]  }
 0x137   : > { %s1114_s17 = sshll.u32 %s5373_s10, 4  ;;  %s1139_s2 = sshll.u32 %s5374_s13, 4  ;;  %s1115_s17 = int_to_ptr.vmem [resolvable:$true] %s1114_s17  ;;  %s1140_s2 = int_to_ptr.vmem [resolvable:$true] %s1139_s2 }
 0x138   : > { %s4499_s11 = scalar_lea.hbm %s6523_s5, 512 }
 0x139   : > { %p4500_p7 = scmp.ne.s32.totalorder %s6523_s5, %s4499_s11  ;;  %p4506_p11 = scmp.lt.u32.totalorder %s4499_s11, %s6523_s5 }
 0x13b   : > { %p4502_p9 = pnand %p4500_p7, %p5650_p8 }
 0x13d   : > { %p4503_p10 = pneg %p4502_p9 }
 0x13f   : > { %p4508_p12 = pnand %p4506_p11, %p4503_p10 }
 0x141   : > { %4511 = shalt.err (!%p4508_p12)
}
 0x142   : > { %s4512_s19 = scalar_lea.vmem %s1115_s17, 512  ;;  %p4520_p13 = scmp.lt.s32.totalorder %s1115_s17, %s1115_s17 }
 0x143   : > { %p4513_p1 = scmp.ne.s32.totalorder %s1115_s17, %s4512_s19  ;;  %p4521_p0 = scmp.lt.s32.totalorder %s4512_s19, %s4512_s19 }
 0x145   : > { %p4515_p3 = pnand %p4513_p1, %p5650_p8  ;;  %p4522_p2 = por %p4521_p0, %p4520_p13 }
 0x147   : > { %p4516_p4 = pneg %p4515_p3 }
 0x149   : > { %p4523_p5 = pnand %p4522_p2, %p4516_p4 }
 0x14b   : > { %4526 = shalt.err (!%p4523_p5)
}
 0x14c   : > { %3990 = dma.hbm_to_vmem [thread:$0]  (!%p5638_p6), %s6523_s5, 512, %s1115_s17, [#allocation35], %s6446_s30, %s6446_s30, %s6448_s18  }
 0x14d   : > { %s4527_s16 = scalar_lea.hbm %s6520_s12, 16 }
 0x14e   : > { %p4528_p7 = scmp.ne.s32.totalorder %s6520_s12, %s4527_s16  ;;  %p4534_p11 = scmp.lt.u32.totalorder %s4527_s16, %s6520_s12 }
 0x150   : > { %p4530_p9 = pnand %p4528_p7, %p5650_p8 }
 0x152   : > { %p4531_p10 = pneg %p4530_p9 }
 0x154   : > { %p4536_p12 = pnand %p4534_p11, %p4531_p10 }
 0x156   : > { %4539 = shalt.err (!%p4536_p12)
}
 0x157   : > { %s4540_s10 = scalar_lea.vmem %s1140_s2, 16  ;;  %s4547_s13 = scalar_lea.vmem %s1140_s2, 32 }
 0x158   : > { %p4541_p1 = scmp.ne.s32.totalorder %s1140_s2, %s4540_s10  ;;  %p4548_p13 = scmp.lt.s32.totalorder %s1140_s2, %s1140_s2 }
 0x159   : > { %p4549_p0 = scmp.lt.s32.totalorder %s4547_s13, %s4540_s10 }
 0x15a   : > { %p4543_p3 = pnand %p4541_p1, %p5650_p8 }
 0x15b   : > { %p4550_p2 = por %p4549_p0, %p4548_p13 }
 0x15c   : > { %p4544_p4 = pneg %p4543_p3 }
 0x15e   : > { %p4551_p5 = pnand %p4550_p2, %p4544_p4 }
 0x160   : > { %4554 = shalt.err (!%p4551_p5)
}
 0x161   : > { %3996 = dma.hbm_to_vmem [thread:$0]  (!%p5638_p6), %s6520_s12, 16, %s1140_s2, [#allocation38]  }
 0x162   : > { %s5375_s17 = smov [#allocation40]   ;;  %s5376_s19 = smov [#allocation43]  }
 0x163   : > { %s1166_s11 = sshll.u32 %s5375_s17, 4  ;;  %s1190_s16 = sshll.u32 %s5376_s19, 4  ;;  %s1167_s11 = int_to_ptr.vmem [resolvable:$true] %s1166_s11  ;;  %s1191_s16 = int_to_ptr.vmem [resolvable:$true] %s1190_s16 }
 0x164   : > { %s4555_s30 = scalar_lea.hbm %s6514_s27, 16 }
 0x165   : > { %p4556_p7 = scmp.ne.s32.totalorder %s6514_s27, %s4555_s30  ;;  %p4562_p11 = scmp.lt.u32.totalorder %s4555_s30, %s6514_s27 }
 0x167   : > { %p4558_p9 = pnand %p4556_p7, %p5650_p8 }
 0x169   : > { %p4559_p10 = pneg %p4558_p9 }
 0x16b   : > { %p4564_p12 = pnand %p4562_p11, %p4559_p10 }
 0x16d   : > { %4567 = shalt.err (!%p4564_p12)
}
 0x16e   : > { %s4568_s10 = scalar_lea.vmem %s1167_s11, 16  ;;  %s4575_s2 = scalar_lea.vmem %s1167_s11, 32 }
 0x16f   : > { %p4569_p1 = scmp.ne.s32.totalorder %s1167_s11, %s4568_s10  ;;  %p4576_p13 = scmp.lt.s32.totalorder %s1167_s11, %s1167_s11 }
 0x170   : > { %p4577_p0 = scmp.lt.s32.totalorder %s4575_s2, %s4568_s10 }
 0x171   : > { %p4571_p3 = pnand %p4569_p1, %p5650_p8 }
 0x172   : > { %p4578_p2 = por %p4577_p0, %p4576_p13 }
 0x173   : > { %p4572_p4 = pneg %p4571_p3 }
 0x175   : > { %p4579_p5 = pnand %p4578_p2, %p4572_p4 }
 0x177   : > { %4582 = shalt.err (!%p4579_p5)
}
 0x178   : > { %4002 = dma.hbm_to_vmem [thread:$0]  (!%p5638_p6), %s6514_s27, 16, %s1167_s11, [#allocation41]  }
 0x179   : > { %s4583_s30 = scalar_lea.hbm %s6521_s8, 16 }
 0x17a   : > { %p4584_p7 = scmp.ne.s32.totalorder %s6521_s8, %s4583_s30  ;;  %p4590_p11 = scmp.lt.u32.totalorder %s4583_s30, %s6521_s8 }
 0x17c   : > { %p4586_p9 = pnand %p4584_p7, %p5650_p8 }
 0x17e   : > { %p4587_p10 = pneg %p4586_p9 }
 0x180   : > { %p4592_p12 = pnand %p4590_p11, %p4587_p10 }
 0x182   : > { %4595 = shalt.err (!%p4592_p12)
}
 0x183   : > { %s4596_s13 = scalar_lea.vmem %s1191_s16, 16  ;;  %s4603_s17 = scalar_lea.vmem %s1191_s16, 32 }
 0x184   : > { %p4597_p1 = scmp.ne.s32.totalorder %s1191_s16, %s4596_s13  ;;  %p4604_p13 = scmp.lt.s32.totalorder %s1191_s16, %s1191_s16 }
 0x185   : > { %p4605_p0 = scmp.lt.s32.totalorder %s4603_s17, %s4596_s13 }
 0x186   : > { %p4599_p3 = pnand %p4597_p1, %p5650_p8 }
 0x187   : > { %p4606_p2 = por %p4605_p0, %p4604_p13 }
 0x188   : > { %p4600_p4 = pneg %p4599_p3 }
 0x18a   : > { %p4607_p5 = pnand %p4606_p2, %p4600_p4 }
 0x18c   : > { %4610 = shalt.err (!%p4607_p5)
}
 0x18d   : > { %4008 = dma.hbm_to_vmem [thread:$0]  (!%p5638_p6), %s6521_s8, 16, %s1191_s16, [#allocation44]  }
 0x18e   : > { %s5377_s11 = smov [#allocation46]   ;;  %s5378_s10 = smov [#allocation49]  }
 0x18f   : > { %s1214_s19 = sshll.u32 %s5377_s11, 4  ;;  %s1238_s2 = sshll.u32 %s5378_s10, 4  ;;  %s1215_s19 = int_to_ptr.vmem [resolvable:$true] %s1214_s19  ;;  %s1239_s2 = int_to_ptr.vmem [resolvable:$true] %s1238_s2 }
 0x190   : > { %s4611_s30 = scalar_lea.hbm %s5558_s29, 16 }
 0x191   : > { %p4612_p7 = scmp.ne.s32.totalorder %s5558_s29, %s4611_s30  ;;  %p4618_p11 = scmp.lt.u32.totalorder %s4611_s30, %s5558_s29 }
 0x193   : > { %p4614_p9 = pnand %p4612_p7, %p5650_p8 }
 0x195   : > { %p4615_p10 = pneg %p4614_p9 }
 0x197   : > { %p4620_p12 = pnand %p4618_p11, %p4615_p10 }
 0x199   : > { %4623 = shalt.err (!%p4620_p12)
}
 0x19a   : > { %s4624_s13 = scalar_lea.vmem %s1215_s19, 16  ;;  %s4631_s16 = scalar_lea.vmem %s1215_s19, 32 }
 0x19b   : > { %p4625_p1 = scmp.ne.s32.totalorder %s1215_s19, %s4624_s13  ;;  %p4632_p13 = scmp.lt.s32.totalorder %s1215_s19, %s1215_s19 }
 0x19c   : > { %p4633_p0 = scmp.lt.s32.totalorder %s4631_s16, %s4624_s13 }
 0x19d   : > { %p4627_p3 = pnand %p4625_p1, %p5650_p8 }
 0x19e   : > { %p4634_p2 = por %p4633_p0, %p4632_p13 }
 0x19f   : > { %p4628_p4 = pneg %p4627_p3 }
 0x1a1   : > { %p4635_p5 = pnand %p4634_p2, %p4628_p4 }
 0x1a3   : > { %4638 = shalt.err (!%p4635_p5)
}
 0x1a4   : > { %s6533_s17 = sld [smem:[#allocation103_spill]] }
 0x1a5   : > { %4014 = dma.hbm_to_vmem [thread:$0]  (!%p5638_p6), %s5558_s29, 16, %s1215_s19, [#allocation47]  }
 0x1aa   : > { %s4639_s11 = scalar_lea.hbm %s6533_s17, 16 }
 0x1ab   : > { %p4640_p7 = scmp.ne.s32.totalorder %s6533_s17, %s4639_s11  ;;  %p4646_p11 = scmp.lt.u32.totalorder %s4639_s11, %s6533_s17 }
 0x1ad   : > { %p4642_p9 = pnand %p4640_p7, %p5650_p8 }
 0x1af   : > { %p4643_p10 = pneg %p4642_p9 }
 0x1b1   : > { %p4648_p12 = pnand %p4646_p11, %p4643_p10 }
 0x1b3   : > { %4651 = shalt.err (!%p4648_p12)
}
 0x1b4   : > { %s4652_s10 = scalar_lea.vmem %s1239_s2, 16  ;;  %s4659_s30 = scalar_lea.vmem %s1239_s2, 32 }
 0x1b5   : > { %p4653_p1 = scmp.ne.s32.totalorder %s1239_s2, %s4652_s10  ;;  %p4660_p13 = scmp.lt.s32.totalorder %s1239_s2, %s1239_s2 }
 0x1b6   : > { %p4661_p0 = scmp.lt.s32.totalorder %s4659_s30, %s4652_s10 }
 0x1b7   : > { %p4655_p3 = pnand %p4653_p1, %p5650_p8 }
 0x1b8   : > { %p4662_p2 = por %p4661_p0, %p4660_p13 }
 0x1b9   : > { %p4656_p4 = pneg %p4655_p3 }
 0x1bb   : > { %p4663_p5 = pnand %p4662_p2, %p4656_p4 }
 0x1bd   : > { %4666 = shalt.err (!%p4663_p5)
}
 0x1be   : > { %4020 = dma.hbm_to_vmem [thread:$0]  (!%p5638_p6), %s6533_s17, 16, %s1239_s2, [#allocation50]  }
 0x1bf   : > { %s5379_s19 = smov [#allocation52]   ;;  %s5380_s16 = smov [#allocation12]  }
 0x1c0   : > { %s1263_s13 = sshll.u32 %s5379_s19, 4  ;;  %s936_s11 = sshll.u32 %s5380_s16, 4  ;;  %s1264_s13 = int_to_ptr.vmem [resolvable:$true] %s1263_s13  ;;  %s937_s11 = int_to_ptr.vmem [resolvable:$true] %s936_s11 }
 0x1c1   : > { %s4667_s18 = scalar_lea.hbm %s6513_s28, 16 }
 0x1c2   : > { %p4668_p7 = scmp.ne.s32.totalorder %s6513_s28, %s4667_s18  ;;  %p4674_p11 = scmp.lt.u32.totalorder %s4667_s18, %s6513_s28 }
 0x1c4   : > { %p4670_p9 = pnand %p4668_p7, %p5650_p8 }
 0x1c6   : > { %p4671_p10 = pneg %p4670_p9 }
 0x1c8   : > { %p4676_p12 = pnand %p4674_p11, %p4671_p10 }
 0x1ca   : > { %4679 = shalt.err (!%p4676_p12)
}
 0x1cb   : > { %s4680_s10 = scalar_lea.vmem %s1264_s13, 16  ;;  %s4687_s2 = scalar_lea.vmem %s1264_s13, 32 }
 0x1cc   : > { %p4681_p1 = scmp.ne.s32.totalorder %s1264_s13, %s4680_s10  ;;  %p4688_p13 = scmp.lt.s32.totalorder %s1264_s13, %s1264_s13 }
 0x1cd   : > { %p4689_p0 = scmp.lt.s32.totalorder %s4687_s2, %s4680_s10 }
 0x1ce   : > { %p4683_p3 = pnand %p4681_p1, %p5650_p8 }
 0x1cf   : > { %p4690_p2 = por %p4689_p0, %p4688_p13 }
 0x1d0   : > { %p4684_p4 = pneg %p4683_p3 }
 0x1d2   : > { %p4691_p5 = pnand %p4690_p2, %p4684_p4 }
 0x1d4   : > { %4694 = shalt.err (!%p4691_p5)
}
 0x1d5   : > { %s6534_s30 = sld [smem:[#allocation79_spill]] }
 0x1d6   : > { %4026 = dma.hbm_to_vmem [thread:$0]  (!%p5638_p6), %s6513_s28, 16, %s1264_s13, [#allocation53]  }
 0x1db   : > { %s4695_s18 = scalar_lea.hbm %s6534_s30, 16 }
 0x1dc   : > { %p4696_p7 = scmp.ne.s32.totalorder %s6534_s30, %s4695_s18  ;;  %p4702_p11 = scmp.lt.u32.totalorder %s4695_s18, %s6534_s30 }
 0x1de   : > { %p4698_p9 = pnand %p4696_p7, %p5650_p8 }
 0x1e0   : > { %p4699_p10 = pneg %p4698_p9 }
 0x1e2   : > { %p4704_p12 = pnand %p4702_p11, %p4699_p10 }
 0x1e4   : > { %4707 = shalt.err (!%p4704_p12)
}
 0x1e5   : > { %s4708_s19 = scalar_lea.vmem %s937_s11, 16  ;;  %s4715_s16 = scalar_lea.vmem %s937_s11, 32 }
 0x1e6   : > { %p4709_p1 = scmp.ne.s32.totalorder %s937_s11, %s4708_s19  ;;  %p4716_p13 = scmp.lt.s32.totalorder %s937_s11, %s937_s11 }
 0x1e7   : > { %p4717_p0 = scmp.lt.s32.totalorder %s4715_s16, %s4708_s19 }
 0x1e8   : > { %p4711_p3 = pnand %p4709_p1, %p5650_p8 }
 0x1e9   : > { %p4718_p2 = por %p4717_p0, %p4716_p13 }
 0x1ea   : > { %p4712_p4 = pneg %p4711_p3 }
 0x1ec   : > { %p4719_p5 = pnand %p4718_p2, %p4712_p4 }
 0x1ee   : > { %4722 = shalt.err (!%p4719_p5)
}
 0x1ef   : > { %s6535_s13 = sld [smem:[#allocation81_spill]]  ;;  %s5381_s10 = smov [#allocation15]  }
 0x1f0   : > { %3945 = dma.hbm_to_vmem [thread:$0]  (!%p5638_p6), %s6534_s30, 16, %s937_s11, [#allocation11]  }
 0x1f1   : > { %s960_s2 = sshll.u32 %s5381_s10, 4  ;;  %s5382_s18 = smov [#allocation18]   ;;  %s961_s2 = int_to_ptr.vmem [resolvable:$true] %s960_s2 }
 0x1f2   : > { %s984_s3 = sshll.u32 %s5382_s18, 4  ;;  %s985_s3 = int_to_ptr.vmem [resolvable:$true] %s984_s3 }
 0x1f5   : > { %s4723_s4 = scalar_lea.hbm %s6535_s13, 16 }
 0x1f6   : > { %p4724_p7 = scmp.ne.s32.totalorder %s6535_s13, %s4723_s4  ;;  %p4730_p11 = scmp.lt.u32.totalorder %s4723_s4, %s6535_s13 }
 0x1f8   : > { %p4726_p9 = pnand %p4724_p7, %p5650_p8 }
 0x1fa   : > { %p4727_p10 = pneg %p4726_p9 }
 0x1fc   : > { %p4732_p12 = pnand %p4730_p11, %p4727_p10 }
 0x1fe   : > { %4735 = shalt.err (!%p4732_p12)
}
 0x1ff   : > { %s4736_s19 = scalar_lea.vmem %s961_s2, 16  ;;  %s4743_s11 = scalar_lea.vmem %s961_s2, 32 }
 0x200   : > { %p4737_p1 = scmp.ne.s32.totalorder %s961_s2, %s4736_s19  ;;  %p4744_p13 = scmp.lt.s32.totalorder %s961_s2, %s961_s2 }
 0x201   : > { %p4745_p0 = scmp.lt.s32.totalorder %s4743_s11, %s4736_s19 }
 0x202   : > { %p4739_p3 = pnand %p4737_p1, %p5650_p8 }
 0x203   : > { %p4746_p2 = por %p4745_p0, %p4744_p13 }
 0x204   : > { %p4740_p4 = pneg %p4739_p3 }
 0x206   : > { %p4747_p5 = pnand %p4746_p2, %p4740_p4 }
 0x208   : > { %4750 = shalt.err (!%p4747_p5)
}
 0x209   : > { %s6536_s16 = sld [smem:[#allocation83_spill]] }
 0x20a   : > { %3951 = dma.hbm_to_vmem [thread:$0]  (!%p5638_p6), %s6535_s13, 16, %s961_s2, [#allocation14]  }
 0x20f   : > { %s4751_s4 = scalar_lea.hbm %s6536_s16, 16 }
 0x210   : > { %p4752_p7 = scmp.ne.s32.totalorder %s6536_s16, %s4751_s4  ;;  %p4758_p11 = scmp.lt.u32.totalorder %s4751_s4, %s6536_s16 }
 0x212   : > { %p4754_p9 = pnand %p4752_p7, %p5650_p8 }
 0x214   : > { %p4755_p10 = pneg %p4754_p9 }
 0x216   : > { %p4760_p12 = pnand %p4758_p11, %p4755_p10 }
 0x218   : > { %4763 = shalt.err (!%p4760_p12)
}
 0x219   : > { %s4764_s10 = scalar_lea.vmem %s985_s3, 16  ;;  %s4771_s18 = scalar_lea.vmem %s985_s3, 32 }
 0x21a   : > { %p4765_p1 = scmp.ne.s32.totalorder %s985_s3, %s4764_s10  ;;  %p4772_p13 = scmp.lt.s32.totalorder %s985_s3, %s985_s3 }
 0x21b   : > { %p4773_p0 = scmp.lt.s32.totalorder %s4771_s18, %s4764_s10 }
 0x21c   : > { %p4767_p3 = pnand %p4765_p1, %p5650_p8 }
 0x21d   : > { %p4774_p2 = por %p4773_p0, %p4772_p13 }
 0x21e   : > { %p4768_p4 = pneg %p4767_p3 }
 0x220   : > { %p4775_p5 = pnand %p4774_p2, %p4768_p4 }
 0x222   : > { %4778 = shalt.err (!%p4775_p5)
}
 0x223   : > { %s6537_s2 = sld [smem:[#allocation85_spill]]  ;;  %s5383_s19 = smov [#allocation21]  }
 0x224   : > { %3957 = dma.hbm_to_vmem [thread:$0]  (!%p5638_p6), %s6536_s16, 16, %s985_s3, [#allocation17]  }
 0x225   : > { %s1008_s11 = sshll.u32 %s5383_s19, 4  ;;  %s5384_s4 = smov [#allocation24]   ;;  %s1009_s11 = int_to_ptr.vmem [resolvable:$true] %s1008_s11 }
 0x226   : > { %s1032_s5 = sshll.u32 %s5384_s4, 4  ;;  %s1033_s5 = int_to_ptr.vmem [resolvable:$true] %s1032_s5 }
 0x229   : > { %s4779_s6 = scalar_lea.hbm %s6537_s2, 16 }
 0x22a   : > { %p4780_p7 = scmp.ne.s32.totalorder %s6537_s2, %s4779_s6  ;;  %p4786_p11 = scmp.lt.u32.totalorder %s4779_s6, %s6537_s2 }
 0x22c   : > { %p4782_p9 = pnand %p4780_p7, %p5650_p8 }
 0x22e   : > { %p4783_p10 = pneg %p4782_p9 }
 0x230   : > { %p4788_p12 = pnand %p4786_p11, %p4783_p10 }
 0x232   : > { %4791 = shalt.err (!%p4788_p12)
}
 0x233   : > { %s4792_s10 = scalar_lea.vmem %s1009_s11, 16  ;;  %s4799_s3 = scalar_lea.vmem %s1009_s11, 32 }
 0x234   : > { %p4793_p1 = scmp.ne.s32.totalorder %s1009_s11, %s4792_s10  ;;  %p4800_p13 = scmp.lt.s32.totalorder %s1009_s11, %s1009_s11 }
 0x235   : > { %p4801_p0 = scmp.lt.s32.totalorder %s4799_s3, %s4792_s10 }
 0x236   : > { %p4795_p3 = pnand %p4793_p1, %p5650_p8 }
 0x237   : > { %p4802_p2 = por %p4801_p0, %p4800_p13 }
 0x238   : > { %p4796_p4 = pneg %p4795_p3 }
 0x23a   : > { %p4803_p5 = pnand %p4802_p2, %p4796_p4 }
 0x23c   : > { %4806 = shalt.err (!%p4803_p5)
}
 0x23d   : > { %s6538_s18 = sld [smem:[#allocation87_spill]] }
 0x23e   : > { %3963 = dma.hbm_to_vmem [thread:$0]  (!%p5638_p6), %s6537_s2, 16, %s1009_s11, [#allocation20]  }
 0x243   : > { %s4807_s6 = scalar_lea.hbm %s6538_s18, 16 }
 0x244   : > { %p4808_p7 = scmp.ne.s32.totalorder %s6538_s18, %s4807_s6  ;;  %p4814_p11 = scmp.lt.u32.totalorder %s4807_s6, %s6538_s18 }
 0x246   : > { %p4810_p9 = pnand %p4808_p7, %p5650_p8 }
 0x248   : > { %p4811_p10 = pneg %p4810_p9 }
 0x24a   : > { %p4816_p12 = pnand %p4814_p11, %p4811_p10 }
 0x24c   : > { %4819 = shalt.err (!%p4816_p12)
}
 0x24d   : > { %s4820_s19 = scalar_lea.vmem %s1033_s5, 16  ;;  %s4827_s4 = scalar_lea.vmem %s1033_s5, 32 }
 0x24e   : > { %p4821_p1 = scmp.ne.s32.totalorder %s1033_s5, %s4820_s19  ;;  %p4828_p13 = scmp.lt.s32.totalorder %s1033_s5, %s1033_s5 }
 0x24f   : > { %p4829_p0 = scmp.lt.s32.totalorder %s4827_s4, %s4820_s19 }
 0x250   : > { %p4823_p3 = pnand %p4821_p1, %p5650_p8 }
 0x251   : > { %p4830_p2 = por %p4829_p0, %p4828_p13 }
 0x252   : > { %p4824_p4 = pneg %p4823_p3 }
 0x254   : > { %p4831_p5 = pnand %p4830_p2, %p4824_p4 }
 0x256   : > { %4834 = shalt.err (!%p4831_p5)
}
 0x257   : > { %s6539_s11 = sld [smem:[#allocation89_spill]]  ;;  %s5385_s10 = smov [#allocation27]  }
 0x258   : > { %3969 = dma.hbm_to_vmem [thread:$0]  (!%p5638_p6), %s6538_s18, 16, %s1033_s5, [#allocation23]  }
 0x259   : > { %s1056_s3 = sshll.u32 %s5385_s10, 4  ;;  %s5386_s6 = smov [#allocation30]   ;;  %s1057_s3 = int_to_ptr.vmem [resolvable:$true] %s1056_s3 }
 0x25a   : > { %s1080_s2 = sshll.u32 %s5386_s6, 4  ;;  %s1081_s2 = int_to_ptr.vmem [resolvable:$true] %s1080_s2 }
 0x25d   : > { %s4835_s8 = scalar_lea.hbm %s6539_s11, 16 }
 0x25e   : > { %p4836_p7 = scmp.ne.s32.totalorder %s6539_s11, %s4835_s8  ;;  %p4842_p11 = scmp.lt.u32.totalorder %s4835_s8, %s6539_s11 }
 0x260   : > { %p4838_p9 = pnand %p4836_p7, %p5650_p8 }
 0x262   : > { %p4839_p10 = pneg %p4838_p9 }
 0x264   : > { %p4844_p12 = pnand %p4842_p11, %p4839_p10 }
 0x266   : > { %4847 = shalt.err (!%p4844_p12)
}
 0x267   : > { %s4848_s19 = scalar_lea.vmem %s1057_s3, 16  ;;  %s4855_s5 = scalar_lea.vmem %s1057_s3, 32 }
 0x268   : > { %p4849_p1 = scmp.ne.s32.totalorder %s1057_s3, %s4848_s19  ;;  %p4856_p13 = scmp.lt.s32.totalorder %s1057_s3, %s1057_s3 }
 0x269   : > { %p4857_p0 = scmp.lt.s32.totalorder %s4855_s5, %s4848_s19 }
 0x26a   : > { %p4851_p3 = pnand %p4849_p1, %p5650_p8 }
 0x26b   : > { %p4858_p2 = por %p4857_p0, %p4856_p13 }
 0x26c   : > { %p4852_p4 = pneg %p4851_p3 }
 0x26e   : > { %p4859_p5 = pnand %p4858_p2, %p4852_p4 }
 0x270   : > { %4862 = shalt.err (!%p4859_p5)
}
 0x271   : > { %s6540_s4 = sld [smem:[#allocation91_spill]] }
 0x272   : > { %3975 = dma.hbm_to_vmem [thread:$0]  (!%p5638_p6), %s6539_s11, 16, %s1057_s3, [#allocation26]  }
 0x277   : > { %s4863_s8 = scalar_lea.hbm %s6540_s4, 16 }
 0x278   : > { %p4864_p7 = scmp.ne.s32.totalorder %s6540_s4, %s4863_s8  ;;  %p4870_p11 = scmp.lt.u32.totalorder %s4863_s8, %s6540_s4 }
 0x27a   : > { %p4866_p9 = pnand %p4864_p7, %p5650_p8 }
 0x27c   : > { %p4867_p10 = pneg %p4866_p9 }
 0x27e   : > { %p4872_p12 = pnand %p4870_p11, %p4867_p10 }
 0x280   : > { %4875 = shalt.err (!%p4872_p12)
}
 0x281   : > { %s4876_s10 = scalar_lea.vmem %s1081_s2, 16  ;;  %s4883_s6 = scalar_lea.vmem %s1081_s2, 32 }
 0x282   : > { %p4877_p1 = scmp.ne.s32.totalorder %s1081_s2, %s4876_s10  ;;  %p4884_p13 = scmp.lt.s32.totalorder %s1081_s2, %s1081_s2 }
 0x283   : > { %p4885_p0 = scmp.lt.s32.totalorder %s4883_s6, %s4876_s10 }
 0x284   : > { %p4879_p3 = pnand %p4877_p1, %p5650_p8 }
 0x285   : > { %p4886_p2 = por %p4885_p0, %p4884_p13 }
 0x286   : > { %p4880_p4 = pneg %p4879_p3 }
 0x288   : > { %p4887_p5 = pnand %p4886_p2, %p4880_p4 }
 0x28a   : > { %4890 = shalt.err (!%p4887_p5)
}
 0x28b   : > { %s6541_s3 = sld [smem:[#allocation93_spill]]  ;;  %s5387_s19 = smov [#allocation33]  }
 0x28c   : > { %3981 = dma.hbm_to_vmem [thread:$0]  (!%p5638_p6), %s6540_s4, 16, %s1081_s2, [#allocation29]  }
 0x28d   : > { %s1104_s5 = sshll.u32 %s5387_s19, 4  ;;  %s5388_s8 = smov [#allocation36]   ;;  %s1105_s5 = int_to_ptr.vmem [resolvable:$true] %s1104_s5 }
 0x28e   : > { %s1128_s11 = sshll.u32 %s5388_s8, 4  ;;  %s1129_s11 = int_to_ptr.vmem [resolvable:$true] %s1128_s11 }
 0x291   : > { %s4891_s12 = scalar_lea.hbm %s6541_s3, 16 }
 0x292   : > { %p4892_p7 = scmp.ne.s32.totalorder %s6541_s3, %s4891_s12  ;;  %p4898_p11 = scmp.lt.u32.totalorder %s4891_s12, %s6541_s3 }
 0x294   : > { %p4894_p9 = pnand %p4892_p7, %p5650_p8 }
 0x296   : > { %p4895_p10 = pneg %p4894_p9 }
 0x298   : > { %p4900_p12 = pnand %p4898_p11, %p4895_p10 }
 0x29a   : > { %4903 = shalt.err (!%p4900_p12)
}
 0x29b   : > { %s4904_s10 = scalar_lea.vmem %s1105_s5, 16  ;;  %s4911_s2 = scalar_lea.vmem %s1105_s5, 32 }
 0x29c   : > { %p4905_p1 = scmp.ne.s32.totalorder %s1105_s5, %s4904_s10  ;;  %p4912_p13 = scmp.lt.s32.totalorder %s1105_s5, %s1105_s5 }
 0x29d   : > { %p4913_p0 = scmp.lt.s32.totalorder %s4911_s2, %s4904_s10 }
 0x29e   : > { %p4907_p3 = pnand %p4905_p1, %p5650_p8 }
 0x29f   : > { %p4914_p2 = por %p4913_p0, %p4912_p13 }
 0x2a0   : > { %p4908_p4 = pneg %p4907_p3 }
 0x2a2   : > { %p4915_p5 = pnand %p4914_p2, %p4908_p4 }
 0x2a4   : > { %4918 = shalt.err (!%p4915_p5)
}
 0x2a5   : > { %s6542_s6 = sld [smem:[#allocation95_spill]] }
 0x2a6   : > { %3987 = dma.hbm_to_vmem [thread:$0]  (!%p5638_p6), %s6541_s3, 16, %s1105_s5, [#allocation32]  }
 0x2ab   : > { %s4919_s12 = scalar_lea.hbm %s6542_s6, 16 }
 0x2ac   : > { %p4920_p7 = scmp.ne.s32.totalorder %s6542_s6, %s4919_s12  ;;  %p4926_p11 = scmp.lt.u32.totalorder %s4919_s12, %s6542_s6 }
 0x2ae   : > { %p4922_p9 = pnand %p4920_p7, %p5650_p8 }
 0x2b0   : > { %p4923_p10 = pneg %p4922_p9 }
 0x2b2   : > { %p4928_p12 = pnand %p4926_p11, %p4923_p10 }
 0x2b4   : > { %4931 = shalt.err (!%p4928_p12)
}
 0x2b5   : > { %s4932_s19 = scalar_lea.vmem %s1129_s11, 16  ;;  %s4939_s8 = scalar_lea.vmem %s1129_s11, 32 }
 0x2b6   : > { %p4933_p1 = scmp.ne.s32.totalorder %s1129_s11, %s4932_s19  ;;  %p4940_p13 = scmp.lt.s32.totalorder %s1129_s11, %s1129_s11 }
 0x2b7   : > { %p4941_p0 = scmp.lt.s32.totalorder %s4939_s8, %s4932_s19 }
 0x2b8   : > { %p4935_p3 = pnand %p4933_p1, %p5650_p8 }
 0x2b9   : > { %p4942_p2 = por %p4941_p0, %p4940_p13 }
 0x2ba   : > { %p4936_p4 = pneg %p4935_p3 }
 0x2bc   : > { %p4943_p5 = pnand %p4942_p2, %p4936_p4 }
 0x2be   : > { %4946 = shalt.err (!%p4943_p5)
}
 0x2bf   : > { %s6543_s5 = sld [smem:[#allocation97_spill]]  ;;  %s5389_s10 = smov [#allocation39]  }
 0x2c0   : > { %3993 = dma.hbm_to_vmem [thread:$0]  (!%p5638_p6), %s6542_s6, 16, %s1129_s11, [#allocation35]  }
 0x2c1   : > { %s1152_s2 = sshll.u32 %s5389_s10, 4  ;;  %s5390_s12 = smov [#allocation42]   ;;  %s1153_s2 = int_to_ptr.vmem [resolvable:$true] %s1152_s2 }
 0x2c2   : > { %s1176_s3 = sshll.u32 %s5390_s12, 4  ;;  %s1177_s3 = int_to_ptr.vmem [resolvable:$true] %s1176_s3 }
 0x2c5   : > { %s4947_s4 = scalar_lea.hbm %s6543_s5, 512 }
 0x2c6   : > { %p4948_p7 = scmp.ne.s32.totalorder %s6543_s5, %s4947_s4  ;;  %p4954_p11 = scmp.lt.u32.totalorder %s4947_s4, %s6543_s5 }
 0x2c8   : > { %p4950_p9 = pnand %p4948_p7, %p5650_p8 }
 0x2ca   : > { %p4951_p10 = pneg %p4950_p9 }
 0x2cc   : > { %p4956_p12 = pnand %p4954_p11, %p4951_p10 }
 0x2ce   : > { %4959 = shalt.err (!%p4956_p12)
}
 0x2cf   : > { %s4960_s19 = scalar_lea.vmem %s1153_s2, 512  ;;  %p4968_p13 = scmp.lt.s32.totalorder %s1153_s2, %s1153_s2 }
 0x2d0   : > { %p4961_p1 = scmp.ne.s32.totalorder %s1153_s2, %s4960_s19  ;;  %p4969_p0 = scmp.lt.s32.totalorder %s4960_s19, %s4960_s19 }
 0x2d2   : > { %p4963_p3 = pnand %p4961_p1, %p5650_p8  ;;  %p4970_p2 = por %p4969_p0, %p4968_p13 }
 0x2d4   : > { %p4964_p4 = pneg %p4963_p3 }
 0x2d6   : > { %p4971_p5 = pnand %p4970_p2, %p4964_p4 }
 0x2d8   : > { %4974 = shalt.err (!%p4971_p5)
}
 0x2d9   : > { %s6544_s11 = smov 8   ;;  %s6545_s8 = smov 128  }
 0x2da   : > { %s6546_s4 = sld [smem:[#allocation99_spill]] }
 0x2db   : > { %3999 = dma.hbm_to_vmem [thread:$0]  (!%p5638_p6), %s6543_s5, 512, %s1153_s2, [#allocation38], %s6545_s8, %s6545_s8, %s6544_s11  }
 0x2e0   : > { %s4975_s10 = scalar_lea.hbm %s6546_s4, 512 }
 0x2e1   : > { %p4976_p7 = scmp.ne.s32.totalorder %s6546_s4, %s4975_s10  ;;  %p4982_p11 = scmp.lt.u32.totalorder %s4975_s10, %s6546_s4 }
 0x2e3   : > { %p4978_p9 = pnand %p4976_p7, %p5650_p8 }
 0x2e5   : > { %p4979_p10 = pneg %p4978_p9 }
 0x2e7   : > { %p4984_p12 = pnand %p4982_p11, %p4979_p10 }
 0x2e9   : > { %4987 = shalt.err (!%p4984_p12)
}
 0x2ea   : > { %s4988_s12 = scalar_lea.vmem %s1177_s3, 512  ;;  %p4996_p13 = scmp.lt.s32.totalorder %s1177_s3, %s1177_s3 }
 0x2eb   : > { %p4989_p1 = scmp.ne.s32.totalorder %s1177_s3, %s4988_s12  ;;  %p4997_p0 = scmp.lt.s32.totalorder %s4988_s12, %s4988_s12 }
 0x2ed   : > { %p4991_p3 = pnand %p4989_p1, %p5650_p8  ;;  %p4998_p2 = por %p4997_p0, %p4996_p13 }
 0x2ef   : > { %p4992_p4 = pneg %p4991_p3 }
 0x2f1   : > { %p4999_p5 = pnand %p4998_p2, %p4992_p4 }
 0x2f3   : > { %5002 = shalt.err (!%p4999_p5)
}
 0x2f4   : > { %s6547_s2 = sld [smem:[#allocation101_spill]]  ;;  %s5391_s19 = smov [#allocation45]  }
 0x2f5   : > { %4005 = dma.hbm_to_vmem [thread:$0]  (!%p5638_p6), %s6546_s4, 512, %s1177_s3, [#allocation41], %s6545_s8, %s6545_s8, %s6544_s11  }
 0x2f6   : > { %s1200_s10 = sshll.u32 %s5391_s19, 4  ;;  %s5392_s5 = smov [#allocation48]   ;;  %s1201_s10 = int_to_ptr.vmem [resolvable:$true] %s1200_s10 }
 0x2f7   : > { %s1224_s6 = sshll.u32 %s5392_s5, 4  ;;  %s1225_s6 = int_to_ptr.vmem [resolvable:$true] %s1224_s6 }
 0x2fa   : > { %s5003_s12 = scalar_lea.hbm %s6547_s2, 512 }
 0x2fb   : > { %p5004_p7 = scmp.ne.s32.totalorder %s6547_s2, %s5003_s12  ;;  %p5010_p11 = scmp.lt.u32.totalorder %s5003_s12, %s6547_s2 }
 0x2fd   : > { %p5006_p9 = pnand %p5004_p7, %p5650_p8 }
 0x2ff   : > { %p5007_p10 = pneg %p5006_p9 }
 0x301   : > { %p5012_p12 = pnand %p5010_p11, %p5007_p10 }
 0x303   : > { %5015 = shalt.err (!%p5012_p12)
}
 0x304   : > { %s5016_s13 = scalar_lea.vmem %s1201_s10, 512  ;;  %p5024_p13 = scmp.lt.s32.totalorder %s1201_s10, %s1201_s10 }
 0x305   : > { %p5017_p1 = scmp.ne.s32.totalorder %s1201_s10, %s5016_s13  ;;  %p5025_p0 = scmp.lt.s32.totalorder %s5016_s13, %s5016_s13 }
 0x307   : > { %p5019_p3 = pnand %p5017_p1, %p5650_p8  ;;  %p5026_p2 = por %p5025_p0, %p5024_p13 }
 0x309   : > { %p5020_p4 = pneg %p5019_p3 }
 0x30b   : > { %p5027_p5 = pnand %p5026_p2, %p5020_p4 }
 0x30d   : > { %5030 = shalt.err (!%p5027_p5)
}
 0x30e   : > { %s6548_s3 = sld [smem:[#allocation102_spill]] }
 0x30f   : > { %4011 = dma.hbm_to_vmem [thread:$0]  (!%p5638_p6), %s6547_s2, 512, %s1201_s10, [#allocation44], %s6545_s8, %s6545_s8, %s6544_s11  }
 0x314   : > { %s5031_s5 = scalar_lea.hbm %s6548_s3, 512 }
 0x315   : > { %p5032_p7 = scmp.ne.s32.totalorder %s6548_s3, %s5031_s5  ;;  %p5038_p11 = scmp.lt.u32.totalorder %s5031_s5, %s6548_s3 }
 0x317   : > { %p5034_p9 = pnand %p5032_p7, %p5650_p8 }
 0x319   : > { %p5035_p10 = pneg %p5034_p9 }
 0x31b   : > { %p5040_p12 = pnand %p5038_p11, %p5035_p10 }
 0x31d   : > { %5043 = shalt.err (!%p5040_p12)
}
 0x31e   : > { %s5044_s13 = scalar_lea.vmem %s1225_s6, 512  ;;  %p5052_p13 = scmp.lt.s32.totalorder %s1225_s6, %s1225_s6 }
 0x31f   : > { %p5045_p1 = scmp.ne.s32.totalorder %s1225_s6, %s5044_s13  ;;  %p5053_p0 = scmp.lt.s32.totalorder %s5044_s13, %s5044_s13 }
 0x321   : > { %p5047_p3 = pnand %p5045_p1, %p5650_p8  ;;  %p5054_p2 = por %p5053_p0, %p5052_p13 }
 0x323   : > { %p5048_p4 = pneg %p5047_p3 }
 0x325   : > { %p5055_p5 = pnand %p5054_p2, %p5048_p4 }
 0x327   : > { %5058 = shalt.err (!%p5055_p5)
}
 0x328   : > { %s6549_s19 = sld [smem:[#allocation104_spill]]  ;;  %s5393_s10 = smov [#allocation51]  }
 0x329   : > { %4017 = dma.hbm_to_vmem [thread:$0]  (!%p5638_p6), %s6548_s3, 512, %s1225_s6, [#allocation47], %s6545_s8, %s6545_s8, %s6544_s11  }
 0x32a   : > { %s1249_s12 = sshll.u32 %s5393_s10, 4  ;;  %s5394_s5 = smov [#allocation54]   ;;  %s1250_s12 = int_to_ptr.vmem [resolvable:$true] %s1249_s12 }
 0x32b   : > { %s1274_s2 = sshll.u32 %s5394_s5, 4  ;;  %s1275_s2 = int_to_ptr.vmem [resolvable:$true] %s1274_s2 }
 0x32e   : > { %s5059_s13 = scalar_lea.hbm %s6549_s19, 16 }
 0x32f   : > { %p5060_p7 = scmp.ne.s32.totalorder %s6549_s19, %s5059_s13  ;;  %p5066_p11 = scmp.lt.u32.totalorder %s5059_s13, %s6549_s19 }
 0x331   : > { %p5062_p9 = pnand %p5060_p7, %p5650_p8 }
 0x333   : > { %p5063_p10 = pneg %p5062_p9 }
 0x335   : > { %p5068_p12 = pnand %p5066_p11, %p5063_p10 }
 0x337   : > { %5071 = shalt.err (!%p5068_p12)
}
 0x338   : > { %s5072_s4 = scalar_lea.vmem %s1250_s12, 16  ;;  %s5079_s6 = scalar_lea.vmem %s1250_s12, 32 }
 0x339   : > { %p5073_p1 = scmp.ne.s32.totalorder %s1250_s12, %s5072_s4  ;;  %p5080_p13 = scmp.lt.s32.totalorder %s1250_s12, %s1250_s12 }
 0x33a   : > { %p5081_p0 = scmp.lt.s32.totalorder %s5079_s6, %s5072_s4 }
 0x33b   : > { %p5075_p3 = pnand %p5073_p1, %p5650_p8 }
 0x33c   : > { %p5082_p2 = por %p5081_p0, %p5080_p13 }
 0x33d   : > { %p5076_p4 = pneg %p5075_p3 }
 0x33f   : > { %p5083_p5 = pnand %p5082_p2, %p5076_p4 }
 0x341   : > { %5086 = shalt.err (!%p5083_p5)
}
 0x342   : > { %4023 = dma.hbm_to_vmem [thread:$0]  (!%p5638_p6), %s6549_s19, 16, %s1250_s12, [#allocation50]  }
 0x343   : > { %s5087_s10 = scalar_lea.hbm %s6517_s21, 16 }
 0x344   : > { %p5088_p7 = scmp.ne.s32.totalorder %s6517_s21, %s5087_s10  ;;  %p5094_p11 = scmp.lt.u32.totalorder %s5087_s10, %s6517_s21 }
 0x346   : > { %p5090_p9 = pnand %p5088_p7, %p5650_p8 }
 0x348   : > { %p5091_p10 = pneg %p5090_p9 }
 0x34a   : > { %p5096_p12 = pnand %p5094_p11, %p5091_p10 }
 0x34c   : > { %5099 = shalt.err (!%p5096_p12)
}
 0x34d   : > { %s5100_s4 = scalar_lea.vmem %s1275_s2, 16  ;;  %s5107_s5 = scalar_lea.vmem %s1275_s2, 32 }
 0x34e   : > { %p5101_p1 = scmp.ne.s32.totalorder %s1275_s2, %s5100_s4  ;;  %p5108_p13 = scmp.lt.s32.totalorder %s1275_s2, %s1275_s2 }
 0x34f   : > { %p5109_p0 = scmp.lt.s32.totalorder %s5107_s5, %s5100_s4 }
 0x350   : > { %p5103_p3 = pnand %p5101_p1, %p5650_p8 }
 0x351   : > { %p5110_p2 = por %p5109_p0, %p5108_p13 }
 0x352   : > { %p5104_p4 = pneg %p5103_p3 }
 0x354   : > { %p5111_p5 = pnand %p5110_p2, %p5104_p4 }
 0x356   : > { %5114 = shalt.err (!%p5111_p5)
}
 0x357   : > { %4029 = dma.hbm_to_vmem [thread:$0]  (!%p5638_p6), %s6517_s21, 16, %s1275_s2, [#allocation53]  }
 0x358   : > { %s3407_s9 = sadd.s32 4294967294, %s5325_s26   ;;  %s121_s12 = sadd.s32 1, %s5321_s22 }
 0x359   : > { %s128_s13 = sadd.s32 1, %s5313_s23  ;;  %p123_p8 = scmp.ge.s32.totalorder %s121_s12, 2 }
 0x35a   : > { %p135_p7 = scmp.ne.s32.totalorder %s5313_s23, %s5309_s7  ;;  %p136_p9 = scmp.eq.s32.totalorder %s5325_s26, 0 }
 0x35b   : > { %s6550_s15 = sld [smem:[#allocation75_spill]]  ;;  %p141_p10 = scmp.ne.s32.totalorder %s5309_s7, %s5305_s0 }
 0x35c   : > { %s6603_s12 = smov (%p123_p8, %s121_s12), 0  ;;  %p6018_p11 = por %p136_p9, %p135_p7 }
 0x35d   : > { %p6552_p6 = scmp.eq.s32.totalorder %s5624_s1, 0  ;;  %s125_s10 = ssub.s32 %s5321_s22, %s6603_s12 }
 0x35e   : > { %p888_p1 = scmp.eq.s32.totalorder %s5624_s1, 1  ;;  %p126_p3 = scmp.eq.s32.totalorder %s125_s10, 0 }
 0x35f   : > { %p6024_p12 = por %p6552_p6, %p141_p10  ;;  %p894_p4 = scmp.eq.s32.totalorder %s3407_s9, 1 }
 0x360   : > { %p6031_p13 = por %p888_p1, %p135_p7  ;;  %p4072_p0 = scmp.lt.s32.totalorder %s5325_s26, 2 }
 0x361   : > { %s6553_s2 = scalar_select %p6024_p12, 1, 0 }
 0x362   : > { %s6554_s4 = scalar_select %p6031_p13, 1, 0 }
 0x363   : > { %s6037_s5 = scalar_select %p126_p3, %s5313_s23, %s128_s13  }
 0x364   : > { %p6039_p2 = por %p894_p4, %p141_p10  ;;  %s6044_s14 = sand.u32 1, %s5313_s23  }
 0x365   : > { %s3441_s16 = sshll.u32 %s6044_s14, 1  ;;  %s3531_s10 = sshll.u32 %s5321_s22, 5 }
 0x366   : > { %s6555_s3 = scalar_select %p6039_p2, 1, 0 }
 0x367   : > { %s6049_s9 = scalar_lea.hbm %s6550_s15, %s3531_s10  ;;  %s1289_s13 = scalar_lea.vmem [#allocation4], %s3441_s16 }
 0x368   : > { %s1296_s17 = sshll.u32 %s1289_s13, 4  ;;  %p6055_p5 = pnand %p4072_p0, %p6018_p11  ;;  %s6051_s17 = int_to_ptr.vmem [resolvable:$true] %s1296_s17 }
 0x369   : > { %s1286_s20 = scalar_lea.sflag [#allocation5], %s6044_s14  ;;  %s5115_s21 = scalar_lea.hbm %s6049_s9, 32 }
 0x36a   : > { %p5116_p8 = scmp.ne.s32.totalorder %s6049_s9, %s5115_s21  ;;  %p5117_p7 = pneg %p6055_p5 }
 0x36b   : > { %s5120_s16 = scalar_lea.hbm %s6550_s15, 64  ;;  %p5121_p6 = scmp.lt.u32.totalorder %s6049_s9, %s6550_s15 }
 0x36c   : > { %p5118_p9 = pnand %p5117_p7, %p5116_p8  ;;  %p5122_p1 = scmp.lt.u32.totalorder %s5120_s16, %s5115_s21 }
 0x36d   : > { %p5124_p11 = scmp.lt.u32.totalorder %s5115_s21, %s6049_s9 }
 0x36e   : > { %p5119_p10 = pneg %p5118_p9  ;;  %p5123_p3 = por %p5122_p1, %p5121_p6 }
 0x370   : > { %p5125_p4 = por %p5124_p11, %p5123_p3 }
 0x372   : > { %p5126_p0 = pnand %p5125_p4, %p5119_p10 }
 0x374   : > { %5129 = shalt.err (!%p5126_p0)
}
 0x375   : > { %s5130_s6 = scalar_lea.vmem %s6051_s17, 32  ;;  %s5395_s10 = smov [#allocation4]  }
 0x376   : > { %p5131_p2 = scmp.ne.s32.totalorder %s6051_s17, %s5130_s6  ;;  %s5135_s13 = sshll.u32 %s5395_s10, 4  ;;  %s5136_s13 = int_to_ptr.vmem [resolvable:$false] %s5135_s13 }
 0x377   : > { %s5137_s19 = scalar_lea.vmem %s5136_s13, 64  ;;  %p5138_p8 = scmp.lt.s32.totalorder %s6051_s17, %s5136_s13 }
 0x378   : > { %p5133_p13 = pnand %p5131_p2, %p5117_p7  ;;  %p5139_p9 = scmp.lt.s32.totalorder %s5137_s19, %s5130_s6 }
 0x37a   : > { %p5134_p12 = pneg %p5133_p13  ;;  %p5140_p6 = por %p5139_p9, %p5138_p8 }
 0x37c   : > { %p5141_p1 = pnand %p5140_p6, %p5134_p12 }
 0x37e   : > { %5144 = shalt.err (!%p5141_p1)
}
 0x37f   : > { %s5396_s21 = smov 16   ;;  %s6557_s16 = sld [smem:[#allocation76_spill]] }
 0x380   : > { %s5397_s10 = smov 1   ;;  %s3444_s19 = sshll.u32 %s6044_s14, 4 }
 0x381   : > { %4033 = dma.hbm_to_vmem [thread:$0]  (!%p6055_p5), %s6049_s9, 32, %s6051_s17, %s1286_s20, %s5396_s21, %s5396_s21, %s5397_s10  }
 0x382   : > { %s3532_s6 = sshll.u32 %s5321_s22, 8  ;;  %s1310_s15 = scalar_lea.vmem [#allocation7], %s3444_s19 }
 0x383   : > { %s1318_s24 = sshll.u32 %s1310_s15, 4  ;;  %s6558_s25 = sand.u32 1, %s5325_s26   ;;  %s6089_s24 = int_to_ptr.vmem [resolvable:$true] %s1318_s24 }
 0x384   : > { %s6093_s27 = scalar_lea.sflag [#allocation8], %s6558_s25 }
 0x385   : > { %s6087_s13 = scalar_lea.hbm %s6557_s16, %s3532_s6  ;;  %s5150_s14 = scalar_lea.hbm %s6557_s16, 512 }
 0x386   : > { %s5145_s28 = scalar_lea.hbm %s6087_s13, 256  ;;  %p5151_p10 = scmp.lt.u32.totalorder %s6087_s13, %s6557_s16 }
 0x387   : > { %p5146_p12 = scmp.ne.s32.totalorder %s6087_s13, %s5145_s28  ;;  %p5152_p3 = scmp.lt.u32.totalorder %s5150_s14, %s5145_s28 }
 0x388   : > { %p5154_p4 = scmp.lt.u32.totalorder %s5145_s28, %s6087_s13 }
 0x389   : > { %p5148_p13 = pnand %p5146_p12, %p5117_p7  ;;  %p5153_p11 = por %p5152_p3, %p5151_p10 }
 0x38b   : > { %p5149_p2 = pneg %p5148_p13  ;;  %p5155_p0 = por %p5154_p4, %p5153_p11 }
 0x38d   : > { %p5156_p8 = pnand %p5155_p0, %p5149_p2 }
 0x38f   : > { %5159 = shalt.err (!%p5156_p8)
}
 0x390   : > { %s5160_s25 = scalar_lea.vmem %s6089_s24, 256  ;;  %s5398_s20 = smov [#allocation7]  }
 0x391   : > { %p5161_p9 = scmp.ne.s32.totalorder %s6089_s24, %s5160_s25  ;;  %s5165_s17 = sshll.u32 %s5398_s20, 4  ;;  %s5166_s17 = int_to_ptr.vmem [resolvable:$false] %s5165_s17 }
 0x392   : > { %s5167_s15 = scalar_lea.vmem %s5166_s17, 512  ;;  %p5168_p12 = scmp.lt.s32.totalorder %s6089_s24, %s5166_s17 }
 0x393   : > { %p5163_p6 = pnand %p5161_p9, %p5117_p7  ;;  %p5169_p13 = scmp.lt.s32.totalorder %s5167_s15, %s5160_s25 }
 0x395   : > { %p5164_p1 = pneg %p5163_p6  ;;  %p5170_p10 = por %p5169_p13, %p5168_p12 }
 0x397   : > { %p5171_p3 = pnand %p5170_p10, %p5164_p1 }
 0x399   : > { %5174 = shalt.err (!%p5171_p3)
}
 0x39a   : > { %4036 = dma.hbm_to_vmem [thread:$0]  (!%p6055_p5), %s6087_s13, 256, %s6089_s24, %s6093_s27, %s6545_s8, %s6545_s8, %s6544_s11  }
 0x39b   : > { %s6559_s28 = sld [smem:[#allocation109_spill]] }
 0x3a1   : > { %p6560_p7 = scmp.ne.s32.totalorder %s6559_s28, 0 }
 0x3a2   : > { %s6121_s9 = sand.u32 (!%p6560_p7), 1, %s5309_s7   ;;  %p6561_p2 = scmp.ne.s32.totalorder (!%p6560_p7), %s6553_s2, 0 }
 0x3a3   : > { %1330 = sbr.rel (%p6560_p7) target bundleno = 4787 (0x12b3), region = 160  ;;  %s3448_s21 = sshll.u32 (!%p6560_p7), %s6121_s9, 1 }
 0x3a4   : > { %s1333_s10 = scalar_lea.sflag (!%p6560_p7), [#allocation5], %s6121_s9  ;;  %s6127_s18 = scalar_lea.vmem (!%p6560_p7), [#allocation4], %s3448_s21 }
 0x3aa   : > { %5228 = dma.done.wait (%p6561_p2), %s1333_s10, 32  }
 0x3ab   : > { %5230 = vsyncadd (%p6561_p2), %s1333_s10, 4294967264  ;;  %s1341_s24 = sand.u32 1, %s5624_s1   ;;  %s3449_s27 = sshll.u32 %s6121_s9, 4 }
 0x3ac   : > { %s1342_s11 = scalar_lea.sflag [#allocation8], %s1341_s24  ;;  %s6135_s8 = scalar_lea.vmem [#allocation7], %s3449_s27 }
 0x3ad   : > { %5232 = dma.done.wait (%p6561_p2), %s1342_s11, 256  }
 0x3ae   : > { %5234 = vsyncadd (%p6561_p2), %s1342_s11, 4294967040  ;;  %p6562_p5 = scmp.eq.s32.totalorder %s5624_s1, 0 }
 0x3b0   : > { %5236 = dma.done.wait (%p6562_p5), [#allocation8], 32   ;;  %p6563_p11 = pmov %p6562_p5 }
 0x3b1   : > { %p6564_p4 = pmov %p6562_p5 }
 0x3b2   : > { %5238 = vsyncadd (%p6563_p11), [#allocation8], 4294967264 }
 0x3b3   : > { %5240 = dma.done.wait (%p6564_p4), [#allocation11], 48   ;;  %p6565_p0 = pmov %p6564_p4 }
 0x3b5   : > { %5242 = vsyncadd (%p6565_p0), [#allocation11], 4294967248  ;;  %p6566_p8 = pmov %p6565_p0 }
 0x3b6   : > { %p6567_p9 = pmov %p6565_p0 }
 0x3b7   : > { %5244 = dma.done.wait (%p6566_p8), [#allocation14], 528  }
 0x3b8   : > { %5246 = vsyncadd (%p6567_p9), [#allocation14], 4294966768  ;;  %p6568_p6 = pmov %p6565_p0 }
 0x3b9   : > { %p6569_p1 = pmov %p6565_p0 }
 0x3ba   : > { %5248 = dma.done.wait (%p6568_p6), [#allocation17], 528  }
 0x3bb   : > { %5250 = vsyncadd (%p6569_p1), [#allocation17], 4294966768  ;;  %p6570_p12 = pmov %p6565_p0 }
 0x3bc   : > { %p6571_p13 = pmov %p6565_p0 }
 0x3bd   : > { %5252 = dma.done.wait (%p6570_p12), [#allocation20], 528  }
 0x3be   : > { %5254 = vsyncadd (%p6571_p13), [#allocation20], 4294966768  ;;  %p6572_p10 = pmov %p6565_p0 }
 0x3bf   : > { %p6573_p3 = pmov %p6565_p0 }
 0x3c0   : > { %5256 = dma.done.wait (%p6572_p10), [#allocation23], 528  }
 0x3c1   : > { %5258 = vsyncadd (%p6573_p3), [#allocation23], 4294966768  ;;  %p6574_p7 = pmov %p6565_p0 }
 0x3c2   : > { %p6575_p2 = pmov %p6565_p0 }
 0x3c3   : > { %5260 = dma.done.wait (%p6574_p7), [#allocation26], 528  }
 0x3c4   : > { %5262 = vsyncadd (%p6575_p2), [#allocation26], 4294966768  ;;  %p6576_p5 = pmov %p6565_p0 }
 0x3c5   : > { %p6577_p11 = pmov %p6565_p0 }
 0x3c6   : > { %5264 = dma.done.wait (%p6576_p5), [#allocation29], 528  }
 0x3c7   : > { %5266 = vsyncadd (%p6577_p11), [#allocation29], 4294966768  ;;  %p6578_p4 = pmov %p6565_p0 }
 0x3c9   : > { %5268 = dma.done.wait (%p6578_p4), [#allocation32], 528  }
 0x3ca   : > { %5270 = vsyncadd (%p6565_p0), [#allocation32], 4294966768  ;;  %p6579_p8 = pmov %p6565_p0 }
 0x3cb   : > { %p6580_p9 = pmov %p6565_p0 }
 0x3cc   : > { %5272 = dma.done.wait (%p6579_p8), [#allocation35], 528  }
 0x3cd   : > { %5274 = vsyncadd (%p6580_p9), [#allocation35], 4294966768  ;;  %p6581_p6 = pmov %p6565_p0 }
 0x3ce   : > { %p6582_p1 = pmov %p6565_p0 }
 0x3cf   : > { %5276 = dma.done.wait (%p6581_p6), [#allocation38], 528  }
 0x3d0   : > { %5278 = vsyncadd (%p6582_p1), [#allocation38], 4294966768  ;;  %p6583_p12 = pmov %p6565_p0 }
 0x3d1   : > { %p6584_p13 = pmov %p6565_p0 }
 0x3d2   : > { %5280 = dma.done.wait (%p6583_p12), [#allocation41], 528  }
 0x3d3   : > { %5282 = vsyncadd (%p6584_p13), [#allocation41], 4294966768  ;;  %p6585_p10 = pmov %p6565_p0 }
 0x3d4   : > { %p6586_p3 = pmov %p6565_p0 }
 0x3d5   : > { %5284 = dma.done.wait (%p6585_p10), [#allocation44], 528  }
 0x3d6   : > { %5286 = vsyncadd (%p6586_p3), [#allocation44], 4294966768  ;;  %p6587_p7 = pmov %p6565_p0 }
 0x3d7   : > { %p6588_p2 = pmov %p6565_p0 }
 0x3d8   : > { %5288 = dma.done.wait (%p6587_p7), [#allocation47], 528  }
 0x3d9   : > { %5290 = vsyncadd (%p6588_p2), [#allocation47], 4294966768  ;;  %p6589_p5 = pmov %p6565_p0 }
 0x3da   : > { %p6590_p11 = pmov %p6565_p0 }
 0x3db   : > { %5292 = dma.done.wait (%p6589_p5), [#allocation50], 32  }
 0x3dc   : > { %5294 = vsyncadd (%p6590_p11), [#allocation50], 4294967264  ;;  %p6591_p4 = pmov %p6565_p0 }
 0x3de   : > { %5296 = dma.done.wait (%p6591_p4), [#allocation53], 32  }
 0x3df   : > { %5298 = vsyncadd (%p6565_p0), [#allocation53], 4294967264  ;;  %v5399_v2 = vmov 0   ;;  %v1565_v3 = vld [vmem:[%s6135_s8] sm:$0xff]  ;;  %v3483_v4 = vld [vmem:[%s6135_s8 + $0x8] sm:$0xff]  ;;  %v5400_v8 = vmov 0.0|0.0   ;;  %v1574_v16 = vlaneseq }
 0x3e0   : > { %4235 = vset.pattern.permute.xlu0 %v5399_v2  ;;  %4236 = vset.pattern.permute.xlu1 %v5399_v2  ;;  %v1701_v5 = vld [vmem:[#allocation13] sm:$0xff]  ;;  %v1702_v6 = vld [vmem:[#allocation13 + $0x8] sm:$0xff]  ;;  %v1703_v7 = vld [vmem:[#allocation13 + $0x10] sm:$0xff]  ;;  %vm5401_vm0 = vmmov 0   ;;  %v5402_v11 = vmov 0.0   ;;  %vm1727_vm13 = vcmask 261120  }
 0x3e1   : > { %1571 = vperm.xlu0 %4235, %v1565_v3   ;;  %3726 = vmatprep.subr.bf16.mxu0 %v5400_v8  ;;  %v3727_v9 = vpack.c.bf16 %v1702_v6, %v1701_v5  ;;  %v1704_v10 = vld [vmem:[#allocation13 + $0x18] sm:$0xff]  ;;  %v1706_v13 = vld [vmem:[#allocation16] sm:$0xff]  ;;  %v1707_v14 = vld [vmem:[#allocation16 + $0x8] sm:$0xff]  ;;  %v6217_v17 = vshrl.u32 %v1574_v16, 7  ;;  %v5403_v40 = vmov 683565275  }
 0x3e2   : > { %3602 = vmatprep.mubr.msk.f32.mxu0 %vm5401_vm0, %v5402_v11  ;;  %3732 = vmatprep.subr.bf16.mxu1 %v5400_v8  ;;  %v3730_v12 = vpack.c.bf16 %v1704_v10, %v1703_v7  ;;  %v3733_v15 = vpack.c.bf16 %v1707_v14, %v1706_v13  ;;  %v1568_v20 = vld [vmem:[#allocation9] sm:$0x3]  ;;  %v6228_v27 = vld [vmem:[#allocation12] ss:$0 sm:$0xff]  ;;  %v5404_v42 = vmov 2475754826  }
 0x3e3   : > { %3613 = vmatprep.mubr.msk.f32.mxu1 %vm5401_vm0, %v5402_v11  ;;  %3728 = vmatpush3.bf16.msra.mxu0 %v3727_v9  ;;  %v1576_v18 = vsub.s32 0, %v6217_v17  ;;  %v1586_v19 = vsub.s32 1, %v6217_v17  ;;  %v5405_v45 = vmov 2131351028   ;;  %v5406_v48 = vmov 2102212464  }
 0x3e4   : > { %3729 = vmatprep.subr.bf16.mxu0 %v5400_v8  ;;  %3734 = vmatpush3.bf16.msra.mxu1 %v3733_v15  ;;  %v5407_v51 = vmov 920167782   ;;  %v5408_v54 = vmov 1326507024   ;;  %vm2423_vm15 = vcmask 57344   ;;  %s6314_s1 = scalar_lea.vmem [#allocation55], %s3448_s21 }
 0x3e5   : > { %1581 = vperm.xlu0 %4235, %v3483_v4   ;;  %3735 = vmatprep.subr.bf16.mxu1 %v5400_v8  ;;  %v1577_v22 = vrot.slane %v1568_v20, %v1576_v18  ;;  %v1587_v23 = vrot.slane %v1568_v20, %v1586_v19  ;;  %s6592_s2 = sld [smem:[#allocation108_spill]]  ;;  %s6593_s19 = sld [smem:[#allocation107_spill]] }
 0x3e6   : > { %s2969_s13 = sshll.u32 %s6314_s1, 4  ;;  %s2955_s25 = scalar_lea.sflag [#allocation6], %s6121_s9  ;;  %s6374_s13 = int_to_ptr.vmem [resolvable:$true] %s2969_s13 }
 0x3e7   : > { %3731 = vmatpush3.bf16.msra.mxu0 %v3730_v12  ;;  %s5175_s20 = scalar_lea.vmem %s6374_s13, 32  ;;  %p6594_p9 = scmp.ne.s32.totalorder %s6554_s4, 0 }
 0x3e8   : > { %3738 = vmatprep.subr.bf16.mxu0 %v5400_v8  ;;  %p5176_p8 = scmp.ne.s32.totalorder %s6374_s13, %s5175_s20  ;;  %s5409_s17 = smov [#allocation55]  }
 0x3e9   : > { %s5179_s15 = sshll.u32 %s5409_s17, 4  ;;  %s5180_s15 = int_to_ptr.vmem [resolvable:$false] %s5179_s15 }
 0x3ea   : > { %p5177_p6 = pnand %p5176_p8, %p6594_p9  ;;  %s5181_s28 = scalar_lea.vmem %s5180_s15, 64 }
 0x3eb   : > { %s3533_s6 = sshll.u32 %s6592_s2, 5  ;;  %p5182_p12 = scmp.lt.s32.totalorder %s6374_s13, %s5180_s15 }
 0x3ec   : > { %s6372_s14 = scalar_lea.hbm %s6593_s19, %s3533_s6  ;;  %p5178_p1 = pneg %p5177_p6 }
 0x3ed   : > { %p5183_p13 = scmp.lt.s32.totalorder %s5181_s28, %s5175_s20 }
 0x3ef   : > { %p5184_p10 = por %p5183_p13, %p5182_p12 }
 0x3f1   : > { %p5185_p3 = pnand %p5184_p10, %p5178_p1 }
 0x460   : > { %v1572_v21 = vpop.permute.xlu0 %1571 }
 0x461   : > { %v1578_v25 = vmul.f32 %v1577_v22, %v1572_v21 }
 0x464   : > { %v6225_v24 = vpop.permute.xlu0 %1581 }
 0x465   : > { %v1588_v26 = vmul.f32 %v1587_v23, %v6225_v24 }
 0x467   : > { %v1589_v28 = vadd.f32 %v1588_v26, %v1578_v25 }
 0x469   : > { %v6231_v29 = vadd.f32 %v6228_v27, %v1589_v28 }
 0x46b   : > { %v1600_v30 = vand.u32 2139095040, %v6231_v29  ;;  %v1597_v34 = vand.u32 2147483647, %v6231_v29  ;;  %vm1599_vm8 = vcmp.lt.s32.totalorder %v6231_v29, 0  ;;  %vm1689_vm14 = vweird.f32 %v6231_v29 }
 0x46d   : > { %v1601_v31 = vshrl.u32 %v1600_v30, 23  ;;  %v1604_v38 = vand.u32 8388607, %v1597_v34  ;;  %vm1598_vm9 = vcmp.le.f32.partialorder %v1597_v34, 0.7853982 }
 0x46f   : > { %v3485_v32 = vadd.s32 4294967169, %v1601_v31  ;;  %v1605_v56 = vor.u32 8388608, %v1604_v38 }
 0x471   : > { %v1607_v33 = vadd.s32 1, %v3485_v32  ;;  %v1645_v6 = vshll.u32 %v1605_v56, 8 }
 0x473   : > { %vm1608_vm1 = vcmp.gt.s32.totalorder %v1607_v33, 0 }
 0x474   : > { %v1609_v35 = vsel %vm1608_vm1, %v1607_v33, 0 }
 0x475   : > { %v1611_v36 = vand.u32 31, %v1609_v35  ;;  %v1610_v39 = vshrl.u32 %v1609_v35, 5 }
 0x477   : > { %v1612_v37 = vsub.s32 32, %v1611_v36  ;;  %v1614_v41 = vshll.u32 %v5403_v40, %v1611_v36  ;;  %v1617_v43 = vshll.u32 %v5404_v42, %v1611_v36  ;;  %v1620_v47 = vshll.u32 %v5405_v45, %v1611_v36 }
 0x478   : > { %v1623_v50 = vshll.u32 %v5406_v48, %v1611_v36  ;;  %v1626_v53 = vshll.u32 %v5407_v51, %v1611_v36  ;;  %vm1629_vm2 = vcmp.lt.s32.totalorder %v1610_v39, 1  ;;  %vm1632_vm3 = vcmp.lt.s32.totalorder %v1610_v39, 4 }
 0x479   : > { %v1615_v44 = vshrl.u32 %v5404_v42, %v1612_v37  ;;  %v1618_v46 = vshrl.u32 %v5405_v45, %v1612_v37  ;;  %v1621_v49 = vshrl.u32 %v5406_v48, %v1612_v37  ;;  %v1624_v52 = vshrl.u32 %v5407_v51, %v1612_v37 }
 0x47a   : > { %v1627_v55 = vshrl.u32 %v5408_v54, %v1612_v37  ;;  %v1613_v1 = vshrl.u32 %v5403_v40, %v1612_v37  ;;  %vm1631_vm4 = vcmp.lt.s32.totalorder %v1610_v39, 3  ;;  %vm1630_vm5 = vcmp.lt.s32.totalorder %v1610_v39, 2 }
 0x47b   : > { %v1616_v57 = vor.u32 %v1615_v44, %v1614_v41  ;;  %v1619_v58 = vor.u32 %v1618_v46, %v1617_v43  ;;  %v1622_v59 = vor.u32 %v1621_v49, %v1620_v47  ;;  %v1625_v60 = vor.u32 %v1624_v52, %v1623_v50 }
 0x47c   : > { %v1628_v61 = vor.u32 %v1627_v55, %v1626_v53 }
 0x47d   : > { %v1634_v62 = vsel %vm1632_vm3, %v1622_v59, 2102212464  ;;  %v1637_v63 = vsel %vm1629_vm2, %v1616_v57, %v1619_v58  ;;  %v1641_v0 = vsel %vm1629_vm2, %v1619_v58, %v1622_v59  ;;  %v1638_v2 = vsel %vm1632_vm3, %v1625_v60, 920167782 }
 0x47e   : > { %v1642_v3 = vsel %vm1632_vm3, %v1628_v61, 1326507024  ;;  %v1639_v4 = vsel %vm1631_vm4, %v1622_v59, %v1638_v2  ;;  %v1633_v7 = vsel %vm1629_vm2, %v1613_v1, %v1616_v57  ;;  %v1635_v9 = vsel %vm1631_vm4, %v1619_v58, %v1634_v62 }
 0x47f   : > { %v1643_v5 = vsel %vm1631_vm4, %v1625_v60, %v1642_v3  ;;  %v1640_v10 = vsel %vm1630_vm5, %v1637_v63, %v1639_v4  ;;  %v1636_v21 = vsel %vm1630_vm5, %v1633_v7, %v1635_v9  ;;  %v1708_v9 = vld [vmem:[#allocation16 + $0x10] sm:$0xff] }
 0x480   : > { %v1644_v12 = vsel %vm1630_vm5, %v1641_v0, %v1643_v5  ;;  %v6251_v15 = vmul.u32.u64.low %v1645_v6, %v1640_v10  ;;  %v6252_v20 = vmul.u32.u64.high %v1645_v6, %v1640_v10, %v6251_v15  ;;  %v1652_v23 = vmul.u32 %v1645_v6, %v1636_v21  ;;  %v1709_v10 = vld [vmem:[#allocation16 + $0x18] sm:$0xff] }
 0x481   : > { %v6248_v13 = vmul.u32.u64.low %v1645_v6, %v1644_v12  ;;  %v6249_v14 = vmul.u32.u64.high %v1645_v6, %v1644_v12, %v6248_v13  ;;  %v3736_v12 = vpack.c.bf16 %v1709_v10, %v1708_v9  ;;  %v3498_v9 = vld [vmem:[#allocation27] ss:$0 sm:$0xff] }
 0x482   : > { %v1655_v22 = vadd.s32 1, %v6252_v20  ;;  %v3489_v13 = vld [vmem:[#allocation15] ss:$0 sm:$0xff] }
 0x483   : > { %vm1654_vm6 = vc.u32 %v6249_v14, %v6251_v15  ;;  %v1653_v39 = vadd.s32 %v6251_v15, %v6249_v14  ;;  %3737 = vmatpush3.bf16.msra.mxu1 %v3736_v12 }
 0x484   : > { %v1656_v25 = vsel %vm1654_vm6, %v1655_v22, %v6252_v20  ;;  %3744 = vmatprep.subr.bf16.mxu1 %v5400_v8  ;;  %v1712_v22 = vld [vmem:[#allocation19 + $0x8] sm:$0xff] }
 0x485   : > { %v1657_v26 = vadd.s32 %v1656_v25, %v1652_v23  ;;  %v1713_v25 = vld [vmem:[#allocation19 + $0x10] sm:$0xff] }
 0x487   : > { %v1658_v28 = vadd.s32 536870912, %v1657_v26 }
 0x489   : > { %v1659_v30 = vshrl.u32 %v1658_v28, 30 }
 0x48b   : > { %v1660_v31 = vshll.u32 %v1659_v30, 30  ;;  %v1683_v57 = vsub.s32 4, %v1659_v30 }
 0x48d   : > { %v1661_v32 = vsub.s32 %v1657_v26, %v1660_v31  ;;  %v1684_v60 = vsel %vm1599_vm8, %v1683_v57, %v1659_v30  ;;  %v1714_v26 = vld [vmem:[#allocation19 + $0x18] sm:$0xff] }
 0x48e   : > { %v1686_v62 = vsel %vm1598_vm9, 0, %v1684_v60  ;;  %v3742_v28 = vpack.c.bf16 %v1714_v26, %v1713_v25  ;;  %v3491_v30 = vld [vmem:[#allocation18] ss:$0 sm:$0xff]  ;;  %v3500_v25 = vld [vmem:[#allocation30] ss:$0 sm:$0xff] }
 0x48f   : > { %v1663_v33 = vsub.s32 0, %v1661_v32  ;;  %v1690_v63 = vadd.s32 3, %v1686_v62  ;;  %v2056_v62 = vld [vmem:[#allocation28 + $0x8] sm:$0xff] }
 0x491   : > { %v3486_v35 = vmin.u32 %v1663_v33, %v1661_v32  ;;  %v1691_v0 = vand.u32 3, %v1690_v63 }
 0x493   : > { %v1665_v36 = vclz %v3486_v35  ;;  %vm1696_vm10 = vcmp.eq.s32.totalorder %v1691_v0, 2  ;;  %vm1693_vm11 = vcmp.eq.s32.totalorder %v1691_v0, 0  ;;  %vm1692_vm12 = vcmp.lt.s32.totalorder %v1691_v0, 2  ;;  %v3495_v0 = vld [vmem:[#allocation24] ss:$0 sm:$0xff] }
 0x495   : > { %v3487_v37 = vadd.s32 4294967294, %v1665_v36 }
 0x497   : > { %vm3488_vm7 = vcmp.lt.s32.totalorder %v3487_v37, 0 }
 0x498   : > { %v1668_v38 = vsel %vm3488_vm7, 0, %v3487_v37  ;;  %v1716_v37 = vld [vmem:[#allocation22] sm:$0xff] }
 0x499   : > { %v1669_v41 = vsub.s32 32, %v1668_v38  ;;  %v1673_v43 = vsub.s32 4294967266, %v1668_v38  ;;  %v1670_v44 = vshll.u32 %v1661_v32, %v1668_v38  ;;  %v1717_v38 = vld [vmem:[#allocation22 + $0x8] sm:$0xff] }
 0x49b   : > { %v1671_v46 = vshrl.u32 %v1653_v39, %v1669_v41  ;;  %v1674_v47 = vadd.s32 127, %v1673_v43  ;;  %v3745_v39 = vpack.c.bf16 %v1717_v38, %v1716_v37  ;;  %v1718_v41 = vld [vmem:[#allocation22 + $0x10] sm:$0xff]  ;;  %v1719_v43 = vld [vmem:[#allocation22 + $0x18] sm:$0xff]  ;;  %v2068_v38 = vld [vmem:[#allocation34 + $0x18] sm:$0xff] }
 0x49c   : > { %v2067_v37 = vld [vmem:[#allocation34 + $0x10] sm:$0xff] }
 0x49d   : > { %v1672_v49 = vor.u32 %v1671_v46, %v1670_v44  ;;  %v1675_v50 = vshll.u32 %v1674_v47, 23  ;;  %v3748_v44 = vpack.c.bf16 %v1719_v43, %v1718_v41  ;;  %v2050_v46 = vld [vmem:[#allocation25] sm:$0xff]  ;;  %v2051_v47 = vld [vmem:[#allocation25 + $0x8] sm:$0xff] }
 0x49e   : > { %v3502_v41 = vld [vmem:[#allocation33] ss:$0 sm:$0xff] }
 0x49f   : > { %v1676_v52 = vor.u32 4788187, %v1675_v50  ;;  %v1679_v55 = vcvt.s32.f32 %v1672_v49  ;;  %v3751_v49 = vpack.c.bf16 %v2051_v47, %v2050_v46  ;;  %v3493_v50 = vld [vmem:[#allocation21] ss:$0 sm:$0xff] }
 0x4a1   : > { %v1677_v53 = vand.u32 2147483647, %v1676_v52 }
 0x4a3   : > { %v1680_v56 = vmul.f32 %v1679_v55, %v1677_v53 }
 0x4a5   : > { %v1681_v58 = vxor.u32 2147483648, %v1680_v56 }
 0x4a7   : > { %v1682_v59 = vsel %vm1599_vm8, %v1681_v58, %v1680_v56  ;;  %v2052_v58 = vld [vmem:[#allocation25 + $0x10] sm:$0xff] }
 0x4a8   : > { %v1685_v61 = vsel %vm1598_vm9, %v6231_v29, %v1682_v59  ;;  %v1711_v29 = vld [vmem:[#allocation19] sm:$0xff] }
 0x4a9   : > { %4237 = vcosq.f32 %v1685_v61  ;;  %v3739_v23 = vpack.c.bf16 %v1712_v22, %v1711_v29  ;;  %v2053_v59 = vld [vmem:[#allocation25 + $0x18] sm:$0xff] }
 0x4aa   : > { %4239 = vsinq.f32 %v1685_v61  ;;  %v3754_v60 = vpack.c.bf16 %v2053_v59, %v2052_v58  ;;  %v2055_v61 = vld [vmem:[#allocation28] sm:$0xff]  ;;  %v2062_v29 = vld [vmem:[#allocation31 + $0x10] sm:$0xff] }
 0x4ab   : > { %v3757_v63 = vpack.c.bf16 %v2056_v62, %v2055_v61  ;;  %v2063_v22 = vld [vmem:[#allocation31 + $0x18] sm:$0xff]  ;;  %v3507_v61 = vld [vmem:[#allocation2] ss:$0 sm:$0xff] }
 0x4b3   : > { %v4238_v1 = vpop.eup %4237 }
 0x4b4   : > { %v4240_v2 = vpop.eup %4239  ;;  %v1697_v3 = vxor.u32 2147483648, %v4238_v1 }
 0x4b5   : > { %v1694_v4 = vxor.u32 2147483648, %v4240_v2 }
 0x4b6   : > { %v1698_v5 = vsel %vm1696_vm10, %v1697_v3, %v4240_v2 }
 0x4b7   : > { %v1695_v6 = vsel %vm1693_vm11, %v4238_v1, %v1694_v4  ;;  %v3497_v1 = vld [vmem:[%s6127_s18] ss:$0 sm:$0xff] }
 0x4b8   : > { %v1699_v34 = vsel %vm1692_vm12, %v1695_v6, %v1698_v5  ;;  %v2057_v6 = vld [vmem:[#allocation28 + $0x10] sm:$0xff] }
 0x4b9   : > { %v1700_v7 = vsel %vm1689_vm14, nan, %v1699_v34  ;;  %v2058_v34 = vld [vmem:[#allocation28 + $0x18] sm:$0xff] }
 0x4ba   : > { %3603 = vmatmul.mubr.msk.f32.vlgmr.msra.gmra.mrb[0].mxu0 %vm1727_vm13, %v1700_v7  ;;  %v3760_v7 = vpack.c.bf16 %v2058_v34, %v2057_v6 }
 0x4bb   : > { %3624 = vmatprep.mubr.msk.f32.mxu0 %vm5401_vm0, %v5402_v11  ;;  %3740 = vmatpush3.bf16.msra.mxu0 %v3739_v23  ;;  %v3766_v23 = vpack.c.bf16 %v2063_v22, %v2062_v29 }
 0x4bc   : > { %3741 = vmatprep.subr.bf16.mxu0 %v5400_v8 }
 0x4bf   : > { %3743 = vmatpush3.bf16.msra.mxu0 %v3742_v28 }
 0x4c0   : > { %3750 = vmatprep.subr.bf16.mxu0 %v5400_v8 }
 0x58d   : > { %v1797_v14 = vpop.f32.mrb[0].mxu0 }
 0x58e   : > { %v1798_v15 = vadd.f32 %v3489_v13, %v1797_v14  ;;  %v3604_v20 = vpop.f32.mrb[1].mxu0 }
 0x58f   : > { %v2061_v20 = vld [vmem:[#allocation31 + $0x8] sm:$0xff] }
 0x590   : > { %v1801_v21 = vmax.f32 %v1798_v15, 0.0  ;;  %v2060_v15 = vld [vmem:[#allocation31] sm:$0xff] }
 0x592   : > { %3614 = vmatmul.mubr.msk.f32.vlgmr.msra.gmra.mrb[0].mxu1 %vm1727_vm13, %v1801_v21 }
 0x593   : > { %3635 = vmatprep.mubr.msk.f32.mxu1 %vm5401_vm0, %v5402_v11  ;;  %3746 = vmatpush3.bf16.msra.mxu1 %v3745_v39  ;;  %v3772_v39 = vpack.c.bf16 %v2068_v38, %v2067_v37 }
 0x594   : > { %3747 = vmatprep.subr.bf16.mxu1 %v5400_v8 }
 0x597   : > { %3749 = vmatpush3.bf16.msra.mxu1 %v3748_v44 }
 0x598   : > { %3756 = vmatprep.subr.bf16.mxu1 %v5400_v8 }
 0x665   : > { %v1877_v31 = vpop.f32.mrb[0].mxu1 }
 0x666   : > { %v1878_v32 = vadd.f32 %v3491_v30, %v1877_v31  ;;  %v3615_v33 = vpop.f32.mrb[1].mxu1 }
 0x667   : > { %v2065_v33 = vld [vmem:[#allocation34] sm:$0xff] }
 0x668   : > { %v1881_v35 = vmax.f32 %v1878_v32, 0.0 }
 0x66a   : > { %v1882_v36 = vadd.f32 %v1881_v35, %v1801_v21  ;;  %v3763_v21 = vpack.c.bf16 %v2061_v20, %v2060_v15  ;;  %v2066_v35 = vld [vmem:[#allocation34 + $0x8] sm:$0xff] }
 0x66c   : > { %3625 = vmatmul.mubr.msk.f32.vlgmr.msra.gmra.mrb[2].mxu0 %vm1727_vm13, %v1882_v36 }
 0x66d   : > { %3646 = vmatprep.mubr.msk.f32.mxu0 %vm5401_vm0, %v5402_v11  ;;  %3752 = vmatpush3.bf16.msra.mxu0 %v3751_v49 }
 0x66e   : > { %3753 = vmatprep.subr.bf16.mxu0 %v5400_v8 }
 0x671   : > { %3755 = vmatpush3.bf16.msra.mxu0 %v3754_v60 }
 0x672   : > { %3762 = vmatprep.subr.bf16.mxu0 %v5400_v8 }
 0x73f   : > { %v1958_v52 = vpop.f32.mrb[2].mxu0 }
 0x740   : > { %v1959_v53 = vadd.f32 %v3493_v50, %v1958_v52  ;;  %v3626_v55 = vpop.f32.mrb[3].mxu0  ;;  %v3504_v50 = vld [vmem:[#allocation36] ss:$0 sm:$0xff] }
 0x742   : > { %v1962_v56 = vmax.f32 %v1959_v53, 0.0 }
 0x744   : > { %v1963_v57 = vadd.f32 %v1962_v56, %v1882_v36  ;;  %v3769_v36 = vpack.c.bf16 %v2066_v35, %v2065_v33 }
 0x746   : > { %3636 = vmatmul.mubr.msk.f32.vlgmr.msra.gmra.mrb[2].mxu1 %vm1727_vm13, %v1963_v57  ;;  %v3506_v57 = vld [vmem:[#allocation37] ss:$0 sm:$0xff] }
 0x747   : > { %3657 = vmatprep.mubr.msk.f32.mxu1 %vm5401_vm0, %v5402_v11  ;;  %3758 = vmatpush3.bf16.msra.mxu1 %v3757_v63 }
 0x748   : > { %3759 = vmatprep.subr.bf16.mxu1 %v5400_v8 }
 0x74b   : > { %3761 = vmatpush3.bf16.msra.mxu1 %v3760_v7 }
 0x74c   : > { %3768 = vmatprep.subr.bf16.mxu1 %v5400_v8 }
 0x819   : > { %v2039_v2 = vpop.f32.mrb[2].mxu1 }
 0x81a   : > { %v2040_v3 = vadd.f32 %v3495_v0, %v2039_v2  ;;  %v3637_v4 = vpop.f32.mrb[3].mxu1  ;;  %v2417_v0 = vand.u32 127, %v1574_v16 }
 0x81c   : > { %v2049_v5 = vmul.f32 %v3497_v1, %v2040_v3  ;;  %v2425_v1 = vld [vmem:[#allocation10] sm:$0x3]  ;;  %v6306_v3 = vsub.s32 %v2417_v0, %v6217_v17 }
 0x81d   : > { %v2435_v2 = vrot.slane %v2425_v1, %v1586_v19  ;;  %v2430_v4 = vrot.slane %v2425_v1, %v1576_v18 }
 0x81e   : > { %3647 = vmatmul.mubr.msk.f32.vlgmr.msra.gmra.mrb[4].mxu0 %vm1727_vm13, %v2049_v5 }
 0x81f   : > { %3668 = vmatprep.mubr.msk.f32.mxu0 %vm5401_vm0, %v5402_v11  ;;  %3764 = vmatpush3.bf16.msra.mxu0 %v3763_v21  ;;  %v2436_v6 = vmul.f32 %v2435_v2, %v6225_v24 }
 0x820   : > { %3765 = vmatprep.subr.bf16.mxu0 %v5400_v8 }
 0x823   : > { %3767 = vmatpush3.bf16.msra.mxu0 %v3766_v23 }
 0x824   : > { %3774 = vmatprep.subr.bf16.mxu0 %v5400_v8 }
 0x8f1   : > { %v2147_v10 = vpop.f32.mrb[4].mxu0 }
 0x8f2   : > { %v2148_v12 = vadd.f32 %v3498_v9, %v2147_v10  ;;  %v3648_v13 = vpop.f32.mrb[5].mxu0 }
 0x8f4   : > { %v2151_v14 = vmax.f32 %v2148_v12, 0.0 }
 0x8f6   : > { %3658 = vmatmul.mubr.msk.f32.vlgmr.msra.gmra.mrb[4].mxu1 %vm1727_vm13, %v2151_v14 }
 0x8f7   : > { %3679 = vmatprep.mubr.msk.f32.mxu1 %vm5401_vm0, %v5402_v11  ;;  %3770 = vmatpush3.bf16.msra.mxu1 %v3769_v36 }
 0x8f8   : > { %3771 = vmatprep.subr.bf16.mxu1 %v5400_v8 }
 0x8fb   : > { %3773 = vmatpush3.bf16.msra.mxu1 %v3772_v39 }
 0x8fc   : > { %3780 = vmatprep.subr.bf16.mxu1 %v5400_v8 }
 0x9c9   : > { %v2227_v26 = vpop.f32.mrb[4].mxu1 }
 0x9ca   : > { %v2228_v28 = vadd.f32 %v3500_v25, %v2227_v26  ;;  %v3659_v30 = vpop.f32.mrb[5].mxu1 }
 0x9cc   : > { %v2231_v31 = vmax.f32 %v2228_v28, 0.0 }
 0x9ce   : > { %v2232_v32 = vadd.f32 %v2231_v31, %v2151_v14 }
 0x9d0   : > { %3669 = vmatmul.mubr.msk.f32.vlgmr.msra.gmra.mrb[6].mxu0 %vm1727_vm13, %v2232_v32 }
 0x9d1   : > { %3690 = vmatprep.mubr.msk.f32.mxu0 %vm5401_vm0, %v5402_v11 }
 0xaa3   : > { %v2308_v43 = vpop.f32.mrb[6].mxu0 }
 0xaa4   : > { %v2309_v44 = vadd.f32 %v3502_v41, %v2308_v43  ;;  %v3670_v46 = vpop.f32.mrb[7].mxu0 }
 0xaa6   : > { %v2312_v47 = vmax.f32 %v2309_v44, 0.0 }
 0xaa8   : > { %v2313_v49 = vadd.f32 %v2312_v47, %v2232_v32 }
 0xaaa   : > { %3680 = vmatmul.mubr.msk.f32.vlgmr.msra.gmra.mrb[6].mxu1 %vm1727_vm13, %v2313_v49 }
 0xaab   : > { %3701 = vmatprep.mubr.msk.f32.mxu1 %vm5401_vm0, %v5402_v11 }
 0xb7d   : > { %v2389_v52 = vpop.f32.mrb[6].mxu1 }
 0xb7e   : > { %v2390_v53 = vadd.f32 %v3504_v50, %v2389_v52  ;;  %v3681_v55 = vpop.f32.mrb[7].mxu1 }
 0xb80   : > { %v2393_v56 = vmax.f32 %v2390_v53, 0.0 }
 0xb82   : > { %v2394_v58 = vadd.f32 %v2393_v56, %v2313_v49 }
 0xb84   : > { %v2401_v59 = vmul.f32 %v3506_v57, %v2394_v58 }
 0xb86   : > { %v2402_v60 = vsel %vm1727_vm13, %v2401_v59, 0.0 }
 0xb87   : > { %2403 = vadd.xlane.f32.xlu1 %v2402_v60 }
 0xc14   : > { %v2404_v62 = vpop.xlane.xlu1 %2403 }
 0xc15   : > { %v2411_v63 = vadd.f32 %v3507_v61, %v2404_v62 }
 0xc17   : > { %2414 = vperm.xlu1 %4236, %v2411_v63  }
 0xc96   : > { %v2415_v5 = vpop.permute.xlu1 %2414 }
 0xc97   : > { %v2421_v34 = vrot.slane %v2415_v5, %v6306_v3  ;;  %v2431_v7 = vmul.f32 %v2430_v4, %v2415_v5 }
 0xc99   : > { %2424 = vst.msk [vmem:[%s6314_s1] sm:$0x1] %vm2423_vm15, %v2421_v34  ;;  %v2437_v16 = vadd.f32 %v2436_v6, %v2431_v7 }
 0xc9b   : > { %v6319_v19 = vadd.f32 %v6228_v27, %v2437_v16 }
 0xc9d   : > { %v2442_v17 = vand.u32 2139095040, %v6319_v19  ;;  %v2439_v24 = vand.u32 2147483647, %v6319_v19  ;;  %vm2441_vm8 = vcmp.lt.s32.totalorder %v6319_v19, 0  ;;  %vm2531_vm14 = vweird.f32 %v6319_v19 }
 0xc9f   : > { %v2443_v18 = vshrl.u32 %v2442_v17, 23  ;;  %v2446_v15 = vand.u32 8388607, %v2439_v24  ;;  %vm2440_vm9 = vcmp.le.f32.partialorder %v2439_v24, 0.7853982 }
 0xca1   : > { %v3508_v9 = vadd.s32 4294967169, %v2443_v18  ;;  %v2447_v32 = vor.u32 8388608, %v2446_v15 }
 0xca3   : > { %v2449_v10 = vadd.s32 1, %v3508_v9 }
 0xca5   : > { %vm2450_vm1 = vcmp.gt.s32.totalorder %v2449_v10, 0 }
 0xca6   : > { %v2451_v12 = vsel %vm2450_vm1, %v2449_v10, 0 }
 0xca7   : > { %v2453_v13 = vand.u32 31, %v2451_v12  ;;  %v2452_v20 = vshrl.u32 %v2451_v12, 5 }
 0xca9   : > { %v2454_v14 = vsub.s32 32, %v2453_v13  ;;  %v2456_v21 = vshll.u32 %v5403_v40, %v2453_v13  ;;  %v2459_v27 = vshll.u32 %v5404_v42, %v2453_v13  ;;  %v2462_v23 = vshll.u32 %v5405_v45, %v2453_v13 }
 0xcaa   : > { %v2465_v26 = vshll.u32 %v5406_v48, %v2453_v13  ;;  %v2468_v30 = vshll.u32 %v5407_v51, %v2453_v13  ;;  %vm2471_vm2 = vcmp.lt.s32.totalorder %v2452_v20, 1  ;;  %vm2474_vm3 = vcmp.lt.s32.totalorder %v2452_v20, 4 }
 0xcab   : > { %v2457_v29 = vshrl.u32 %v5404_v42, %v2454_v14  ;;  %v2460_v22 = vshrl.u32 %v5405_v45, %v2454_v14  ;;  %v2463_v25 = vshrl.u32 %v5406_v48, %v2454_v14  ;;  %v2466_v28 = vshrl.u32 %v5407_v51, %v2454_v14 }
 0xcac   : > { %v2469_v31 = vshrl.u32 %v5408_v54, %v2454_v14  ;;  %v2455_v41 = vshrl.u32 %v5403_v40, %v2454_v14  ;;  %vm2473_vm4 = vcmp.lt.s32.totalorder %v2452_v20, 3  ;;  %vm2472_vm5 = vcmp.lt.s32.totalorder %v2452_v20, 2 }
 0xcad   : > { %v2458_v33 = vor.u32 %v2457_v29, %v2456_v21  ;;  %v2461_v35 = vor.u32 %v2460_v22, %v2459_v27  ;;  %v2464_v36 = vor.u32 %v2463_v25, %v2462_v23  ;;  %v2467_v37 = vor.u32 %v2466_v28, %v2465_v26 }
 0xcae   : > { %v2470_v42 = vor.u32 %v2469_v31, %v2468_v30  ;;  %v2487_v54 = vshll.u32 %v2447_v32, 8 }
 0xcaf   : > { %v2476_v38 = vsel %vm2474_vm3, %v2464_v36, 2102212464  ;;  %v2479_v45 = vsel %vm2471_vm2, %v2458_v33, %v2461_v35  ;;  %v2483_v39 = vsel %vm2471_vm2, %v2461_v35, %v2464_v36  ;;  %v2480_v48 = vsel %vm2474_vm3, %v2467_v37, 920167782 }
 0xcb0   : > { %v2484_v43 = vsel %vm2474_vm3, %v2470_v42, 1326507024  ;;  %v2481_v51 = vsel %vm2473_vm4, %v2464_v36, %v2480_v48  ;;  %v2475_v46 = vsel %vm2471_vm2, %v2455_v41, %v2458_v33  ;;  %v2477_v47 = vsel %vm2473_vm4, %v2461_v35, %v2476_v38  ;;  %v3512_v36 = vld [vmem:[%s6127_s18 + $0x1] ss:$0 sm:$0xff] }
 0xcb1   : > { %v2485_v44 = vsel %vm2473_vm4, %v2467_v37, %v2484_v43  ;;  %v2482_v49 = vsel %vm2472_vm5, %v2479_v45, %v2481_v51  ;;  %v2478_v57 = vsel %vm2472_vm5, %v2475_v46, %v2477_v47  ;;  %v2583_v47 = vld [vmem:[#allocation39 + $0x10] sm:$0xff] }
 0xcb2   : > { %v2486_v50 = vsel %vm2472_vm5, %v2483_v39, %v2485_v44  ;;  %v6339_v55 = vmul.u32.u64.low %v2487_v54, %v2482_v49  ;;  %v6340_v56 = vmul.u32.u64.high %v2487_v54, %v2482_v49, %v6339_v55  ;;  %v2494_v58 = vmul.u32 %v2487_v54, %v2478_v57  ;;  %v2581_v44 = vld [vmem:[#allocation39] sm:$0xff]  ;;  %v2584_v49 = vld [vmem:[#allocation39 + $0x18] sm:$0xff] }
 0xcb3   : > { %v6336_v52 = vmul.u32.u64.low %v2487_v54, %v2486_v50  ;;  %v6337_v53 = vmul.u32.u64.high %v2487_v54, %v2486_v50, %v6336_v52  ;;  %v2582_v54 = vld [vmem:[#allocation39 + $0x8] sm:$0xff] }
 0xcb4   : > { %v2497_v40 = vadd.s32 1, %v6340_v56  ;;  %v3775_v46 = vpack.c.bf16 %v2582_v54, %v2581_v44  ;;  %v2586_v50 = vld [vmem:[#allocation42] sm:$0xff]  ;;  %v2587_v52 = vld [vmem:[#allocation42 + $0x8] sm:$0xff] }
 0xcb5   : > { %vm2496_vm6 = vc.u32 %v6337_v53, %v6339_v55  ;;  %v2495_v34 = vadd.s32 %v6339_v55, %v6337_v53  ;;  %v3781_v53 = vpack.c.bf16 %v2587_v52, %v2586_v50 }
 0xcb6   : > { %v2498_v59 = vsel %vm2496_vm6, %v2497_v40, %v6340_v56  ;;  %3776 = vmatpush3.bf16.msra.mxu0 %v3775_v46 }
 0xcb7   : > { %v2499_v60 = vadd.s32 %v2498_v59, %v2494_v58  ;;  %3777 = vmatprep.subr.bf16.mxu0 %v5400_v8  ;;  %3782 = vmatpush3.bf16.msra.mxu1 %v3781_v53  ;;  %v3513_v58 = vld [vmem:[#allocation52] ss:$0 sm:$0xff] }
 0xcb8   : > { %3783 = vmatprep.subr.bf16.mxu1 %v5400_v8 }
 0xcb9   : > { %v2500_v61 = vadd.s32 536870912, %v2499_v60 }
 0xcbb   : > { %v2501_v62 = vshrl.u32 %v2500_v61, 30 }
 0xcbd   : > { %v2502_v63 = vshll.u32 %v2501_v62, 30  ;;  %v2525_v21 = vsub.s32 4, %v2501_v62 }
 0xcbf   : > { %v2503_v0 = vsub.s32 %v2499_v60, %v2502_v63  ;;  %v2526_v22 = vsel %vm2441_vm8, %v2525_v21, %v2501_v62  ;;  %v3514_v60 = vld [vmem:[#allocation54] ss:$0 sm:$0xff] }
 0xcc0   : > { %v2528_v25 = vsel %vm2440_vm9, 0, %v2526_v22 }
 0xcc1   : > { %v2505_v1 = vsub.s32 0, %v2503_v0  ;;  %v2532_v26 = vadd.s32 3, %v2528_v25  ;;  %v2599_v25 = vld [vmem:[#allocation48 + $0x18] sm:$0xff] }
 0xcc3   : > { %v3509_v2 = vmin.u32 %v2505_v1, %v2503_v0  ;;  %v2533_v28 = vand.u32 3, %v2532_v26  ;;  %v2589_v1 = vld [vmem:[#allocation42 + $0x18] sm:$0xff] }
 0xcc5   : > { %v2507_v4 = vclz %v3509_v2  ;;  %vm2538_vm10 = vcmp.eq.s32.totalorder %v2533_v28, 2  ;;  %vm2535_vm11 = vcmp.eq.s32.totalorder %v2533_v28, 0  ;;  %vm2534_vm12 = vcmp.lt.s32.totalorder %v2533_v28, 2  ;;  %v3519_v28 = vld [vmem:[#allocation46] ss:$0 sm:$0xff] }
 0xcc7   : > { %v3510_v5 = vadd.s32 4294967294, %v2507_v4  ;;  %v3515_v4 = vld [vmem:[#allocation40] ss:$0 sm:$0xff] }
 0xcc9   : > { %vm3511_vm7 = vcmp.lt.s32.totalorder %v3510_v5, 0 }
 0xcca   : > { %v2510_v6 = vsel %vm3511_vm7, 0, %v3510_v5 }
 0xccb   : > { %v2511_v7 = vsub.s32 32, %v2510_v6  ;;  %v2515_v16 = vsub.s32 4294967266, %v2510_v6  ;;  %v2512_v17 = vshll.u32 %v2503_v0, %v2510_v6  ;;  %v2588_v0 = vld [vmem:[#allocation42 + $0x10] sm:$0xff] }
 0xccc   : > { %v3784_v2 = vpack.c.bf16 %v2589_v1, %v2588_v0 }
 0xccd   : > { %v2513_v18 = vshrl.u32 %v2495_v34, %v2511_v7  ;;  %v2516_v9 = vadd.s32 127, %v2515_v16  ;;  %v2591_v16 = vld [vmem:[#allocation45] sm:$0xff] }
 0xcce   : > { %3785 = vmatpush3.bf16.msra.mxu1 %v3784_v2 }
 0xccf   : > { %v2514_v10 = vor.u32 %v2513_v18, %v2512_v17  ;;  %v2517_v12 = vshll.u32 %v2516_v9, 23  ;;  %3792 = vmatprep.subr.bf16.mxu1 %v5400_v8  ;;  %v2592_v17 = vld [vmem:[#allocation45 + $0x8] sm:$0xff]  ;;  %v2593_v9 = vld [vmem:[#allocation45 + $0x10] sm:$0xff] }
 0xcd0   : > { %v3787_v18 = vpack.c.bf16 %v2592_v17, %v2591_v16 }
 0xcd1   : > { %v2518_v13 = vor.u32 4788187, %v2517_v12  ;;  %v2521_v15 = vcvt.s32.f32 %v2514_v10  ;;  %v2594_v10 = vld [vmem:[#allocation45 + $0x18] sm:$0xff] }
 0xcd2   : > { %v3790_v12 = vpack.c.bf16 %v2594_v10, %v2593_v9 }
 0xcd3   : > { %v2519_v14 = vand.u32 2147483647, %v2518_v13  ;;  %v3517_v13 = vld [vmem:[#allocation43] ss:$0 sm:$0xff] }
 0xcd5   : > { %v2522_v20 = vmul.f32 %v2521_v15, %v2519_v14 }
 0xcd7   : > { %v2523_v27 = vxor.u32 2147483648, %v2522_v20 }
 0xcd9   : > { %v2524_v29 = vsel %vm2441_vm8, %v2523_v27, %v2522_v20 }
 0xcda   : > { %v2527_v23 = vsel %vm2440_vm9, %v6319_v19, %v2524_v29  ;;  %v3778_v19 = vpack.c.bf16 %v2584_v49, %v2583_v47  ;;  %v2596_v29 = vld [vmem:[#allocation48] sm:$0xff] }
 0xcdb   : > { %4241 = vcosq.f32 %v2527_v23 }
 0xcdc   : > { %4243 = vsinq.f32 %v2527_v23  ;;  %3779 = vmatpush3.bf16.msra.mxu0 %v3778_v19  ;;  %v2598_v23 = vld [vmem:[#allocation48 + $0x10] sm:$0xff] }
 0xcdd   : > { %3786 = vmatprep.subr.bf16.mxu0 %v5400_v8  ;;  %v3796_v26 = vpack.c.bf16 %v2599_v25, %v2598_v23 }
 0xce5   : > { %v4242_v30 = vpop.eup %4241 }
 0xce6   : > { %v4244_v31 = vpop.eup %4243  ;;  %v2539_v32 = vxor.u32 2147483648, %v4242_v30 }
 0xce7   : > { %v2536_v33 = vxor.u32 2147483648, %v4244_v31 }
 0xce8   : > { %v2540_v35 = vsel %vm2538_vm10, %v2539_v32, %v4244_v31 }
 0xce9   : > { %v2537_v24 = vsel %vm2535_vm11, %v4242_v30, %v2536_v33 }
 0xcea   : > { %v2541_v37 = vsel %vm2534_vm12, %v2537_v24, %v2540_v35 }
 0xceb   : > { %v2542_v42 = vsel %vm2531_vm14, nan, %v2541_v37 }
 0xcec   : > { %v2549_v38 = vadd.f32 %v3512_v36, %v2542_v42  ;;  %v3521_v36 = vld [vmem:[#allocation49] ss:$0 sm:$0xff] }
 0xcee   : > { %v2552_v45 = vsel %vm1727_vm13, %v2549_v38, 0.0 }
 0xcef   : > { %2553 = vadd.xlane.f32.xlu0 %v2552_v45 }
 0xd7c   : > { %v2554_v39 = vpop.xlane.xlu0 %2553 }
 0xd7d   : > { %v2556_v41 = vmul.f32 0.03125, %v2554_v39 }
 0xd7f   : > { %v2557_v48 = vsub.f32 %v2549_v38, %v2556_v41  ;;  %v3523_v38 = vld [vmem:[#allocation51] ss:$0 sm:$0xff] }
 0xd81   : > { %v2558_v43 = vmul.f32 %v2557_v48, %v2557_v48 }
 0xd83   : > { %v2559_v51 = vsel %vm1727_vm13, %v2558_v43, 0.0 }
 0xd84   : > { %2560 = vadd.xlane.f32.xlu1 %v2559_v51 }
 0xe11   : > { %v2561_v55 = vpop.xlane.xlu1 %2560 }
 0xe12   : > { %v2562_v56 = vmul.f32 0.03125, %v2561_v55 }
 0xe14   : > { %v2563_v57 = vadd.f32 1e-05, %v2562_v56 }
 0xe16   : > { %4245 = vrsqrt.f32 %v2563_v57 }
 0xe20   : > { %v4246_v40 = vpop.eup %4245 }
 0xe21   : > { %v2565_v59 = vmul.f32 %v4246_v40, %v2557_v48  ;;  %v3524_v48 = vld [vmem:[#allocation3] ss:$0 sm:$0xff] }
 0xe23   : > { %v2572_v61 = vmul.f32 %v3513_v58, %v2565_v59 }
 0xe25   : > { %v2579_v62 = vadd.f32 %v3514_v60, %v2572_v61 }
 0xe27   : > { %v2580_v63 = vmul.f32 %v2579_v62, %v2542_v42 }
 0xe29   : > { %3691 = vmatmul.mubr.msk.f32.vlgmr.msra.gmra.mrb[8].mxu0 %vm1727_vm13, %v2580_v63 }
 0xe2a   : > { %3712 = vmatprep.mubr.msk.f32.mxu0 %vm5401_vm0, %v5402_v11  ;;  %3788 = vmatpush3.bf16.msra.mxu0 %v3787_v18 }
 0xe2b   : > { %3789 = vmatprep.subr.bf16.mxu0 %v5400_v8 }
 0xe2e   : > { %3791 = vmatpush3.bf16.msra.mxu0 %v3790_v12 }
 0xefc   : > { %v2678_v5 = vpop.f32.mrb[8].mxu0 }
 0xefd   : > { %v2679_v6 = vadd.f32 %v3515_v4, %v2678_v5  ;;  %v3692_v34 = vpop.f32.mrb[9].mxu0 }
 0xeff   : > { %v2682_v7 = vmax.f32 %v2679_v6, 0.0 }
 0xf01   : > { %3702 = vmatmul.mubr.msk.f32.vlgmr.msra.gmra.mrb[8].mxu1 %vm1727_vm13, %v2682_v7 }
 0xf02   : > { %3723 = vmatprep.mubr.msk.f32.mxu1 %vm5401_vm0, %v5402_v11  ;;  %v2597_v11 = vld [vmem:[#allocation48 + $0x8] sm:$0xff] }
 0xf03   : > { %v3793_v22 = vpack.c.bf16 %v2597_v11, %v2596_v29 }
 0xf05   : > { %3794 = vmatpush3.bf16.msra.mxu1 %v3793_v22 }
 0xf06   : > { %3795 = vmatprep.subr.bf16.mxu1 %v5400_v8 }
 0xf09   : > { %3797 = vmatpush3.bf16.msra.mxu1 %v3796_v26 }
 0xfd4   : > { %v2758_v14 = vpop.f32.mrb[8].mxu1 }
 0xfd5   : > { %v2759_v15 = vadd.f32 %v3517_v13, %v2758_v14  ;;  %v3703_v20 = vpop.f32.mrb[9].mxu1 }
 0xfd7   : > { %v2762_v21 = vmax.f32 %v2759_v15, 0.0 }
 0xfd9   : > { %v2763_v27 = vadd.f32 %v2762_v21, %v2682_v7 }
 0xfdb   : > { %3713 = vmatmul.mubr.msk.f32.vlgmr.msra.gmra.mrb[10].mxu0 %vm1727_vm13, %v2763_v27 }
0x10ae   : > { %v2839_v30 = vpop.f32.mrb[10].mxu0 }
0x10af   : > { %v2840_v31 = vadd.f32 %v3519_v28, %v2839_v30  ;;  %v3714_v32 = vpop.f32.mrb[11].mxu0 }
0x10b1   : > { %v2843_v33 = vmax.f32 %v2840_v31, 0.0 }
0x10b3   : > { %v2844_v35 = vadd.f32 %v2843_v33, %v2763_v27 }
0x10b5   : > { %3724 = vmatmul.mubr.msk.f32.vlgmr.msra.gmra.mrb[10].mxu1 %vm1727_vm13, %v2844_v35 }
0x1188   : > { %v2920_v24 = vpop.f32.mrb[10].mxu1 }
0x1189   : > { %v2921_v37 = vadd.f32 %v3521_v36, %v2920_v24  ;;  %v3725_v42 = vpop.f32.mrb[11].mxu1 }
0x118b   : > { %v2924_v8 = vmax.f32 %v2921_v37, 0.0 }
0x118d   : > { %v2925_v45 = vadd.f32 %v2924_v8, %v2844_v35 }
0x118f   : > { %v2932_v39 = vmul.f32 %v3523_v38, %v2925_v45 }
0x1191   : > { %v2933_v41 = vsel %vm1727_vm13, %v2932_v39, 0.0 }
0x1192   : > { %2934 = vadd.xlane.f32.xlu0 %v2933_v41 }
0x121f   : > { %v2935_v43 = vpop.xlane.xlu0 %2934 }
0x1220   : > { %v2942_v51 = vadd.f32 %v3524_v48, %v2935_v43 }
0x1222   : > { %2945 = vperm.xlu0 %4235, %v2942_v51  }
0x12a1   : > { %v2946_v44 = vpop.permute.xlu0 %2945 }
0x12a2   : > { %v2950_v54 = vrot.slane %v2946_v44, %v6306_v3 }
0x12a4   : > { %3525 = vst.msk [vmem:[%s6314_s1 + $0x1] sm:$0x1] %vm2423_vm15, %v2950_v54 }
0x12a5   : > { %5188 = shalt.err (!%p5185_p3)
}
0x12a6   : > { %s5189_s21 = scalar_lea.hbm %s6372_s14, 32  ;;  %s5193_s10 = scalar_lea.hbm %s6593_s19, 64 }
0x12a7   : > { %p5190_p7 = scmp.ne.s32.totalorder %s6372_s14, %s5189_s21  ;;  %p5194_p11 = scmp.lt.u32.totalorder %s6372_s14, %s6593_s19 }
0x12a8   : > { %p5195_p4 = scmp.lt.u32.totalorder %s5193_s10, %s5189_s21  ;;  %p5197_p8 = scmp.lt.u32.totalorder %s5189_s21, %s6372_s14 }
0x12a9   : > { %p5191_p2 = pnand %p5190_p7, %p6594_p9 }
0x12aa   : > { %p5196_p0 = por %p5195_p4, %p5194_p11 }
0x12ab   : > { %p5192_p5 = pneg %p5191_p2 }
0x12ac   : > { %p5198_p6 = por %p5197_p8, %p5196_p0 }
0x12ae   : > { %p5199_p1 = pnand %p5198_p6, %p5192_p5 }
0x12b0   : > { %5202 = shalt.err (!%p5199_p1)
}
0x12b1   : > { %s5410_s18 = smov 16   ;;  %s5411_s24 = smov 1  }
0x12b2   : > { %3934 = dma.vmem_to_hbm [thread:$0]  (%p6594_p9), %s6374_s13, 32, %s6372_s14, %s2955_s25, %s5410_s18, %s5410_s18, %s5411_s24  }
0x12b3 PF: > { %s2984_s27 = sand.u32 1, %s5305_s0   ;;  %p6595_p12 = scmp.ne.s32.totalorder %s6555_s3, 0 }
0x12b4   : > { %p6596_p13 = scmp.ge.s32.totalorder %s5325_s26, 2  ;;  %s2985_s11 = scalar_lea.sflag [#allocation6], %s2984_s27 }
0x12b6   : > { %p4038_p10 = pnand %p6596_p13, %p6595_p12 }
0x12b8   : > { %5300 = dma.done.wait (!%p4038_p10), %s2985_s11, 32  }
0x12b9   : > { %5302 = vsyncadd (!%p4038_p10), %s2985_s11, 4294967264  ;;  %s109_s26 = sadd.s32 1, %s5325_s26   ;;  %s6597_s0 = smov %s5309_s7 }
0x12ba   : > { %p106_p3 = scmp.ge.s32.totalorder %s109_s26, 4   ;;  %s6598_s7 = smov %s5313_s23 }
0x12bb   : > { %s6599_s23 = smov %s6037_s5  ;;  %s6600_s9 = smov %s5321_s22 }
0x12bc   : > { %s6601_s22 = smov %s6603_s12  ;;  %108 = sbr.rel (!%p106_p3) target bundleno = 97 (0x61), region = 380 }
0x12c3   :  { %2990 = vsyncpa [#allocation5], 1 }
0x12c4   :  { %2992 = vsyncpa [#allocation5 + $0x1], 1 }
0x12c5   :  { %2993 = vsyncpa [#allocation8], 1 }
0x12c6   :  { %2995 = vsyncpa [#allocation8 + $0x1], 1 }
0x12c7   :  { %2996 = vsyncpa [#allocation11], 1 }
0x12c8   :  { %2997 = vsyncpa [#allocation14], 1 }
0x12c9   :  { %2998 = vsyncpa [#allocation17], 1 }
0x12ca   :  { %2999 = vsyncpa [#allocation20], 1 }
0x12cb   :  { %3000 = vsyncpa [#allocation23], 1 }
0x12cc   :  { %3001 = vsyncpa [#allocation26], 1 }
0x12cd   :  { %3002 = vsyncpa [#allocation29], 1 }
0x12ce   :  { %3003 = vsyncpa [#allocation32], 1 }
0x12cf   :  { %3004 = vsyncpa [#allocation35], 1 }
0x12d0   :  { %3005 = vsyncpa [#allocation38], 1 }
0x12d1   :  { %3006 = vsyncpa [#allocation41], 1 }
0x12d2   :  { %3007 = vsyncpa [#allocation44], 1 }
0x12d3   :  { %3008 = vsyncpa [#allocation47], 1 }
0x12d4   :  { %3009 = vsyncpa [#allocation50], 1 }
0x12d5   :  { %3010 = vsyncpa [#allocation53], 1 }
0x12d6   :  { %3011 = vsyncpa [#allocation6], 1 }
0x12d7   :  { %3013 = vsyncpa [#allocation6 + $0x1], 1 }

// kernel: tpu_custom_call.1
= control target key start
LH: loop header
LB: loop body
LE: loop exit
PB: predicated region body
PF: predicated region fallthrough
CT: control target
= control target key end

     0   :  { %s5327_s6 = smov 1   ;;  %s5328_s10 = smov 2   ;;  %s6422_s0 = inlined_call_operand.smem [shape: u32[36], index: -1, kind: input, shape index: {}] }
   0x1   :  { %s5420_s5 = sld [smem:[%s6422_s0]]   ;;  %s5329_s14 = smov 3  }
   0x2   :  { %s5425_s9 = sld [smem:[%s6422_s0 + %s5327_s6]]   ;;  %s5330_s18 = smov 4  }
   0x3   :  { %s5430_s13 = sld [smem:[%s6422_s0 + %s5328_s10]]   ;;  %s5331_s22 = smov 5  }
   0x4   :  { %s5435_s17 = sld [smem:[%s6422_s0 + %s5329_s14]]   ;;  %s5332_s26 = smov 6  }
   0x5   :  { %s5440_s21 = sld [smem:[%s6422_s0 + %s5330_s18]]   ;;  %s5333_s30 = smov 7  }
   0x6   :  { %s5445_s25 = sld [smem:[%s6422_s0 + %s5331_s22]]   ;;  %s5334_s4 = smov 8  }
   0x7   :  { %6480 = sst [smem:[#allocation75_spill]] %s5420_s5  ;;  %s5335_s10 = smov 9  }
   0x8   :  { %6481 = sst [smem:[#allocation76_spill]] %s5425_s9  ;;  %s5336_s15 = smov 10  }
   0x9   :  { %6482 = sst [smem:[#allocation77_spill]] %s5430_s13  ;;  %s5337_s20 = smov 11  }
   0xa   :  { %6483 = sst [smem:[#allocation78_spill]] %s5435_s17  ;;  %s5339_s1 = smov 13  }
   0xb   :  { %6484 = sst [smem:[#allocation79_spill]] %s5440_s21  ;;  %s5340_s7 = smov 14  }
   0xc   :  { %6485 = sst [smem:[#allocation80_spill]] %s5445_s25  ;;  %s5342_s22 = smov 16  }
   0xd   :  { %s5450_s29 = sld [smem:[%s6422_s0 + %s5332_s26]]   ;;  %s5338_s26 = smov 12  }
   0xe   :  { %s5455_s3 = sld [smem:[%s6422_s0 + %s5333_s30]]   ;;  %s5343_s28 = smov 17  }
   0xf   :  { %s5460_s8 = sld [smem:[%s6422_s0 + %s5334_s4]]   ;;  %s5349_s16 = smov 23  }
  0x10   :  { %s5465_s14 = sld [smem:[%s6422_s0 + %s5335_s10]]   ;;  %s5350_s23 = smov 24  }
  0x11   :  { %s5470_s19 = sld [smem:[%s6422_s0 + %s5336_s15]]   ;;  %s5341_s15 = smov 15  }
  0x12   :  { %s5475_s24 = sld [smem:[%s6422_s0 + %s5337_s20]]   ;;  %s5352_s10 = smov 26  }
  0x13   :  { %6486 = sst [smem:[#allocation81_spill]] %s5450_s29 }
  0x14   :  { %6487 = sst [smem:[#allocation82_spill]] %s5455_s3 }
  0x15   :  { %6488 = sst [smem:[#allocation83_spill]] %s5460_s8 }
  0x16   :  { %6489 = sst [smem:[#allocation84_spill]] %s5465_s14 }
  0x17   :  { %6490 = sst [smem:[#allocation85_spill]] %s5470_s19 }
  0x18   :  { %6491 = sst [smem:[#allocation86_spill]] %s5475_s24 }
  0x19   :  { %s5480_s30 = sld [smem:[%s6422_s0 + %s5338_s26]]  }
  0x1a   :  { %s5485_s6 = sld [smem:[%s6422_s0 + %s5339_s1]]   ;;  %s5351_s1 = smov 25  }
  0x1b   :  { %s5490_s12 = sld [smem:[%s6422_s0 + %s5340_s7]]   ;;  %s5344_s7 = smov 18  }
  0x1c   :  { %s5495_s20 = sld [smem:[%s6422_s0 + %s5341_s15]]   ;;  %s5345_s15 = smov 19  }
  0x1d   :  { %s5500_s27 = sld [smem:[%s6422_s0 + %s5342_s22]]   ;;  %s5346_s22 = smov 20  }
  0x1e   :  { %s5505_s4 = sld [smem:[%s6422_s0 + %s5343_s28]]   ;;  %s5347_s28 = smov 21  }
  0x1f   :  { %6492 = sst [smem:[#allocation87_spill]] %s5480_s30 }
  0x20   :  { %6493 = sst [smem:[#allocation88_spill]] %s5485_s6 }
  0x21   :  { %6494 = sst [smem:[#allocation89_spill]] %s5490_s12 }
  0x22   :  { %6495 = sst [smem:[#allocation90_spill]] %s5495_s20 }
  0x23   :  { %6496 = sst [smem:[#allocation91_spill]] %s5500_s27 }
  0x24   :  { %6497 = sst [smem:[#allocation92_spill]] %s5505_s4 }
  0x25   :  { %s5510_s9 = sld [smem:[%s6422_s0 + %s5344_s7]]   ;;  %s5348_s7 = smov 22  }
  0x26   :  { %s5515_s5 = sld [smem:[%s6422_s0 + %s5345_s15]]   ;;  %s5357_s15 = smov 31  }
  0x27   :  { %s5520_s27 = sld [smem:[%s6422_s0 + %s5346_s22]]  }
  0x28   :  { %s5525_s12 = sld [smem:[%s6422_s0 + %s5347_s28]]  }
  0x29   :  { %s5533_s30 = sld [smem:[%s6422_s0 + %s5349_s16]]   ;;  %s5353_s16 = smov 27  }
  0x2a   :  { %s5543_s19 = sld [smem:[%s6422_s0 + %s5351_s1]]   ;;  %s5355_s1 = smov 29  }
  0x2b   :  { %6498 = sst [smem:[#allocation93_spill]] %s5510_s9 }
  0x2c   :  { %6499 = sst [smem:[#allocation94_spill]] %s5515_s5 }
  0x2d   :  { %6500 = sst [smem:[#allocation95_spill]] %s5520_s27 }
  0x2e   :  { %6501 = sst [smem:[#allocation96_spill]] %s5525_s12 }
  0x2f   :  { %s3392_s9 = sld [smem:[%s6422_s0 + %s5348_s7]]  }
  0x30   :  { %6502 = sst [smem:[#allocation97_spill]] %s5533_s30 }
  0x31   :  { %s5538_s27 = sld [smem:[%s6422_s0 + %s5350_s23]]   ;;  %s5354_s23 = smov 28  }
  0x32   :  { %6504 = sst [smem:[#allocation99_spill]] %s5543_s19  ;;  %s5360_s19 = smov 35  }
  0x33   :  { %s5548_s8 = sld [smem:[%s6422_s0 + %s5352_s10]]   ;;  %s5356_s10 = smov 30  }
  0x34   :  { %s5553_s30 = sld [smem:[%s6422_s0 + %s5353_s16]]  }
  0x35   :  { %s5558_s29 = sld [smem:[%s6422_s0 + %s5354_s23]]   ;;  %v76_v0 = vstv %s3392_s9  ;;  %s5358_s9 = smov 33  }
  0x36   :  { %s5563_s7 = sld [smem:[%s6422_s0 + %s5355_s1]]   ;;  %77 = vst [vmem:[#allocation2] sm:$0x1] %v76_v0  ;;  %s5359_s1 = smov 34  }
  0x37   :  { %6503 = sst [smem:[#allocation98_spill]] %s5538_s27 }
  0x38   :  { %s5568_s16 = sld [smem:[%s6422_s0 + %s5356_s10]]  }
  0x39   :  { %6505 = sst [smem:[#allocation100_spill]] %s5548_s8 }
  0x3a   :  { %6506 = sst [smem:[#allocation101_spill]] %s5553_s30  ;;  %s5361_s30 = smov 32  }
  0x3b   :  { %s5573_s23 = sld [smem:[%s6422_s0 + %s5357_s15]]  }
  0x3c   :  { %6507 = sst [smem:[#allocation102_spill]] %s5563_s7 }
  0x3d   :  { %s5578_s28 = sld [smem:[%s6422_s0 + %s5358_s9]]  }
  0x3e   :  { %6508 = sst [smem:[#allocation103_spill]] %s5568_s16 }
  0x3f   :  { %s5583_s21 = sld [smem:[%s6422_s0 + %s5359_s1]]  }
  0x40   :  { %s5588_s16 = sld [smem:[%s6422_s0 + %s5360_s19]]  }
  0x41   :  { %6509 = sst [smem:[#allocation104_spill]] %s5573_s23 }
  0x42   :  { %s3402_s23 = sld [smem:[%s6422_s0 + %s5361_s30]]  }
  0x43   :  { %6510 = sst [smem:[#allocation105_spill]] %s5578_s28 }
  0x45   :  { %6511 = sst [smem:[#allocation106_spill]] %s5583_s21 }
  0x46   :  { %6512 = sst [smem:[#allocation107_spill]] %s5588_s16 }
  0x48   :  { %v78_v1 = vstv %s3402_s23 }
  0x49   :  { %79 = vst [vmem:[#allocation3] sm:$0x1] %v78_v1 }
  0x4a   :  { %80 = vsyncpa [#allocation5], 0 }
  0x4b   :  { %82 = vsyncpa [#allocation5 + $0x1], 0 }
  0x4c   :  { %83 = vsyncpa [#allocation8], 0 }
  0x4d   :  { %85 = vsyncpa [#allocation8 + $0x1], 0 }
  0x4e   :  { %86 = vsyncpa [#allocation11], 0 }
  0x4f   :  { %87 = vsyncpa [#allocation14], 0 }
  0x50   :  { %88 = vsyncpa [#allocation17], 0 }
  0x51   :  { %89 = vsyncpa [#allocation20], 0 }
  0x52   :  { %90 = vsyncpa [#allocation23], 0 }
  0x53   :  { %91 = vsyncpa [#allocation26], 0 }
  0x54   :  { %92 = vsyncpa [#allocation29], 0 }
  0x55   :  { %93 = vsyncpa [#allocation32], 0 }
  0x56   :  { %94 = vsyncpa [#allocation35], 0 }
  0x57   :  { %95 = vsyncpa [#allocation38], 0 }
  0x58   :  { %96 = vsyncpa [#allocation41], 0 }
  0x59   :  { %97 = vsyncpa [#allocation44], 0 }
  0x5a   :  { %98 = vsyncpa [#allocation47], 0 }
  0x5b   :  { %99 = vsyncpa [#allocation50], 0 }
  0x5c   :  { %100 = vsyncpa [#allocation53], 0 }
  0x5d   :  { %101 = vsyncpa [#allocation6], 0 }
  0x5e   :  { %103 = vsyncpa [#allocation6 + $0x1], 0  ;;  %s5593_s0 = smov 0   ;;  %s5595_s7 = smov 0  }
  0x5f   :  { %s5597_s23 = smov 0   ;;  %s5599_s9 = smov 0  }
  0x60   :  { %s5601_s22 = smov 0   ;;  %s5603_s26 = smov 0  }
  0x61 LB: > { %s6513_s28 = sld [smem:[#allocation105_spill]]  ;;  %s6514_s27 = sld [smem:[#allocation98_spill]]  ;;  %s5313_s23 = sphi %s5597_s23, %s6599_s23   ;;  %s5309_s7 = sphi %s5595_s7, %s6598_s7   ;;  %s5305_s0 = sphi %s5593_s0, %s6597_s0   ;;  %s5325_s26 = sphi %s5603_s26, %s109_s26   ;;  %s5321_s22 = sphi %s5601_s22, %s6601_s22   ;;  %s5317_s9 = sphi %s5599_s9, %s6600_s9  }
  0x62   : > { %s6515_s25 = sld [smem:[#allocation80_spill]]  ;;  %s6516_s24 = sld [smem:[#allocation86_spill]] }
  0x63   : > { %s6517_s21 = sld [smem:[#allocation106_spill]]  ;;  %s6519_s14 = sld [smem:[#allocation84_spill]] }
  0x64   : > { %s6518_s20 = sld [smem:[#allocation90_spill]]  ;;  %s6520_s12 = sld [smem:[#allocation96_spill]] }
  0x65   : > { %s6521_s8 = sld [smem:[#allocation100_spill]]  ;;  %s6522_s6 = sld [smem:[#allocation88_spill]] }
  0x66   : > { %s6523_s5 = sld [smem:[#allocation94_spill]]  ;;  %s6524_s4 = sld [smem:[#allocation92_spill]] }
  0x67   : > { %s6525_s3 = sld [smem:[#allocation82_spill]]  ;;  %s6526_s17 = sld [smem:[#allocation78_spill]] }
  0x68   : > { %s6527_s13 = sld [smem:[#allocation77_spill]]  ;;  %6528 = sst [smem:[#allocation108_spill]] %s5317_s9 }
  0x69   : > { %s5624_s1 = sadd.s32 4294967295, %s5325_s26   ;;  %p3408_p0 = scmp.ge.s32.totalorder %s5325_s26, 1 }
  0x6a   : > { %p6441_p1 = scmp.eq.s32.totalorder %s5624_s1, 0  ;;  %p901_p2 = scmp.lt.s32.totalorder %s5325_s26, 3 }
  0x6b   : > { %s5362_s19 = smov [#allocation9]   ;;  %s5363_s11 = smov [#allocation10]  }
  0x6c   : > { %p5629_p3 = pnand %p3408_p0, %p901_p2  ;;  %s914_s10 = sshll.u32 %s5362_s19, 4  ;;  %s915_s10 = int_to_ptr.vmem [resolvable:$true] %s914_s10 }
  0x6d   : > { %s925_s30 = sshll.u32 %s5363_s11, 4  ;;  %s5364_s18 = smov [#allocation13]   ;;  %s5642_s30 = int_to_ptr.vmem [resolvable:$true] %s925_s30 }
  0x6e   : > { %s6529_s2 = scalar_select %p5629_p3, 1, 0 }
  0x6f   : > { %p3936_p5 = pneg %p5629_p3  ;;  %s946_s16 = sshll.u32 %s5364_s18, 4  ;;  %s5644_s16 = int_to_ptr.vmem [resolvable:$true] %s946_s16 }
  0x70   : > { %6530 = sst [smem:[#allocation109_spill]] %s6529_s2  ;;  %s4247_s19 = scalar_lea.hbm %s6527_s13, 32 }
  0x71   : > { %p5638_p6 = pnand %p3936_p5, %p6441_p1  ;;  %p4248_p7 = scmp.ne.s32.totalorder %s6527_s13, %s4247_s19 }
  0x72   : > { %p4254_p11 = scmp.lt.u32.totalorder %s4247_s19, %s6527_s13 }
  0x73   : > { %p5650_p8 = pneg %p5638_p6 }
  0x75   : > { %p4250_p9 = pnand %p5650_p8, %p4248_p7 }
  0x77   : > { %p4251_p10 = pneg %p4250_p9 }
  0x79   : > { %p4256_p12 = pnand %p4254_p11, %p4251_p10 }
  0x7b   : > { %4259 = shalt.err (!%p4256_p12)
}
  0x7c   : > { %s4260_s11 = scalar_lea.vmem %s915_s10, 32  ;;  %p4268_p5 = scmp.lt.s32.totalorder %s915_s10, %s915_s10 }
  0x7d   : > { %p4261_p13 = scmp.ne.s32.totalorder %s915_s10, %s4260_s11  ;;  %p4269_p4 = scmp.lt.s32.totalorder %s4260_s11, %s4260_s11 }
  0x7f   : > { %p4263_p0 = pnand %p4261_p13, %p5650_p8  ;;  %p4270_p1 = por %p4269_p4, %p4268_p5 }
  0x81   : > { %p4264_p2 = pneg %p4263_p0 }
  0x83   : > { %p4271_p3 = pnand %p4270_p1, %p4264_p2 }
  0x85   : > { %4274 = shalt.err (!%p4271_p3)
}
  0x86   : > { %3939 = dma.hbm_to_vmem [thread:$0]  (!%p5638_p6), %s6527_s13, 32, %s915_s10, [#allocation8]  }
  0x87   : > { %s4275_s18 = scalar_lea.hbm %s6526_s17, 32 }
  0x88   : > { %p4276_p7 = scmp.ne.s32.totalorder %s6526_s17, %s4275_s18  ;;  %p4282_p11 = scmp.lt.u32.totalorder %s4275_s18, %s6526_s17 }
  0x8a   : > { %p4278_p9 = pnand %p4276_p7, %p5650_p8 }
  0x8c   : > { %p4279_p10 = pneg %p4278_p9 }
  0x8e   : > { %p4284_p12 = pnand %p4282_p11, %p4279_p10 }
  0x90   : > { %4287 = shalt.err (!%p4284_p12)
}
  0x91   : > { %s4288_s19 = scalar_lea.vmem %s5642_s30, 32  ;;  %p4296_p13 = scmp.lt.s32.totalorder %s5642_s30, %s5642_s30 }
  0x92   : > { %p4289_p1 = scmp.ne.s32.totalorder %s5642_s30, %s4288_s19  ;;  %p4297_p0 = scmp.lt.s32.totalorder %s4288_s19, %s4288_s19 }
  0x94   : > { %p4291_p3 = pnand %p4289_p1, %p5650_p8  ;;  %p4298_p2 = por %p4297_p0, %p4296_p13 }
  0x96   : > { %p4292_p4 = pneg %p4291_p3 }
  0x98   : > { %p4299_p5 = pnand %p4298_p2, %p4292_p4 }
  0x9a   : > { %4302 = shalt.err (!%p4299_p5)
}
  0x9b   : > { %3942 = dma.hbm_to_vmem [thread:$0]  (!%p5638_p6), %s6526_s17, 32, %s5642_s30, [#allocation11]  }
  0x9c   : > { %s4303_s10 = scalar_lea.hbm %s6515_s25, 512 }
  0x9d   : > { %p4304_p7 = scmp.ne.s32.totalorder %s6515_s25, %s4303_s10  ;;  %p4310_p11 = scmp.lt.u32.totalorder %s4303_s10, %s6515_s25 }
  0x9f   : > { %p4306_p9 = pnand %p4304_p7, %p5650_p8 }
  0xa1   : > { %p4307_p10 = pneg %p4306_p9 }
  0xa3   : > { %p4312_p12 = pnand %p4310_p11, %p4307_p10 }
  0xa5   : > { %4315 = shalt.err (!%p4312_p12)
}
  0xa6   : > { %s4316_s11 = scalar_lea.vmem %s5644_s16, 512  ;;  %p4324_p13 = scmp.lt.s32.totalorder %s5644_s16, %s5644_s16 }
  0xa7   : > { %p4317_p1 = scmp.ne.s32.totalorder %s5644_s16, %s4316_s11  ;;  %p4325_p0 = scmp.lt.s32.totalorder %s4316_s11, %s4316_s11 }
  0xa9   : > { %p4319_p3 = pnand %p4317_p1, %p5650_p8  ;;  %p4326_p2 = por %p4325_p0, %p4324_p13 }
  0xab   : > { %p4320_p4 = pneg %p4319_p3 }
  0xad   : > { %p4327_p5 = pnand %p4326_p2, %p4320_p4 }
  0xaf   : > { %4330 = shalt.err (!%p4327_p5)
}
  0xb0   : > { %s6446_s30 = smov 128   ;;  %s6448_s18 = smov 8  }
  0xb1   : > { %3948 = dma.hbm_to_vmem [thread:$0]  (!%p5638_p6), %s6515_s25, 512, %s5644_s16, [#allocation14], %s6446_s30, %s6446_s30, %s6448_s18  }
  0xb2   : > { %s5367_s19 = smov [#allocation16]   ;;  %s5368_s11 = smov [#allocation19]  }
  0xb3   : > { %s970_s10 = sshll.u32 %s5367_s19, 4  ;;  %s994_s13 = sshll.u32 %s5368_s11, 4  ;;  %s971_s10 = int_to_ptr.vmem [resolvable:$true] %s970_s10  ;;  %s995_s13 = int_to_ptr.vmem [resolvable:$true] %s994_s13 }
  0xb4   : > { %s4331_s17 = scalar_lea.hbm %s6525_s3, 512 }
  0xb5   : > { %p4332_p7 = scmp.ne.s32.totalorder %s6525_s3, %s4331_s17  ;;  %p4338_p11 = scmp.lt.u32.totalorder %s4331_s17, %s6525_s3 }
  0xb7   : > { %p4334_p9 = pnand %p4332_p7, %p5650_p8 }
  0xb9   : > { %p4335_p10 = pneg %p4334_p9 }
  0xbb   : > { %p4340_p12 = pnand %p4338_p11, %p4335_p10 }
  0xbd   : > { %4343 = shalt.err (!%p4340_p12)
}
  0xbe   : > { %s4344_s2 = scalar_lea.vmem %s971_s10, 512  ;;  %p4352_p13 = scmp.lt.s32.totalorder %s971_s10, %s971_s10 }
  0xbf   : > { %p4345_p1 = scmp.ne.s32.totalorder %s971_s10, %s4344_s2  ;;  %p4353_p0 = scmp.lt.s32.totalorder %s4344_s2, %s4344_s2 }
  0xc1   : > { %p4347_p3 = pnand %p4345_p1, %p5650_p8  ;;  %p4354_p2 = por %p4353_p0, %p4352_p13 }
  0xc3   : > { %p4348_p4 = pneg %p4347_p3 }
  0xc5   : > { %p4355_p5 = pnand %p4354_p2, %p4348_p4 }
  0xc7   : > { %4358 = shalt.err (!%p4355_p5)
}
  0xc8   : > { %3954 = dma.hbm_to_vmem [thread:$0]  (!%p5638_p6), %s6525_s3, 512, %s971_s10, [#allocation17], %s6446_s30, %s6446_s30, %s6448_s18  }
  0xc9   : > { %s4359_s17 = scalar_lea.hbm %s6519_s14, 512 }
  0xca   : > { %p4360_p7 = scmp.ne.s32.totalorder %s6519_s14, %s4359_s17  ;;  %p4366_p11 = scmp.lt.u32.totalorder %s4359_s17, %s6519_s14 }
  0xcc   : > { %p4362_p9 = pnand %p4360_p7, %p5650_p8 }
  0xce   : > { %p4363_p10 = pneg %p4362_p9 }
  0xd0   : > { %p4368_p12 = pnand %p4366_p11, %p4363_p10 }
  0xd2   : > { %4371 = shalt.err (!%p4368_p12)
}
  0xd3   : > { %s4372_s16 = scalar_lea.vmem %s995_s13, 512  ;;  %p4380_p13 = scmp.lt.s32.totalorder %s995_s13, %s995_s13 }
  0xd4   : > { %p4373_p1 = scmp.ne.s32.totalorder %s995_s13, %s4372_s16  ;;  %p4381_p0 = scmp.lt.s32.totalorder %s4372_s16, %s4372_s16 }
  0xd6   : > { %p4375_p3 = pnand %p4373_p1, %p5650_p8  ;;  %p4382_p2 = por %p4381_p0, %p4380_p13 }
  0xd8   : > { %p4376_p4 = pneg %p4375_p3 }
  0xda   : > { %p4383_p5 = pnand %p4382_p2, %p4376_p4 }
  0xdc   : > { %4386 = shalt.err (!%p4383_p5)
}
  0xdd   : > { %3960 = dma.hbm_to_vmem [thread:$0]  (!%p5638_p6), %s6519_s14, 512, %s995_s13, [#allocation20], %s6446_s30, %s6446_s30, %s6448_s18  }
  0xde   : > { %s5369_s2 = smov [#allocation22]   ;;  %s5370_s10 = smov [#allocation25]  }
  0xdf   : > { %s1018_s19 = sshll.u32 %s5369_s2, 4  ;;  %s1042_s11 = sshll.u32 %s5370_s10, 4  ;;  %s1019_s19 = int_to_ptr.vmem [resolvable:$true] %s1018_s19  ;;  %s1043_s11 = int_to_ptr.vmem [resolvable:$true] %s1042_s11 }
  0xe0   : > { %s4387_s17 = scalar_lea.hbm %s6516_s24, 512 }
  0xe1   : > { %p4388_p7 = scmp.ne.s32.totalorder %s6516_s24, %s4387_s17  ;;  %p4394_p11 = scmp.lt.u32.totalorder %s4387_s17, %s6516_s24 }
  0xe3   : > { %p4390_p9 = pnand %p4388_p7, %p5650_p8 }
  0xe5   : > { %p4391_p10 = pneg %p4390_p9 }
  0xe7   : > { %p4396_p12 = pnand %p4394_p11, %p4391_p10 }
  0xe9   : > { %4399 = shalt.err (!%p4396_p12)
}
  0xea   : > { %s4400_s16 = scalar_lea.vmem %s1019_s19, 512  ;;  %p4408_p13 = scmp.lt.s32.totalorder %s1019_s19, %s1019_s19 }
  0xeb   : > { %p4401_p1 = scmp.ne.s32.totalorder %s1019_s19, %s4400_s16  ;;  %p4409_p0 = scmp.lt.s32.totalorder %s4400_s16, %s4400_s16 }
  0xed   : > { %p4403_p3 = pnand %p4401_p1, %p5650_p8  ;;  %p4410_p2 = por %p4409_p0, %p4408_p13 }
  0xef   : > { %p4404_p4 = pneg %p4403_p3 }
  0xf1   : > { %p4411_p5 = pnand %p4410_p2, %p4404_p4 }
  0xf3   : > { %4414 = shalt.err (!%p4411_p5)
}
  0xf4   : > { %3966 = dma.hbm_to_vmem [thread:$0]  (!%p5638_p6), %s6516_s24, 512, %s1019_s19, [#allocation23], %s6446_s30, %s6446_s30, %s6448_s18  }
  0xf5   : > { %s4415_s13 = scalar_lea.hbm %s6522_s6, 512 }
  0xf6   : > { %p4416_p7 = scmp.ne.s32.totalorder %s6522_s6, %s4415_s13  ;;  %p4422_p11 = scmp.lt.u32.totalorder %s4415_s13, %s6522_s6 }
  0xf8   : > { %p4418_p9 = pnand %p4416_p7, %p5650_p8 }
  0xfa   : > { %p4419_p10 = pneg %p4418_p9 }
  0xfc   : > { %p4424_p12 = pnand %p4422_p11, %p4419_p10 }
  0xfe   : > { %4427 = shalt.err (!%p4424_p12)
}
  0xff   : > { %s4428_s2 = scalar_lea.vmem %s1043_s11, 512  ;;  %p4436_p13 = scmp.lt.s32.totalorder %s1043_s11, %s1043_s11 }
 0x100   : > { %p4429_p1 = scmp.ne.s32.totalorder %s1043_s11, %s4428_s2  ;;  %p4437_p0 = scmp.lt.s32.totalorder %s4428_s2, %s4428_s2 }
 0x102   : > { %p4431_p3 = pnand %p4429_p1, %p5650_p8  ;;  %p4438_p2 = por %p4437_p0, %p4436_p13 }
 0x104   : > { %p4432_p4 = pneg %p4431_p3 }
 0x106   : > { %p4439_p5 = pnand %p4438_p2, %p4432_p4 }
 0x108   : > { %4442 = shalt.err (!%p4439_p5)
}
 0x109   : > { %3972 = dma.hbm_to_vmem [thread:$0]  (!%p5638_p6), %s6522_s6, 512, %s1043_s11, [#allocation26], %s6446_s30, %s6446_s30, %s6448_s18  }
 0x10a   : > { %s5371_s19 = smov [#allocation28]   ;;  %s5372_s17 = smov [#allocation31]  }
 0x10b   : > { %s1066_s10 = sshll.u32 %s5371_s19, 4  ;;  %s1090_s16 = sshll.u32 %s5372_s17, 4  ;;  %s1067_s10 = int_to_ptr.vmem [resolvable:$true] %s1066_s10  ;;  %s1091_s16 = int_to_ptr.vmem [resolvable:$true] %s1090_s16 }
 0x10c   : > { %s4443_s13 = scalar_lea.hbm %s6518_s20, 512 }
 0x10d   : > { %p4444_p7 = scmp.ne.s32.totalorder %s6518_s20, %s4443_s13  ;;  %p4450_p11 = scmp.lt.u32.totalorder %s4443_s13, %s6518_s20 }
 0x10f   : > { %p4446_p9 = pnand %p4444_p7, %p5650_p8 }
 0x111   : > { %p4447_p10 = pneg %p4446_p9 }
 0x113   : > { %p4452_p12 = pnand %p4450_p11, %p4447_p10 }
 0x115   : > { %4455 = shalt.err (!%p4452_p12)
}
 0x116   : > { %s4456_s2 = scalar_lea.vmem %s1067_s10, 512  ;;  %p4464_p13 = scmp.lt.s32.totalorder %s1067_s10, %s1067_s10 }
 0x117   : > { %p4457_p1 = scmp.ne.s32.totalorder %s1067_s10, %s4456_s2  ;;  %p4465_p0 = scmp.lt.s32.totalorder %s4456_s2, %s4456_s2 }
 0x119   : > { %p4459_p3 = pnand %p4457_p1, %p5650_p8  ;;  %p4466_p2 = por %p4465_p0, %p4464_p13 }
 0x11b   : > { %p4460_p4 = pneg %p4459_p3 }
 0x11d   : > { %p4467_p5 = pnand %p4466_p2, %p4460_p4 }
 0x11f   : > { %4470 = shalt.err (!%p4467_p5)
}
 0x120   : > { %3978 = dma.hbm_to_vmem [thread:$0]  (!%p5638_p6), %s6518_s20, 512, %s1067_s10, [#allocation29], %s6446_s30, %s6446_s30, %s6448_s18  }
 0x121   : > { %s4471_s11 = scalar_lea.hbm %s6524_s4, 512 }
 0x122   : > { %p4472_p7 = scmp.ne.s32.totalorder %s6524_s4, %s4471_s11  ;;  %p4478_p11 = scmp.lt.u32.totalorder %s4471_s11, %s6524_s4 }
 0x124   : > { %p4474_p9 = pnand %p4472_p7, %p5650_p8 }
 0x126   : > { %p4475_p10 = pneg %p4474_p9 }
 0x128   : > { %p4480_p12 = pnand %p4478_p11, %p4475_p10 }
 0x12a   : > { %4483 = shalt.err (!%p4480_p12)
}
 0x12b   : > { %s4484_s19 = scalar_lea.vmem %s1091_s16, 512  ;;  %p4492_p13 = scmp.lt.s32.totalorder %s1091_s16, %s1091_s16 }
 0x12c   : > { %p4485_p1 = scmp.ne.s32.totalorder %s1091_s16, %s4484_s19  ;;  %p4493_p0 = scmp.lt.s32.totalorder %s4484_s19, %s4484_s19 }
 0x12e   : > { %p4487_p3 = pnand %p4485_p1, %p5650_p8  ;;  %p4494_p2 = por %p4493_p0, %p4492_p13 }
 0x130   : > { %p4488_p4 = pneg %p4487_p3 }
 0x132   : > { %p4495_p5 = pnand %p4494_p2, %p4488_p4 }
 0x134   : > { %4498 = shalt.err (!%p4495_p5)
}
 0x135   : > { %3984 = dma.hbm_to_vmem [thread:$0]  (!%p5638_p6), %s6524_s4, 512, %s1091_s16, [#allocation32], %s6446_s30, %s6446_s30, %s6448_s18  }
 0x136   : > { %s5373_s10 = smov [#allocation34]   ;;  %s5374_s13 = smov [#allocation37]  }
 0x137   : > { %s1114_s17 = sshll.u32 %s5373_s10, 4  ;;  %s1139_s2 = sshll.u32 %s5374_s13, 4  ;;  %s1115_s17 = int_to_ptr.vmem [resolvable:$true] %s1114_s17  ;;  %s1140_s2 = int_to_ptr.vmem [resolvable:$true] %s1139_s2 }
 0x138   : > { %s4499_s11 = scalar_lea.hbm %s6523_s5, 512 }
 0x139   : > { %p4500_p7 = scmp.ne.s32.totalorder %s6523_s5, %s4499_s11  ;;  %p4506_p11 = scmp.lt.u32.totalorder %s4499_s11, %s6523_s5 }
 0x13b   : > { %p4502_p9 = pnand %p4500_p7, %p5650_p8 }
 0x13d   : > { %p4503_p10 = pneg %p4502_p9 }
 0x13f   : > { %p4508_p12 = pnand %p4506_p11, %p4503_p10 }
 0x141   : > { %4511 = shalt.err (!%p4508_p12)
}
 0x142   : > { %s4512_s19 = scalar_lea.vmem %s1115_s17, 512  ;;  %p4520_p13 = scmp.lt.s32.totalorder %s1115_s17, %s1115_s17 }
 0x143   : > { %p4513_p1 = scmp.ne.s32.totalorder %s1115_s17, %s4512_s19  ;;  %p4521_p0 = scmp.lt.s32.totalorder %s4512_s19, %s4512_s19 }
 0x145   : > { %p4515_p3 = pnand %p4513_p1, %p5650_p8  ;;  %p4522_p2 = por %p4521_p0, %p4520_p13 }
 0x147   : > { %p4516_p4 = pneg %p4515_p3 }
 0x149   : > { %p4523_p5 = pnand %p4522_p2, %p4516_p4 }
 0x14b   : > { %4526 = shalt.err (!%p4523_p5)
}
 0x14c   : > { %3990 = dma.hbm_to_vmem [thread:$0]  (!%p5638_p6), %s6523_s5, 512, %s1115_s17, [#allocation35], %s6446_s30, %s6446_s30, %s6448_s18  }
 0x14d   : > { %s4527_s16 = scalar_lea.hbm %s6520_s12, 16 }
 0x14e   : > { %p4528_p7 = scmp.ne.s32.totalorder %s6520_s12, %s4527_s16  ;;  %p4534_p11 = scmp.lt.u32.totalorder %s4527_s16, %s6520_s12 }
 0x150   : > { %p4530_p9 = pnand %p4528_p7, %p5650_p8 }
 0x152   : > { %p4531_p10 = pneg %p4530_p9 }
 0x154   : > { %p4536_p12 = pnand %p4534_p11, %p4531_p10 }
 0x156   : > { %4539 = shalt.err (!%p4536_p12)
}
 0x157   : > { %s4540_s10 = scalar_lea.vmem %s1140_s2, 16  ;;  %s4547_s13 = scalar_lea.vmem %s1140_s2, 32 }
 0x158   : > { %p4541_p1 = scmp.ne.s32.totalorder %s1140_s2, %s4540_s10  ;;  %p4548_p13 = scmp.lt.s32.totalorder %s1140_s2, %s1140_s2 }
 0x159   : > { %p4549_p0 = scmp.lt.s32.totalorder %s4547_s13, %s4540_s10 }
 0x15a   : > { %p4543_p3 = pnand %p4541_p1, %p5650_p8 }
 0x15b   : > { %p4550_p2 = por %p4549_p0, %p4548_p13 }
 0x15c   : > { %p4544_p4 = pneg %p4543_p3 }
 0x15e   : > { %p4551_p5 = pnand %p4550_p2, %p4544_p4 }
 0x160   : > { %4554 = shalt.err (!%p4551_p5)
}
 0x161   : > { %3996 = dma.hbm_to_vmem [thread:$0]  (!%p5638_p6), %s6520_s12, 16, %s1140_s2, [#allocation38]  }
 0x162   : > { %s5375_s17 = smov [#allocation40]   ;;  %s5376_s19 = smov [#allocation43]  }
 0x163   : > { %s1166_s11 = sshll.u32 %s5375_s17, 4  ;;  %s1190_s16 = sshll.u32 %s5376_s19, 4  ;;  %s1167_s11 = int_to_ptr.vmem [resolvable:$true] %s1166_s11  ;;  %s1191_s16 = int_to_ptr.vmem [resolvable:$true] %s1190_s16 }
 0x164   : > { %s4555_s30 = scalar_lea.hbm %s6514_s27, 16 }
 0x165   : > { %p4556_p7 = scmp.ne.s32.totalorder %s6514_s27, %s4555_s30  ;;  %p4562_p11 = scmp.lt.u32.totalorder %s4555_s30, %s6514_s27 }
 0x167   : > { %p4558_p9 = pnand %p4556_p7, %p5650_p8 }
 0x169   : > { %p4559_p10 = pneg %p4558_p9 }
 0x16b   : > { %p4564_p12 = pnand %p4562_p11, %p4559_p10 }
 0x16d   : > { %4567 = shalt.err (!%p4564_p12)
}
 0x16e   : > { %s4568_s10 = scalar_lea.vmem %s1167_s11, 16  ;;  %s4575_s2 = scalar_lea.vmem %s1167_s11, 32 }
 0x16f   : > { %p4569_p1 = scmp.ne.s32.totalorder %s1167_s11, %s4568_s10  ;;  %p4576_p13 = scmp.lt.s32.totalorder %s1167_s11, %s1167_s11 }
 0x170   : > { %p4577_p0 = scmp.lt.s32.totalorder %s4575_s2, %s4568_s10 }
 0x171   : > { %p4571_p3 = pnand %p4569_p1, %p5650_p8 }
 0x172   : > { %p4578_p2 = por %p4577_p0, %p4576_p13 }
 0x173   : > { %p4572_p4 = pneg %p4571_p3 }
 0x175   : > { %p4579_p5 = pnand %p4578_p2, %p4572_p4 }
 0x177   : > { %4582 = shalt.err (!%p4579_p5)
}
 0x178   : > { %4002 = dma.hbm_to_vmem [thread:$0]  (!%p5638_p6), %s6514_s27, 16, %s1167_s11, [#allocation41]  }
 0x179   : > { %s4583_s30 = scalar_lea.hbm %s6521_s8, 16 }
 0x17a   : > { %p4584_p7 = scmp.ne.s32.totalorder %s6521_s8, %s4583_s30  ;;  %p4590_p11 = scmp.lt.u32.totalorder %s4583_s30, %s6521_s8 }
 0x17c   : > { %p4586_p9 = pnand %p4584_p7, %p5650_p8 }
 0x17e   : > { %p4587_p10 = pneg %p4586_p9 }
 0x180   : > { %p4592_p12 = pnand %p4590_p11, %p4587_p10 }
 0x182   : > { %4595 = shalt.err (!%p4592_p12)
}
 0x183   : > { %s4596_s13 = scalar_lea.vmem %s1191_s16, 16  ;;  %s4603_s17 = scalar_lea.vmem %s1191_s16, 32 }
 0x184   : > { %p4597_p1 = scmp.ne.s32.totalorder %s1191_s16, %s4596_s13  ;;  %p4604_p13 = scmp.lt.s32.totalorder %s1191_s16, %s1191_s16 }
 0x185   : > { %p4605_p0 = scmp.lt.s32.totalorder %s4603_s17, %s4596_s13 }
 0x186   : > { %p4599_p3 = pnand %p4597_p1, %p5650_p8 }
 0x187   : > { %p4606_p2 = por %p4605_p0, %p4604_p13 }
 0x188   : > { %p4600_p4 = pneg %p4599_p3 }
 0x18a   : > { %p4607_p5 = pnand %p4606_p2, %p4600_p4 }
 0x18c   : > { %4610 = shalt.err (!%p4607_p5)
}
 0x18d   : > { %4008 = dma.hbm_to_vmem [thread:$0]  (!%p5638_p6), %s6521_s8, 16, %s1191_s16, [#allocation44]  }
 0x18e   : > { %s5377_s11 = smov [#allocation46]   ;;  %s5378_s10 = smov [#allocation49]  }
 0x18f   : > { %s1214_s19 = sshll.u32 %s5377_s11, 4  ;;  %s1238_s2 = sshll.u32 %s5378_s10, 4  ;;  %s1215_s19 = int_to_ptr.vmem [resolvable:$true] %s1214_s19  ;;  %s1239_s2 = int_to_ptr.vmem [resolvable:$true] %s1238_s2 }
 0x190   : > { %s4611_s30 = scalar_lea.hbm %s5558_s29, 16 }
 0x191   : > { %p4612_p7 = scmp.ne.s32.totalorder %s5558_s29, %s4611_s30  ;;  %p4618_p11 = scmp.lt.u32.totalorder %s4611_s30, %s5558_s29 }
 0x193   : > { %p4614_p9 = pnand %p4612_p7, %p5650_p8 }
 0x195   : > { %p4615_p10 = pneg %p4614_p9 }
 0x197   : > { %p4620_p12 = pnand %p4618_p11, %p4615_p10 }
 0x199   : > { %4623 = shalt.err (!%p4620_p12)
}
 0x19a   : > { %s4624_s13 = scalar_lea.vmem %s1215_s19, 16  ;;  %s4631_s16 = scalar_lea.vmem %s1215_s19, 32 }
 0x19b   : > { %p4625_p1 = scmp.ne.s32.totalorder %s1215_s19, %s4624_s13  ;;  %p4632_p13 = scmp.lt.s32.totalorder %s1215_s19, %s1215_s19 }
 0x19c   : > { %p4633_p0 = scmp.lt.s32.totalorder %s4631_s16, %s4624_s13 }
 0x19d   : > { %p4627_p3 = pnand %p4625_p1, %p5650_p8 }
 0x19e   : > { %p4634_p2 = por %p4633_p0, %p4632_p13 }
 0x19f   : > { %p4628_p4 = pneg %p4627_p3 }
 0x1a1   : > { %p4635_p5 = pnand %p4634_p2, %p4628_p4 }
 0x1a3   : > { %4638 = shalt.err (!%p4635_p5)
}
 0x1a4   : > { %s6533_s17 = sld [smem:[#allocation103_spill]] }
 0x1a5   : > { %4014 = dma.hbm_to_vmem [thread:$0]  (!%p5638_p6), %s5558_s29, 16, %s1215_s19, [#allocation47]  }
 0x1aa   : > { %s4639_s11 = scalar_lea.hbm %s6533_s17, 16 }
 0x1ab   : > { %p4640_p7 = scmp.ne.s32.totalorder %s6533_s17, %s4639_s11  ;;  %p4646_p11 = scmp.lt.u32.totalorder %s4639_s11, %s6533_s17 }
 0x1ad   : > { %p4642_p9 = pnand %p4640_p7, %p5650_p8 }
 0x1af   : > { %p4643_p10 = pneg %p4642_p9 }
 0x1b1   : > { %p4648_p12 = pnand %p4646_p11, %p4643_p10 }
 0x1b3   : > { %4651 = shalt.err (!%p4648_p12)
}
 0x1b4   : > { %s4652_s10 = scalar_lea.vmem %s1239_s2, 16  ;;  %s4659_s30 = scalar_lea.vmem %s1239_s2, 32 }
 0x1b5   : > { %p4653_p1 = scmp.ne.s32.totalorder %s1239_s2, %s4652_s10  ;;  %p4660_p13 = scmp.lt.s32.totalorder %s1239_s2, %s1239_s2 }
 0x1b6   : > { %p4661_p0 = scmp.lt.s32.totalorder %s4659_s30, %s4652_s10 }
 0x1b7   : > { %p4655_p3 = pnand %p4653_p1, %p5650_p8 }
 0x1b8   : > { %p4662_p2 = por %p4661_p0, %p4660_p13 }
 0x1b9   : > { %p4656_p4 = pneg %p4655_p3 }
 0x1bb   : > { %p4663_p5 = pnand %p4662_p2, %p4656_p4 }
 0x1bd   : > { %4666 = shalt.err (!%p4663_p5)
}
 0x1be   : > { %4020 = dma.hbm_to_vmem [thread:$0]  (!%p5638_p6), %s6533_s17, 16, %s1239_s2, [#allocation50]  }
 0x1bf   : > { %s5379_s19 = smov [#allocation52]   ;;  %s5380_s16 = smov [#allocation12]  }
 0x1c0   : > { %s1263_s13 = sshll.u32 %s5379_s19, 4  ;;  %s936_s11 = sshll.u32 %s5380_s16, 4  ;;  %s1264_s13 = int_to_ptr.vmem [resolvable:$true] %s1263_s13  ;;  %s937_s11 = int_to_ptr.vmem [resolvable:$true] %s936_s11 }
 0x1c1   : > { %s4667_s18 = scalar_lea.hbm %s6513_s28, 16 }
 0x1c2   : > { %p4668_p7 = scmp.ne.s32.totalorder %s6513_s28, %s4667_s18  ;;  %p4674_p11 = scmp.lt.u32.totalorder %s4667_s18, %s6513_s28 }
 0x1c4   : > { %p4670_p9 = pnand %p4668_p7, %p5650_p8 }
 0x1c6   : > { %p4671_p10 = pneg %p4670_p9 }
 0x1c8   : > { %p4676_p12 = pnand %p4674_p11, %p4671_p10 }
 0x1ca   : > { %4679 = shalt.err (!%p4676_p12)
}
 0x1cb   : > { %s4680_s10 = scalar_lea.vmem %s1264_s13, 16  ;;  %s4687_s2 = scalar_lea.vmem %s1264_s13, 32 }
 0x1cc   : > { %p4681_p1 = scmp.ne.s32.totalorder %s1264_s13, %s4680_s10  ;;  %p4688_p13 = scmp.lt.s32.totalorder %s1264_s13, %s1264_s13 }
 0x1cd   : > { %p4689_p0 = scmp.lt.s32.totalorder %s4687_s2, %s4680_s10 }
 0x1ce   : > { %p4683_p3 = pnand %p4681_p1, %p5650_p8 }
 0x1cf   : > { %p4690_p2 = por %p4689_p0, %p4688_p13 }
 0x1d0   : > { %p4684_p4 = pneg %p4683_p3 }
 0x1d2   : > { %p4691_p5 = pnand %p4690_p2, %p4684_p4 }
 0x1d4   : > { %4694 = shalt.err (!%p4691_p5)
}
 0x1d5   : > { %s6534_s30 = sld [smem:[#allocation79_spill]] }
 0x1d6   : > { %4026 = dma.hbm_to_vmem [thread:$0]  (!%p5638_p6), %s6513_s28, 16, %s1264_s13, [#allocation53]  }
 0x1db   : > { %s4695_s18 = scalar_lea.hbm %s6534_s30, 16 }
 0x1dc   : > { %p4696_p7 = scmp.ne.s32.totalorder %s6534_s30, %s4695_s18  ;;  %p4702_p11 = scmp.lt.u32.totalorder %s4695_s18, %s6534_s30 }
 0x1de   : > { %p4698_p9 = pnand %p4696_p7, %p5650_p8 }
 0x1e0   : > { %p4699_p10 = pneg %p4698_p9 }
 0x1e2   : > { %p4704_p12 = pnand %p4702_p11, %p4699_p10 }
 0x1e4   : > { %4707 = shalt.err (!%p4704_p12)
}
 0x1e5   : > { %s4708_s19 = scalar_lea.vmem %s937_s11, 16  ;;  %s4715_s16 = scalar_lea.vmem %s937_s11, 32 }
 0x1e6   : > { %p4709_p1 = scmp.ne.s32.totalorder %s937_s11, %s4708_s19  ;;  %p4716_p13 = scmp.lt.s32.totalorder %s937_s11, %s937_s11 }
 0x1e7   : > { %p4717_p0 = scmp.lt.s32.totalorder %s4715_s16, %s4708_s19 }
 0x1e8   : > { %p4711_p3 = pnand %p4709_p1, %p5650_p8 }
 0x1e9   : > { %p4718_p2 = por %p4717_p0, %p4716_p13 }
 0x1ea   : > { %p4712_p4 = pneg %p4711_p3 }
 0x1ec   : > { %p4719_p5 = pnand %p4718_p2, %p4712_p4 }
 0x1ee   : > { %4722 = shalt.err (!%p4719_p5)
}
 0x1ef   : > { %s6535_s13 = sld [smem:[#allocation81_spill]]  ;;  %s5381_s10 = smov [#allocation15]  }
 0x1f0   : > { %3945 = dma.hbm_to_vmem [thread:$0]  (!%p5638_p6), %s6534_s30, 16, %s937_s11, [#allocation11]  }
 0x1f1   : > { %s960_s2 = sshll.u32 %s5381_s10, 4  ;;  %s5382_s18 = smov [#allocation18]   ;;  %s961_s2 = int_to_ptr.vmem [resolvable:$true] %s960_s2 }
 0x1f2   : > { %s984_s3 = sshll.u32 %s5382_s18, 4  ;;  %s985_s3 = int_to_ptr.vmem [resolvable:$true] %s984_s3 }
 0x1f5   : > { %s4723_s4 = scalar_lea.hbm %s6535_s13, 16 }
 0x1f6   : > { %p4724_p7 = scmp.ne.s32.totalorder %s6535_s13, %s4723_s4  ;;  %p4730_p11 = scmp.lt.u32.totalorder %s4723_s4, %s6535_s13 }
 0x1f8   : > { %p4726_p9 = pnand %p4724_p7, %p5650_p8 }
 0x1fa   : > { %p4727_p10 = pneg %p4726_p9 }
 0x1fc   : > { %p4732_p12 = pnand %p4730_p11, %p4727_p10 }
 0x1fe   : > { %4735 = shalt.err (!%p4732_p12)
}
 0x1ff   : > { %s4736_s19 = scalar_lea.vmem %s961_s2, 16  ;;  %s4743_s11 = scalar_lea.vmem %s961_s2, 32 }
 0x200   : > { %p4737_p1 = scmp.ne.s32.totalorder %s961_s2, %s4736_s19  ;;  %p4744_p13 = scmp.lt.s32.totalorder %s961_s2, %s961_s2 }
 0x201   : > { %p4745_p0 = scmp.lt.s32.totalorder %s4743_s11, %s4736_s19 }
 0x202   : > { %p4739_p3 = pnand %p4737_p1, %p5650_p8 }
 0x203   : > { %p4746_p2 = por %p4745_p0, %p4744_p13 }
 0x204   : > { %p4740_p4 = pneg %p4739_p3 }
 0x206   : > { %p4747_p5 = pnand %p4746_p2, %p4740_p4 }
 0x208   : > { %4750 = shalt.err (!%p4747_p5)
}
 0x209   : > { %s6536_s16 = sld [smem:[#allocation83_spill]] }
 0x20a   : > { %3951 = dma.hbm_to_vmem [thread:$0]  (!%p5638_p6), %s6535_s13, 16, %s961_s2, [#allocation14]  }
 0x20f   : > { %s4751_s4 = scalar_lea.hbm %s6536_s16, 16 }
 0x210   : > { %p4752_p7 = scmp.ne.s32.totalorder %s6536_s16, %s4751_s4  ;;  %p4758_p11 = scmp.lt.u32.totalorder %s4751_s4, %s6536_s16 }
 0x212   : > { %p4754_p9 = pnand %p4752_p7, %p5650_p8 }
 0x214   : > { %p4755_p10 = pneg %p4754_p9 }
 0x216   : > { %p4760_p12 = pnand %p4758_p11, %p4755_p10 }
 0x218   : > { %4763 = shalt.err (!%p4760_p12)
}
 0x219   : > { %s4764_s10 = scalar_lea.vmem %s985_s3, 16  ;;  %s4771_s18 = scalar_lea.vmem %s985_s3, 32 }
 0x21a   : > { %p4765_p1 = scmp.ne.s32.totalorder %s985_s3, %s4764_s10  ;;  %p4772_p13 = scmp.lt.s32.totalorder %s985_s3, %s985_s3 }
 0x21b   : > { %p4773_p0 = scmp.lt.s32.totalorder %s4771_s18, %s4764_s10 }
 0x21c   : > { %p4767_p3 = pnand %p4765_p1, %p5650_p8 }
 0x21d   : > { %p4774_p2 = por %p4773_p0, %p4772_p13 }
 0x21e   : > { %p4768_p4 = pneg %p4767_p3 }
 0x220   : > { %p4775_p5 = pnand %p4774_p2, %p4768_p4 }
 0x222   : > { %4778 = shalt.err (!%p4775_p5)
}
 0x223   : > { %s6537_s2 = sld [smem:[#allocation85_spill]]  ;;  %s5383_s19 = smov [#allocation21]  }
 0x224   : > { %3957 = dma.hbm_to_vmem [thread:$0]  (!%p5638_p6), %s6536_s16, 16, %s985_s3, [#allocation17]  }
 0x225   : > { %s1008_s11 = sshll.u32 %s5383_s19, 4  ;;  %s5384_s4 = smov [#allocation24]   ;;  %s1009_s11 = int_to_ptr.vmem [resolvable:$true] %s1008_s11 }
 0x226   : > { %s1032_s5 = sshll.u32 %s5384_s4, 4  ;;  %s1033_s5 = int_to_ptr.vmem [resolvable:$true] %s1032_s5 }
 0x229   : > { %s4779_s6 = scalar_lea.hbm %s6537_s2, 16 }
 0x22a   : > { %p4780_p7 = scmp.ne.s32.totalorder %s6537_s2, %s4779_s6  ;;  %p4786_p11 = scmp.lt.u32.totalorder %s4779_s6, %s6537_s2 }
 0x22c   : > { %p4782_p9 = pnand %p4780_p7, %p5650_p8 }
 0x22e   : > { %p4783_p10 = pneg %p4782_p9 }
 0x230   : > { %p4788_p12 = pnand %p4786_p11, %p4783_p10 }
 0x232   : > { %4791 = shalt.err (!%p4788_p12)
}
 0x233   : > { %s4792_s10 = scalar_lea.vmem %s1009_s11, 16  ;;  %s4799_s3 = scalar_lea.vmem %s1009_s11, 32 }
 0x234   : > { %p4793_p1 = scmp.ne.s32.totalorder %s1009_s11, %s4792_s10  ;;  %p4800_p13 = scmp.lt.s32.totalorder %s1009_s11, %s1009_s11 }
 0x235   : > { %p4801_p0 = scmp.lt.s32.totalorder %s4799_s3, %s4792_s10 }
 0x236   : > { %p4795_p3 = pnand %p4793_p1, %p5650_p8 }
 0x237   : > { %p4802_p2 = por %p4801_p0, %p4800_p13 }
 0x238   : > { %p4796_p4 = pneg %p4795_p3 }
 0x23a   : > { %p4803_p5 = pnand %p4802_p2, %p4796_p4 }
 0x23c   : > { %4806 = shalt.err (!%p4803_p5)
}
 0x23d   : > { %s6538_s18 = sld [smem:[#allocation87_spill]] }
 0x23e   : > { %3963 = dma.hbm_to_vmem [thread:$0]  (!%p5638_p6), %s6537_s2, 16, %s1009_s11, [#allocation20]  }
 0x243   : > { %s4807_s6 = scalar_lea.hbm %s6538_s18, 16 }
 0x244   : > { %p4808_p7 = scmp.ne.s32.totalorder %s6538_s18, %s4807_s6  ;;  %p4814_p11 = scmp.lt.u32.totalorder %s4807_s6, %s6538_s18 }
 0x246   : > { %p4810_p9 = pnand %p4808_p7, %p5650_p8 }
 0x248   : > { %p4811_p10 = pneg %p4810_p9 }
 0x24a   : > { %p4816_p12 = pnand %p4814_p11, %p4811_p10 }
 0x24c   : > { %4819 = shalt.err (!%p4816_p12)
}
 0x24d   : > { %s4820_s19 = scalar_lea.vmem %s1033_s5, 16  ;;  %s4827_s4 = scalar_lea.vmem %s1033_s5, 32 }
 0x24e   : > { %p4821_p1 = scmp.ne.s32.totalorder %s1033_s5, %s4820_s19  ;;  %p4828_p13 = scmp.lt.s32.totalorder %s1033_s5, %s1033_s5 }
 0x24f   : > { %p4829_p0 = scmp.lt.s32.totalorder %s4827_s4, %s4820_s19 }
 0x250   : > { %p4823_p3 = pnand %p4821_p1, %p5650_p8 }
 0x251   : > { %p4830_p2 = por %p4829_p0, %p4828_p13 }
 0x252   : > { %p4824_p4 = pneg %p4823_p3 }
 0x254   : > { %p4831_p5 = pnand %p4830_p2, %p4824_p4 }
 0x256   : > { %4834 = shalt.err (!%p4831_p5)
}
 0x257   : > { %s6539_s11 = sld [smem:[#allocation89_spill]]  ;;  %s5385_s10 = smov [#allocation27]  }
 0x258   : > { %3969 = dma.hbm_to_vmem [thread:$0]  (!%p5638_p6), %s6538_s18, 16, %s1033_s5, [#allocation23]  }
 0x259   : > { %s1056_s3 = sshll.u32 %s5385_s10, 4  ;;  %s5386_s6 = smov [#allocation30]   ;;  %s1057_s3 = int_to_ptr.vmem [resolvable:$true] %s1056_s3 }
 0x25a   : > { %s1080_s2 = sshll.u32 %s5386_s6, 4  ;;  %s1081_s2 = int_to_ptr.vmem [resolvable:$true] %s1080_s2 }
 0x25d   : > { %s4835_s8 = scalar_lea.hbm %s6539_s11, 16 }
 0x25e   : > { %p4836_p7 = scmp.ne.s32.totalorder %s6539_s11, %s4835_s8  ;;  %p4842_p11 = scmp.lt.u32.totalorder %s4835_s8, %s6539_s11 }
 0x260   : > { %p4838_p9 = pnand %p4836_p7, %p5650_p8 }
 0x262   : > { %p4839_p10 = pneg %p4838_p9 }
 0x264   : > { %p4844_p12 = pnand %p4842_p11, %p4839_p10 }
 0x266   : > { %4847 = shalt.err (!%p4844_p12)
}
 0x267   : > { %s4848_s19 = scalar_lea.vmem %s1057_s3, 16  ;;  %s4855_s5 = scalar_lea.vmem %s1057_s3, 32 }
 0x268   : > { %p4849_p1 = scmp.ne.s32.totalorder %s1057_s3, %s4848_s19  ;;  %p4856_p13 = scmp.lt.s32.totalorder %s1057_s3, %s1057_s3 }
 0x269   : > { %p4857_p0 = scmp.lt.s32.totalorder %s4855_s5, %s4848_s19 }
 0x26a   : > { %p4851_p3 = pnand %p4849_p1, %p5650_p8 }
 0x26b   : > { %p4858_p2 = por %p4857_p0, %p4856_p13 }
 0x26c   : > { %p4852_p4 = pneg %p4851_p3 }
 0x26e   : > { %p4859_p5 = pnand %p4858_p2, %p4852_p4 }
 0x270   : > { %4862 = shalt.err (!%p4859_p5)
}
 0x271   : > { %s6540_s4 = sld [smem:[#allocation91_spill]] }
 0x272   : > { %3975 = dma.hbm_to_vmem [thread:$0]  (!%p5638_p6), %s6539_s11, 16, %s1057_s3, [#allocation26]  }
 0x277   : > { %s4863_s8 = scalar_lea.hbm %s6540_s4, 16 }
 0x278   : > { %p4864_p7 = scmp.ne.s32.totalorder %s6540_s4, %s4863_s8  ;;  %p4870_p11 = scmp.lt.u32.totalorder %s4863_s8, %s6540_s4 }
 0x27a   : > { %p4866_p9 = pnand %p4864_p7, %p5650_p8 }
 0x27c   : > { %p4867_p10 = pneg %p4866_p9 }
 0x27e   : > { %p4872_p12 = pnand %p4870_p11, %p4867_p10 }
 0x280   : > { %4875 = shalt.err (!%p4872_p12)
}
 0x281   : > { %s4876_s10 = scalar_lea.vmem %s1081_s2, 16  ;;  %s4883_s6 = scalar_lea.vmem %s1081_s2, 32 }
 0x282   : > { %p4877_p1 = scmp.ne.s32.totalorder %s1081_s2, %s4876_s10  ;;  %p4884_p13 = scmp.lt.s32.totalorder %s1081_s2, %s1081_s2 }
 0x283   : > { %p4885_p0 = scmp.lt.s32.totalorder %s4883_s6, %s4876_s10 }
 0x284   : > { %p4879_p3 = pnand %p4877_p1, %p5650_p8 }
 0x285   : > { %p4886_p2 = por %p4885_p0, %p4884_p13 }
 0x286   : > { %p4880_p4 = pneg %p4879_p3 }
 0x288   : > { %p4887_p5 = pnand %p4886_p2, %p4880_p4 }
 0x28a   : > { %4890 = shalt.err (!%p4887_p5)
}
 0x28b   : > { %s6541_s3 = sld [smem:[#allocation93_spill]]  ;;  %s5387_s19 = smov [#allocation33]  }
 0x28c   : > { %3981 = dma.hbm_to_vmem [thread:$0]  (!%p5638_p6), %s6540_s4, 16, %s1081_s2, [#allocation29]  }
 0x28d   : > { %s1104_s5 = sshll.u32 %s5387_s19, 4  ;;  %s5388_s8 = smov [#allocation36]   ;;  %s1105_s5 = int_to_ptr.vmem [resolvable:$true] %s1104_s5 }
 0x28e   : > { %s1128_s11 = sshll.u32 %s5388_s8, 4  ;;  %s1129_s11 = int_to_ptr.vmem [resolvable:$true] %s1128_s11 }
 0x291   : > { %s4891_s12 = scalar_lea.hbm %s6541_s3, 16 }
 0x292   : > { %p4892_p7 = scmp.ne.s32.totalorder %s6541_s3, %s4891_s12  ;;  %p4898_p11 = scmp.lt.u32.totalorder %s4891_s12, %s6541_s3 }
 0x294   : > { %p4894_p9 = pnand %p4892_p7, %p5650_p8 }
 0x296   : > { %p4895_p10 = pneg %p4894_p9 }
 0x298   : > { %p4900_p12 = pnand %p4898_p11, %p4895_p10 }
 0x29a   : > { %4903 = shalt.err (!%p4900_p12)
}
 0x29b   : > { %s4904_s10 = scalar_lea.vmem %s1105_s5, 16  ;;  %s4911_s2 = scalar_lea.vmem %s1105_s5, 32 }
 0x29c   : > { %p4905_p1 = scmp.ne.s32.totalorder %s1105_s5, %s4904_s10  ;;  %p4912_p13 = scmp.lt.s32.totalorder %s1105_s5, %s1105_s5 }
 0x29d   : > { %p4913_p0 = scmp.lt.s32.totalorder %s4911_s2, %s4904_s10 }
 0x29e   : > { %p4907_p3 = pnand %p4905_p1, %p5650_p8 }
 0x29f   : > { %p4914_p2 = por %p4913_p0, %p4912_p13 }
 0x2a0   : > { %p4908_p4 = pneg %p4907_p3 }
 0x2a2   : > { %p4915_p5 = pnand %p4914_p2, %p4908_p4 }
 0x2a4   : > { %4918 = shalt.err (!%p4915_p5)
}
 0x2a5   : > { %s6542_s6 = sld [smem:[#allocation95_spill]] }
 0x2a6   : > { %3987 = dma.hbm_to_vmem [thread:$0]  (!%p5638_p6), %s6541_s3, 16, %s1105_s5, [#allocation32]  }
 0x2ab   : > { %s4919_s12 = scalar_lea.hbm %s6542_s6, 16 }
 0x2ac   : > { %p4920_p7 = scmp.ne.s32.totalorder %s6542_s6, %s4919_s12  ;;  %p4926_p11 = scmp.lt.u32.totalorder %s4919_s12, %s6542_s6 }
 0x2ae   : > { %p4922_p9 = pnand %p4920_p7, %p5650_p8 }
 0x2b0   : > { %p4923_p10 = pneg %p4922_p9 }
 0x2b2   : > { %p4928_p12 = pnand %p4926_p11, %p4923_p10 }
 0x2b4   : > { %4931 = shalt.err (!%p4928_p12)
}
 0x2b5   : > { %s4932_s19 = scalar_lea.vmem %s1129_s11, 16  ;;  %s4939_s8 = scalar_lea.vmem %s1129_s11, 32 }
 0x2b6   : > { %p4933_p1 = scmp.ne.s32.totalorder %s1129_s11, %s4932_s19  ;;  %p4940_p13 = scmp.lt.s32.totalorder %s1129_s11, %s1129_s11 }
 0x2b7   : > { %p4941_p0 = scmp.lt.s32.totalorder %s4939_s8, %s4932_s19 }
 0x2b8   : > { %p4935_p3 = pnand %p4933_p1, %p5650_p8 }
 0x2b9   : > { %p4942_p2 = por %p4941_p0, %p4940_p13 }
 0x2ba   : > { %p4936_p4 = pneg %p4935_p3 }
 0x2bc   : > { %p4943_p5 = pnand %p4942_p2, %p4936_p4 }
 0x2be   : > { %4946 = shalt.err (!%p4943_p5)
}
 0x2bf   : > { %s6543_s5 = sld [smem:[#allocation97_spill]]  ;;  %s5389_s10 = smov [#allocation39]  }
 0x2c0   : > { %3993 = dma.hbm_to_vmem [thread:$0]  (!%p5638_p6), %s6542_s6, 16, %s1129_s11, [#allocation35]  }
 0x2c1   : > { %s1152_s2 = sshll.u32 %s5389_s10, 4  ;;  %s5390_s12 = smov [#allocation42]   ;;  %s1153_s2 = int_to_ptr.vmem [resolvable:$true] %s1152_s2 }
 0x2c2   : > { %s1176_s3 = sshll.u32 %s5390_s12, 4  ;;  %s1177_s3 = int_to_ptr.vmem [resolvable:$true] %s1176_s3 }
 0x2c5   : > { %s4947_s4 = scalar_lea.hbm %s6543_s5, 512 }
 0x2c6   : > { %p4948_p7 = scmp.ne.s32.totalorder %s6543_s5, %s4947_s4  ;;  %p4954_p11 = scmp.lt.u32.totalorder %s4947_s4, %s6543_s5 }
 0x2c8   : > { %p4950_p9 = pnand %p4948_p7, %p5650_p8 }
 0x2ca   : > { %p4951_p10 = pneg %p4950_p9 }
 0x2cc   : > { %p4956_p12 = pnand %p4954_p11, %p4951_p10 }
 0x2ce   : > { %4959 = shalt.err (!%p4956_p12)
}
 0x2cf   : > { %s4960_s19 = scalar_lea.vmem %s1153_s2, 512  ;;  %p4968_p13 = scmp.lt.s32.totalorder %s1153_s2, %s1153_s2 }
 0x2d0   : > { %p4961_p1 = scmp.ne.s32.totalorder %s1153_s2, %s4960_s19  ;;  %p4969_p0 = scmp.lt.s32.totalorder %s4960_s19, %s4960_s19 }
 0x2d2   : > { %p4963_p3 = pnand %p4961_p1, %p5650_p8  ;;  %p4970_p2 = por %p4969_p0, %p4968_p13 }
 0x2d4   : > { %p4964_p4 = pneg %p4963_p3 }
 0x2d6   : > { %p4971_p5 = pnand %p4970_p2, %p4964_p4 }
 0x2d8   : > { %4974 = shalt.err (!%p4971_p5)
}
 0x2d9   : > { %s6544_s11 = smov 8   ;;  %s6545_s8 = smov 128  }
 0x2da   : > { %s6546_s4 = sld [smem:[#allocation99_spill]] }
 0x2db   : > { %3999 = dma.hbm_to_vmem [thread:$0]  (!%p5638_p6), %s6543_s5, 512, %s1153_s2, [#allocation38], %s6545_s8, %s6545_s8, %s6544_s11  }
 0x2e0   : > { %s4975_s10 = scalar_lea.hbm %s6546_s4, 512 }
 0x2e1   : > { %p4976_p7 = scmp.ne.s32.totalorder %s6546_s4, %s4975_s10  ;;  %p4982_p11 = scmp.lt.u32.totalorder %s4975_s10, %s6546_s4 }
 0x2e3   : > { %p4978_p9 = pnand %p4976_p7, %p5650_p8 }
 0x2e5   : > { %p4979_p10 = pneg %p4978_p9 }
 0x2e7   : > { %p4984_p12 = pnand %p4982_p11, %p4979_p10 }
 0x2e9   : > { %4987 = shalt.err (!%p4984_p12)
}
 0x2ea   : > { %s4988_s12 = scalar_lea.vmem %s1177_s3, 512  ;;  %p4996_p13 = scmp.lt.s32.totalorder %s1177_s3, %s1177_s3 }
 0x2eb   : > { %p4989_p1 = scmp.ne.s32.totalorder %s1177_s3, %s4988_s12  ;;  %p4997_p0 = scmp.lt.s32.totalorder %s4988_s12, %s4988_s12 }
 0x2ed   : > { %p4991_p3 = pnand %p4989_p1, %p5650_p8  ;;  %p4998_p2 = por %p4997_p0, %p4996_p13 }
 0x2ef   : > { %p4992_p4 = pneg %p4991_p3 }
 0x2f1   : > { %p4999_p5 = pnand %p4998_p2, %p4992_p4 }
 0x2f3   : > { %5002 = shalt.err (!%p4999_p5)
}
 0x2f4   : > { %s6547_s2 = sld [smem:[#allocation101_spill]]  ;;  %s5391_s19 = smov [#allocation45]  }
 0x2f5   : > { %4005 = dma.hbm_to_vmem [thread:$0]  (!%p5638_p6), %s6546_s4, 512, %s1177_s3, [#allocation41], %s6545_s8, %s6545_s8, %s6544_s11  }
 0x2f6   : > { %s1200_s10 = sshll.u32 %s5391_s19, 4  ;;  %s5392_s5 = smov [#allocation48]   ;;  %s1201_s10 = int_to_ptr.vmem [resolvable:$true] %s1200_s10 }
 0x2f7   : > { %s1224_s6 = sshll.u32 %s5392_s5, 4  ;;  %s1225_s6 = int_to_ptr.vmem [resolvable:$true] %s1224_s6 }
 0x2fa   : > { %s5003_s12 = scalar_lea.hbm %s6547_s2, 512 }
 0x2fb   : > { %p5004_p7 = scmp.ne.s32.totalorder %s6547_s2, %s5003_s12  ;;  %p5010_p11 = scmp.lt.u32.totalorder %s5003_s12, %s6547_s2 }
 0x2fd   : > { %p5006_p9 = pnand %p5004_p7, %p5650_p8 }
 0x2ff   : > { %p5007_p10 = pneg %p5006_p9 }
 0x301   : > { %p5012_p12 = pnand %p5010_p11, %p5007_p10 }
 0x303   : > { %5015 = shalt.err (!%p5012_p12)
}
 0x304   : > { %s5016_s13 = scalar_lea.vmem %s1201_s10, 512  ;;  %p5024_p13 = scmp.lt.s32.totalorder %s1201_s10, %s1201_s10 }
 0x305   : > { %p5017_p1 = scmp.ne.s32.totalorder %s1201_s10, %s5016_s13  ;;  %p5025_p0 = scmp.lt.s32.totalorder %s5016_s13, %s5016_s13 }
 0x307   : > { %p5019_p3 = pnand %p5017_p1, %p5650_p8  ;;  %p5026_p2 = por %p5025_p0, %p5024_p13 }
 0x309   : > { %p5020_p4 = pneg %p5019_p3 }
 0x30b   : > { %p5027_p5 = pnand %p5026_p2, %p5020_p4 }
 0x30d   : > { %5030 = shalt.err (!%p5027_p5)
}
 0x30e   : > { %s6548_s3 = sld [smem:[#allocation102_spill]] }
 0x30f   : > { %4011 = dma.hbm_to_vmem [thread:$0]  (!%p5638_p6), %s6547_s2, 512, %s1201_s10, [#allocation44], %s6545_s8, %s6545_s8, %s6544_s11  }
 0x314   : > { %s5031_s5 = scalar_lea.hbm %s6548_s3, 512 }
 0x315   : > { %p5032_p7 = scmp.ne.s32.totalorder %s6548_s3, %s5031_s5  ;;  %p5038_p11 = scmp.lt.u32.totalorder %s5031_s5, %s6548_s3 }
 0x317   : > { %p5034_p9 = pnand %p5032_p7, %p5650_p8 }
 0x319   : > { %p5035_p10 = pneg %p5034_p9 }
 0x31b   : > { %p5040_p12 = pnand %p5038_p11, %p5035_p10 }
 0x31d   : > { %5043 = shalt.err (!%p5040_p12)
}
 0x31e   : > { %s5044_s13 = scalar_lea.vmem %s1225_s6, 512  ;;  %p5052_p13 = scmp.lt.s32.totalorder %s1225_s6, %s1225_s6 }
 0x31f   : > { %p5045_p1 = scmp.ne.s32.totalorder %s1225_s6, %s5044_s13  ;;  %p5053_p0 = scmp.lt.s32.totalorder %s5044_s13, %s5044_s13 }
 0x321   : > { %p5047_p3 = pnand %p5045_p1, %p5650_p8  ;;  %p5054_p2 = por %p5053_p0, %p5052_p13 }
 0x323   : > { %p5048_p4 = pneg %p5047_p3 }
 0x325   : > { %p5055_p5 = pnand %p5054_p2, %p5048_p4 }
 0x327   : > { %5058 = shalt.err (!%p5055_p5)
}
 0x328   : > { %s6549_s19 = sld [smem:[#allocation104_spill]]  ;;  %s5393_s10 = smov [#allocation51]  }
 0x329   : > { %4017 = dma.hbm_to_vmem [thread:$0]  (!%p5638_p6), %s6548_s3, 512, %s1225_s6, [#allocation47], %s6545_s8, %s6545_s8, %s6544_s11  }
 0x32a   : > { %s1249_s12 = sshll.u32 %s5393_s10, 4  ;;  %s5394_s5 = smov [#allocation54]   ;;  %s1250_s12 = int_to_ptr.vmem [resolvable:$true] %s1249_s12 }
 0x32b   : > { %s1274_s2 = sshll.u32 %s5394_s5, 4  ;;  %s1275_s2 = int_to_ptr.vmem [resolvable:$true] %s1274_s2 }
 0x32e   : > { %s5059_s13 = scalar_lea.hbm %s6549_s19, 16 }
 0x32f   : > { %p5060_p7 = scmp.ne.s32.totalorder %s6549_s19, %s5059_s13  ;;  %p5066_p11 = scmp.lt.u32.totalorder %s5059_s13, %s6549_s19 }
 0x331   : > { %p5062_p9 = pnand %p5060_p7, %p5650_p8 }
 0x333   : > { %p5063_p10 = pneg %p5062_p9 }
 0x335   : > { %p5068_p12 = pnand %p5066_p11, %p5063_p10 }
 0x337   : > { %5071 = shalt.err (!%p5068_p12)
}
 0x338   : > { %s5072_s4 = scalar_lea.vmem %s1250_s12, 16  ;;  %s5079_s6 = scalar_lea.vmem %s1250_s12, 32 }
 0x339   : > { %p5073_p1 = scmp.ne.s32.totalorder %s1250_s12, %s5072_s4  ;;  %p5080_p13 = scmp.lt.s32.totalorder %s1250_s12, %s1250_s12 }
 0x33a   : > { %p5081_p0 = scmp.lt.s32.totalorder %s5079_s6, %s5072_s4 }
 0x33b   : > { %p5075_p3 = pnand %p5073_p1, %p5650_p8 }
 0x33c   : > { %p5082_p2 = por %p5081_p0, %p5080_p13 }
 0x33d   : > { %p5076_p4 = pneg %p5075_p3 }
 0x33f   : > { %p5083_p5 = pnand %p5082_p2, %p5076_p4 }
 0x341   : > { %5086 = shalt.err (!%p5083_p5)
}
 0x342   : > { %4023 = dma.hbm_to_vmem [thread:$0]  (!%p5638_p6), %s6549_s19, 16, %s1250_s12, [#allocation50]  }
 0x343   : > { %s5087_s10 = scalar_lea.hbm %s6517_s21, 16 }
 0x344   : > { %p5088_p7 = scmp.ne.s32.totalorder %s6517_s21, %s5087_s10  ;;  %p5094_p11 = scmp.lt.u32.totalorder %s5087_s10, %s6517_s21 }
 0x346   : > { %p5090_p9 = pnand %p5088_p7, %p5650_p8 }
 0x348   : > { %p5091_p10 = pneg %p5090_p9 }
 0x34a   : > { %p5096_p12 = pnand %p5094_p11, %p5091_p10 }
 0x34c   : > { %5099 = shalt.err (!%p5096_p12)
}
 0x34d   : > { %s5100_s4 = scalar_lea.vmem %s1275_s2, 16  ;;  %s5107_s5 = scalar_lea.vmem %s1275_s2, 32 }
 0x34e   : > { %p5101_p1 = scmp.ne.s32.totalorder %s1275_s2, %s5100_s4  ;;  %p5108_p13 = scmp.lt.s32.totalorder %s1275_s2, %s1275_s2 }
 0x34f   : > { %p5109_p0 = scmp.lt.s32.totalorder %s5107_s5, %s5100_s4 }
 0x350   : > { %p5103_p3 = pnand %p5101_p1, %p5650_p8 }
 0x351   : > { %p5110_p2 = por %p5109_p0, %p5108_p13 }
 0x352   : > { %p5104_p4 = pneg %p5103_p3 }
 0x354   : > { %p5111_p5 = pnand %p5110_p2, %p5104_p4 }
 0x356   : > { %5114 = shalt.err (!%p5111_p5)
}
 0x357   : > { %4029 = dma.hbm_to_vmem [thread:$0]  (!%p5638_p6), %s6517_s21, 16, %s1275_s2, [#allocation53]  }
 0x358   : > { %s3407_s9 = sadd.s32 4294967294, %s5325_s26   ;;  %s121_s12 = sadd.s32 1, %s5321_s22 }
 0x359   : > { %s128_s13 = sadd.s32 1, %s5313_s23  ;;  %p123_p8 = scmp.ge.s32.totalorder %s121_s12, 2 }
 0x35a   : > { %p135_p7 = scmp.ne.s32.totalorder %s5313_s23, %s5309_s7  ;;  %p136_p9 = scmp.eq.s32.totalorder %s5325_s26, 0 }
 0x35b   : > { %s6550_s15 = sld [smem:[#allocation75_spill]]  ;;  %p141_p10 = scmp.ne.s32.totalorder %s5309_s7, %s5305_s0 }
 0x35c   : > { %s6603_s12 = smov (%p123_p8, %s121_s12), 0  ;;  %p6018_p11 = por %p136_p9, %p135_p7 }
 0x35d   : > { %p6552_p6 = scmp.eq.s32.totalorder %s5624_s1, 0  ;;  %s125_s10 = ssub.s32 %s5321_s22, %s6603_s12 }
 0x35e   : > { %p888_p1 = scmp.eq.s32.totalorder %s5624_s1, 1  ;;  %p126_p3 = scmp.eq.s32.totalorder %s125_s10, 0 }
 0x35f   : > { %p6024_p12 = por %p6552_p6, %p141_p10  ;;  %p894_p4 = scmp.eq.s32.totalorder %s3407_s9, 1 }
 0x360   : > { %p6031_p13 = por %p888_p1, %p135_p7  ;;  %p4072_p0 = scmp.lt.s32.totalorder %s5325_s26, 2 }
 0x361   : > { %s6553_s2 = scalar_select %p6024_p12, 1, 0 }
 0x362   : > { %s6554_s4 = scalar_select %p6031_p13, 1, 0 }
 0x363   : > { %s6037_s5 = scalar_select %p126_p3, %s5313_s23, %s128_s13  }
 0x364   : > { %p6039_p2 = por %p894_p4, %p141_p10  ;;  %s6044_s14 = sand.u32 1, %s5313_s23  }
 0x365   : > { %s3441_s16 = sshll.u32 %s6044_s14, 1  ;;  %s3531_s10 = sshll.u32 %s5321_s22, 5 }
 0x366   : > { %s6555_s3 = scalar_select %p6039_p2, 1, 0 }
 0x367   : > { %s6049_s9 = scalar_lea.hbm %s6550_s15, %s3531_s10  ;;  %s1289_s13 = scalar_lea.vmem [#allocation4], %s3441_s16 }
 0x368   : > { %s1296_s17 = sshll.u32 %s1289_s13, 4  ;;  %p6055_p5 = pnand %p4072_p0, %p6018_p11  ;;  %s6051_s17 = int_to_ptr.vmem [resolvable:$true] %s1296_s17 }
 0x369   : > { %s1286_s20 = scalar_lea.sflag [#allocation5], %s6044_s14  ;;  %s5115_s21 = scalar_lea.hbm %s6049_s9, 32 }
 0x36a   : > { %p5116_p8 = scmp.ne.s32.totalorder %s6049_s9, %s5115_s21  ;;  %p5117_p7 = pneg %p6055_p5 }
 0x36b   : > { %s5120_s16 = scalar_lea.hbm %s6550_s15, 64  ;;  %p5121_p6 = scmp.lt.u32.totalorder %s6049_s9, %s6550_s15 }
 0x36c   : > { %p5118_p9 = pnand %p5117_p7, %p5116_p8  ;;  %p5122_p1 = scmp.lt.u32.totalorder %s5120_s16, %s5115_s21 }
 0x36d   : > { %p5124_p11 = scmp.lt.u32.totalorder %s5115_s21, %s6049_s9 }
 0x36e   : > { %p5119_p10 = pneg %p5118_p9  ;;  %p5123_p3 = por %p5122_p1, %p5121_p6 }
 0x370   : > { %p5125_p4 = por %p5124_p11, %p5123_p3 }
 0x372   : > { %p5126_p0 = pnand %p5125_p4, %p5119_p10 }
 0x374   : > { %5129 = shalt.err (!%p5126_p0)
}
 0x375   : > { %s5130_s6 = scalar_lea.vmem %s6051_s17, 32  ;;  %s5395_s10 = smov [#allocation4]  }
 0x376   : > { %p5131_p2 = scmp.ne.s32.totalorder %s6051_s17, %s5130_s6  ;;  %s5135_s13 = sshll.u32 %s5395_s10, 4  ;;  %s5136_s13 = int_to_ptr.vmem [resolvable:$false] %s5135_s13 }
 0x377   : > { %s5137_s19 = scalar_lea.vmem %s5136_s13, 64  ;;  %p5138_p8 = scmp.lt.s32.totalorder %s6051_s17, %s5136_s13 }
 0x378   : > { %p5133_p13 = pnand %p5131_p2, %p5117_p7  ;;  %p5139_p9 = scmp.lt.s32.totalorder %s5137_s19, %s5130_s6 }
 0x37a   : > { %p5134_p12 = pneg %p5133_p13  ;;  %p5140_p6 = por %p5139_p9, %p5138_p8 }
 0x37c   : > { %p5141_p1 = pnand %p5140_p6, %p5134_p12 }
 0x37e   : > { %5144 = shalt.err (!%p5141_p1)
}
 0x37f   : > { %s5396_s21 = smov 16   ;;  %s6557_s16 = sld [smem:[#allocation76_spill]] }
 0x380   : > { %s5397_s10 = smov 1   ;;  %s3444_s19 = sshll.u32 %s6044_s14, 4 }
 0x381   : > { %4033 = dma.hbm_to_vmem [thread:$0]  (!%p6055_p5), %s6049_s9, 32, %s6051_s17, %s1286_s20, %s5396_s21, %s5396_s21, %s5397_s10  }
 0x382   : > { %s3532_s6 = sshll.u32 %s5321_s22, 8  ;;  %s1310_s15 = scalar_lea.vmem [#allocation7], %s3444_s19 }
 0x383   : > { %s1318_s24 = sshll.u32 %s1310_s15, 4  ;;  %s6558_s25 = sand.u32 1, %s5325_s26   ;;  %s6089_s24 = int_to_ptr.vmem [resolvable:$true] %s1318_s24 }
 0x384   : > { %s6093_s27 = scalar_lea.sflag [#allocation8], %s6558_s25 }
 0x385   : > { %s6087_s13 = scalar_lea.hbm %s6557_s16, %s3532_s6  ;;  %s5150_s14 = scalar_lea.hbm %s6557_s16, 512 }
 0x386   : > { %s5145_s28 = scalar_lea.hbm %s6087_s13, 256  ;;  %p5151_p10 = scmp.lt.u32.totalorder %s6087_s13, %s6557_s16 }
 0x387   : > { %p5146_p12 = scmp.ne.s32.totalorder %s6087_s13, %s5145_s28  ;;  %p5152_p3 = scmp.lt.u32.totalorder %s5150_s14, %s5145_s28 }
 0x388   : > { %p5154_p4 = scmp.lt.u32.totalorder %s5145_s28, %s6087_s13 }
 0x389   : > { %p5148_p13 = pnand %p5146_p12, %p5117_p7  ;;  %p5153_p11 = por %p5152_p3, %p5151_p10 }
 0x38b   : > { %p5149_p2 = pneg %p5148_p13  ;;  %p5155_p0 = por %p5154_p4, %p5153_p11 }
 0x38d   : > { %p5156_p8 = pnand %p5155_p0, %p5149_p2 }
 0x38f   : > { %5159 = shalt.err (!%p5156_p8)
}
 0x390   : > { %s5160_s25 = scalar_lea.vmem %s6089_s24, 256  ;;  %s5398_s20 = smov [#allocation7]  }
 0x391   : > { %p5161_p9 = scmp.ne.s32.totalorder %s6089_s24, %s5160_s25  ;;  %s5165_s17 = sshll.u32 %s5398_s20, 4  ;;  %s5166_s17 = int_to_ptr.vmem [resolvable:$false] %s5165_s17 }
 0x392   : > { %s5167_s15 = scalar_lea.vmem %s5166_s17, 512  ;;  %p5168_p12 = scmp.lt.s32.totalorder %s6089_s24, %s5166_s17 }
 0x393   : > { %p5163_p6 = pnand %p5161_p9, %p5117_p7  ;;  %p5169_p13 = scmp.lt.s32.totalorder %s5167_s15, %s5160_s25 }
 0x395   : > { %p5164_p1 = pneg %p5163_p6  ;;  %p5170_p10 = por %p5169_p13, %p5168_p12 }
 0x397   : > { %p5171_p3 = pnand %p5170_p10, %p5164_p1 }
 0x399   : > { %5174 = shalt.err (!%p5171_p3)
}
 0x39a   : > { %4036 = dma.hbm_to_vmem [thread:$0]  (!%p6055_p5), %s6087_s13, 256, %s6089_s24, %s6093_s27, %s6545_s8, %s6545_s8, %s6544_s11  }
 0x39b   : > { %s6559_s28 = sld [smem:[#allocation109_spill]] }
 0x3a1   : > { %p6560_p7 = scmp.ne.s32.totalorder %s6559_s28, 0 }
 0x3a2   : > { %s6121_s9 = sand.u32 (!%p6560_p7), 1, %s5309_s7   ;;  %p6561_p2 = scmp.ne.s32.totalorder (!%p6560_p7), %s6553_s2, 0 }
 0x3a3   : > { %1330 = sbr.rel (%p6560_p7) target bundleno = 4787 (0x12b3), region = 160  ;;  %s3448_s21 = sshll.u32 (!%p6560_p7), %s6121_s9, 1 }
 0x3a4   : > { %s1333_s10 = scalar_lea.sflag (!%p6560_p7), [#allocation5], %s6121_s9  ;;  %s6127_s18 = scalar_lea.vmem (!%p6560_p7), [#allocation4], %s3448_s21 }
 0x3aa   : > { %5228 = dma.done.wait (%p6561_p2), %s1333_s10, 32  }
 0x3ab   : > { %5230 = vsyncadd (%p6561_p2), %s1333_s10, 4294967264  ;;  %s1341_s24 = sand.u32 1, %s5624_s1   ;;  %s3449_s27 = sshll.u32 %s6121_s9, 4 }
 0x3ac   : > { %s1342_s11 = scalar_lea.sflag [#allocation8], %s1341_s24  ;;  %s6135_s8 = scalar_lea.vmem [#allocation7], %s3449_s27 }
 0x3ad   : > { %5232 = dma.done.wait (%p6561_p2), %s1342_s11, 256  }
 0x3ae   : > { %5234 = vsyncadd (%p6561_p2), %s1342_s11, 4294967040  ;;  %p6562_p5 = scmp.eq.s32.totalorder %s5624_s1, 0 }
 0x3b0   : > { %5236 = dma.done.wait (%p6562_p5), [#allocation8], 32   ;;  %p6563_p11 = pmov %p6562_p5 }
 0x3b1   : > { %p6564_p4 = pmov %p6562_p5 }
 0x3b2   : > { %5238 = vsyncadd (%p6563_p11), [#allocation8], 4294967264 }
 0x3b3   : > { %5240 = dma.done.wait (%p6564_p4), [#allocation11], 48   ;;  %p6565_p0 = pmov %p6564_p4 }
 0x3b5   : > { %5242 = vsyncadd (%p6565_p0), [#allocation11], 4294967248  ;;  %p6566_p8 = pmov %p6565_p0 }
 0x3b6   : > { %p6567_p9 = pmov %p6565_p0 }
 0x3b7   : > { %5244 = dma.done.wait (%p6566_p8), [#allocation14], 528  }
 0x3b8   : > { %5246 = vsyncadd (%p6567_p9), [#allocation14], 4294966768  ;;  %p6568_p6 = pmov %p6565_p0 }
 0x3b9   : > { %p6569_p1 = pmov %p6565_p0 }
 0x3ba   : > { %5248 = dma.done.wait (%p6568_p6), [#allocation17], 528  }
 0x3bb   : > { %5250 = vsyncadd (%p6569_p1), [#allocation17], 4294966768  ;;  %p6570_p12 = pmov %p6565_p0 }
 0x3bc   : > { %p6571_p13 = pmov %p6565_p0 }
 0x3bd   : > { %5252 = dma.done.wait (%p6570_p12), [#allocation20], 528  }
 0x3be   : > { %5254 = vsyncadd (%p6571_p13), [#allocation20], 4294966768  ;;  %p6572_p10 = pmov %p6565_p0 }
 0x3bf   : > { %p6573_p3 = pmov %p6565_p0 }
 0x3c0   : > { %5256 = dma.done.wait (%p6572_p10), [#allocation23], 528  }
 0x3c1   : > { %5258 = vsyncadd (%p6573_p3), [#allocation23], 4294966768  ;;  %p6574_p7 = pmov %p6565_p0 }
 0x3c2   : > { %p6575_p2 = pmov %p6565_p0 }
 0x3c3   : > { %5260 = dma.done.wait (%p6574_p7), [#allocation26], 528  }
 0x3c4   : > { %5262 = vsyncadd (%p6575_p2), [#allocation26], 4294966768  ;;  %p6576_p5 = pmov %p6565_p0 }
 0x3c5   : > { %p6577_p11 = pmov %p6565_p0 }
 0x3c6   : > { %5264 = dma.done.wait (%p6576_p5), [#allocation29], 528  }
 0x3c7   : > { %5266 = vsyncadd (%p6577_p11), [#allocation29], 4294966768  ;;  %p6578_p4 = pmov %p6565_p0 }
 0x3c9   : > { %5268 = dma.done.wait (%p6578_p4), [#allocation32], 528  }
 0x3ca   : > { %5270 = vsyncadd (%p6565_p0), [#allocation32], 4294966768  ;;  %p6579_p8 = pmov %p6565_p0 }
 0x3cb   : > { %p6580_p9 = pmov %p6565_p0 }
 0x3cc   : > { %5272 = dma.done.wait (%p6579_p8), [#allocation35], 528  }
 0x3cd   : > { %5274 = vsyncadd (%p6580_p9), [#allocation35], 4294966768  ;;  %p6581_p6 = pmov %p6565_p0 }
 0x3ce   : > { %p6582_p1 = pmov %p6565_p0 }
 0x3cf   : > { %5276 = dma.done.wait (%p6581_p6), [#allocation38], 528  }
 0x3d0   : > { %5278 = vsyncadd (%p6582_p1), [#allocation38], 4294966768  ;;  %p6583_p12 = pmov %p6565_p0 }
 0x3d1   : > { %p6584_p13 = pmov %p6565_p0 }
 0x3d2   : > { %5280 = dma.done.wait (%p6583_p12), [#allocation41], 528  }
 0x3d3   : > { %5282 = vsyncadd (%p6584_p13), [#allocation41], 4294966768  ;;  %p6585_p10 = pmov %p6565_p0 }
 0x3d4   : > { %p6586_p3 = pmov %p6565_p0 }
 0x3d5   : > { %5284 = dma.done.wait (%p6585_p10), [#allocation44], 528  }
 0x3d6   : > { %5286 = vsyncadd (%p6586_p3), [#allocation44], 4294966768  ;;  %p6587_p7 = pmov %p6565_p0 }
 0x3d7   : > { %p6588_p2 = pmov %p6565_p0 }
 0x3d8   : > { %5288 = dma.done.wait (%p6587_p7), [#allocation47], 528  }
 0x3d9   : > { %5290 = vsyncadd (%p6588_p2), [#allocation47], 4294966768  ;;  %p6589_p5 = pmov %p6565_p0 }
 0x3da   : > { %p6590_p11 = pmov %p6565_p0 }
 0x3db   : > { %5292 = dma.done.wait (%p6589_p5), [#allocation50], 32  }
 0x3dc   : > { %5294 = vsyncadd (%p6590_p11), [#allocation50], 4294967264  ;;  %p6591_p4 = pmov %p6565_p0 }
 0x3de   : > { %5296 = dma.done.wait (%p6591_p4), [#allocation53], 32  }
 0x3df   : > { %5298 = vsyncadd (%p6565_p0), [#allocation53], 4294967264  ;;  %v5399_v2 = vmov 0   ;;  %v1565_v3 = vld [vmem:[%s6135_s8] sm:$0xff]  ;;  %v3483_v4 = vld [vmem:[%s6135_s8 + $0x8] sm:$0xff]  ;;  %v5400_v8 = vmov 0.0|0.0   ;;  %v1574_v16 = vlaneseq }
 0x3e0   : > { %4235 = vset.pattern.permute.xlu0 %v5399_v2  ;;  %4236 = vset.pattern.permute.xlu1 %v5399_v2  ;;  %v1701_v5 = vld [vmem:[#allocation13] sm:$0xff]  ;;  %v1702_v6 = vld [vmem:[#allocation13 + $0x8] sm:$0xff]  ;;  %v1703_v7 = vld [vmem:[#allocation13 + $0x10] sm:$0xff]  ;;  %vm5401_vm0 = vmmov 0   ;;  %v5402_v11 = vmov 0.0   ;;  %vm1727_vm13 = vcmask 261120  }
 0x3e1   : > { %1571 = vperm.xlu0 %4235, %v1565_v3   ;;  %3726 = vmatprep.subr.bf16.mxu0 %v5400_v8  ;;  %v3727_v9 = vpack.c.bf16 %v1702_v6, %v1701_v5  ;;  %v1704_v10 = vld [vmem:[#allocation13 + $0x18] sm:$0xff]  ;;  %v1706_v13 = vld [vmem:[#allocation16] sm:$0xff]  ;;  %v1707_v14 = vld [vmem:[#allocation16 + $0x8] sm:$0xff]  ;;  %v6217_v17 = vshrl.u32 %v1574_v16, 7  ;;  %v5403_v40 = vmov 683565275  }
 0x3e2   : > { %3602 = vmatprep.mubr.msk.f32.mxu0 %vm5401_vm0, %v5402_v11  ;;  %3732 = vmatprep.subr.bf16.mxu1 %v5400_v8  ;;  %v3730_v12 = vpack.c.bf16 %v1704_v10, %v1703_v7  ;;  %v3733_v15 = vpack.c.bf16 %v1707_v14, %v1706_v13  ;;  %v1568_v20 = vld [vmem:[#allocation9] sm:$0x3]  ;;  %v6228_v27 = vld [vmem:[#allocation12] ss:$0 sm:$0xff]  ;;  %v5404_v42 = vmov 2475754826  }
 0x3e3   : > { %3613 = vmatprep.mubr.msk.f32.mxu1 %vm5401_vm0, %v5402_v11  ;;  %3728 = vmatpush3.bf16.msra.mxu0 %v3727_v9  ;;  %v1576_v18 = vsub.s32 0, %v6217_v17  ;;  %v1586_v19 = vsub.s32 1, %v6217_v17  ;;  %v5405_v45 = vmov 2131351028   ;;  %v5406_v48 = vmov 2102212464  }
 0x3e4   : > { %3729 = vmatprep.subr.bf16.mxu0 %v5400_v8  ;;  %3734 = vmatpush3.bf16.msra.mxu1 %v3733_v15  ;;  %v5407_v51 = vmov 920167782   ;;  %v5408_v54 = vmov 1326507024   ;;  %vm2423_vm15 = vcmask 57344   ;;  %s6314_s1 = scalar_lea.vmem [#allocation55], %s3448_s21 }
 0x3e5   : > { %1581 = vperm.xlu0 %4235, %v3483_v4   ;;  %3735 = vmatprep.subr.bf16.mxu1 %v5400_v8  ;;  %v1577_v22 = vrot.slane %v1568_v20, %v1576_v18  ;;  %v1587_v23 = vrot.slane %v1568_v20, %v1586_v19  ;;  %s6592_s2 = sld [smem:[#allocation108_spill]]  ;;  %s6593_s19 = sld [smem:[#allocation107_spill]] }
 0x3e6   : > { %s2969_s13 = sshll.u32 %s6314_s1, 4  ;;  %s2955_s25 = scalar_lea.sflag [#allocation6], %s6121_s9  ;;  %s6374_s13 = int_to_ptr.vmem [resolvable:$true] %s2969_s13 }
 0x3e7   : > { %3731 = vmatpush3.bf16.msra.mxu0 %v3730_v12  ;;  %s5175_s20 = scalar_lea.vmem %s6374_s13, 32  ;;  %p6594_p9 = scmp.ne.s32.totalorder %s6554_s4, 0 }
 0x3e8   : > { %3738 = vmatprep.subr.bf16.mxu0 %v5400_v8  ;;  %p5176_p8 = scmp.ne.s32.totalorder %s6374_s13, %s5175_s20  ;;  %s5409_s17 = smov [#allocation55]  }
 0x3e9   : > { %s5179_s15 = sshll.u32 %s5409_s17, 4  ;;  %s5180_s15 = int_to_ptr.vmem [resolvable:$false] %s5179_s15 }
 0x3ea   : > { %p5177_p6 = pnand %p5176_p8, %p6594_p9  ;;  %s5181_s28 = scalar_lea.vmem %s5180_s15, 64 }
 0x3eb   : > { %s3533_s6 = sshll.u32 %s6592_s2, 5  ;;  %p5182_p12 = scmp.lt.s32.totalorder %s6374_s13, %s5180_s15 }
 0x3ec   : > { %s6372_s14 = scalar_lea.hbm %s6593_s19, %s3533_s6  ;;  %p5178_p1 = pneg %p5177_p6 }
 0x3ed   : > { %p5183_p13 = scmp.lt.s32.totalorder %s5181_s28, %s5175_s20 }
 0x3ef   : > { %p5184_p10 = por %p5183_p13, %p5182_p12 }
 0x3f1   : > { %p5185_p3 = pnand %p5184_p10, %p5178_p1 }
 0x460   : > { %v1572_v21 = vpop.permute.xlu0 %1571 }
 0x461   : > { %v1578_v25 = vmul.f32 %v1577_v22, %v1572_v21 }
 0x464   : > { %v6225_v24 = vpop.permute.xlu0 %1581 }
 0x465   : > { %v1588_v26 = vmul.f32 %v1587_v23, %v6225_v24 }
 0x467   : > { %v1589_v28 = vadd.f32 %v1588_v26, %v1578_v25 }
 0x469   : > { %v6231_v29 = vadd.f32 %v6228_v27, %v1589_v28 }
 0x46b   : > { %v1600_v30 = vand.u32 2139095040, %v6231_v29  ;;  %v1597_v34 = vand.u32 2147483647, %v6231_v29  ;;  %vm1599_vm8 = vcmp.lt.s32.totalorder %v6231_v29, 0  ;;  %vm1689_vm14 = vweird.f32 %v6231_v29 }
 0x46d   : > { %v1601_v31 = vshrl.u32 %v1600_v30, 23  ;;  %v1604_v38 = vand.u32 8388607, %v1597_v34  ;;  %vm1598_vm9 = vcmp.le.f32.partialorder %v1597_v34, 0.7853982 }
 0x46f   : > { %v3485_v32 = vadd.s32 4294967169, %v1601_v31  ;;  %v1605_v56 = vor.u32 8388608, %v1604_v38 }
 0x471   : > { %v1607_v33 = vadd.s32 1, %v3485_v32  ;;  %v1645_v6 = vshll.u32 %v1605_v56, 8 }
 0x473   : > { %vm1608_vm1 = vcmp.gt.s32.totalorder %v1607_v33, 0 }
 0x474   : > { %v1609_v35 = vsel %vm1608_vm1, %v1607_v33, 0 }
 0x475   : > { %v1611_v36 = vand.u32 31, %v1609_v35  ;;  %v1610_v39 = vshrl.u32 %v1609_v35, 5 }
 0x477   : > { %v1612_v37 = vsub.s32 32, %v1611_v36  ;;  %v1614_v41 = vshll.u32 %v5403_v40, %v1611_v36  ;;  %v1617_v43 = vshll.u32 %v5404_v42, %v1611_v36  ;;  %v1620_v47 = vshll.u32 %v5405_v45, %v1611_v36 }
 0x478   : > { %v1623_v50 = vshll.u32 %v5406_v48, %v1611_v36  ;;  %v1626_v53 = vshll.u32 %v5407_v51, %v1611_v36  ;;  %vm1629_vm2 = vcmp.lt.s32.totalorder %v1610_v39, 1  ;;  %vm1632_vm3 = vcmp.lt.s32.totalorder %v1610_v39, 4 }
 0x479   : > { %v1615_v44 = vshrl.u32 %v5404_v42, %v1612_v37  ;;  %v1618_v46 = vshrl.u32 %v5405_v45, %v1612_v37  ;;  %v1621_v49 = vshrl.u32 %v5406_v48, %v1612_v37  ;;  %v1624_v52 = vshrl.u32 %v5407_v51, %v1612_v37 }
 0x47a   : > { %v1627_v55 = vshrl.u32 %v5408_v54, %v1612_v37  ;;  %v1613_v1 = vshrl.u32 %v5403_v40, %v1612_v37  ;;  %vm1631_vm4 = vcmp.lt.s32.totalorder %v1610_v39, 3  ;;  %vm1630_vm5 = vcmp.lt.s32.totalorder %v1610_v39, 2 }
 0x47b   : > { %v1616_v57 = vor.u32 %v1615_v44, %v1614_v41  ;;  %v1619_v58 = vor.u32 %v1618_v46, %v1617_v43  ;;  %v1622_v59 = vor.u32 %v1621_v49, %v1620_v47  ;;  %v1625_v60 = vor.u32 %v1624_v52, %v1623_v50 }
 0x47c   : > { %v1628_v61 = vor.u32 %v1627_v55, %v1626_v53 }
 0x47d   : > { %v1634_v62 = vsel %vm1632_vm3, %v1622_v59, 2102212464  ;;  %v1637_v63 = vsel %vm1629_vm2, %v1616_v57, %v1619_v58  ;;  %v1641_v0 = vsel %vm1629_vm2, %v1619_v58, %v1622_v59  ;;  %v1638_v2 = vsel %vm1632_vm3, %v1625_v60, 920167782 }
 0x47e   : > { %v1642_v3 = vsel %vm1632_vm3, %v1628_v61, 1326507024  ;;  %v1639_v4 = vsel %vm1631_vm4, %v1622_v59, %v1638_v2  ;;  %v1633_v7 = vsel %vm1629_vm2, %v1613_v1, %v1616_v57  ;;  %v1635_v9 = vsel %vm1631_vm4, %v1619_v58, %v1634_v62 }
 0x47f   : > { %v1643_v5 = vsel %vm1631_vm4, %v1625_v60, %v1642_v3  ;;  %v1640_v10 = vsel %vm1630_vm5, %v1637_v63, %v1639_v4  ;;  %v1636_v21 = vsel %vm1630_vm5, %v1633_v7, %v1635_v9  ;;  %v1708_v9 = vld [vmem:[#allocation16 + $0x10] sm:$0xff] }
 0x480   : > { %v1644_v12 = vsel %vm1630_vm5, %v1641_v0, %v1643_v5  ;;  %v6251_v15 = vmul.u32.u64.low %v1645_v6, %v1640_v10  ;;  %v6252_v20 = vmul.u32.u64.high %v1645_v6, %v1640_v10, %v6251_v15  ;;  %v1652_v23 = vmul.u32 %v1645_v6, %v1636_v21  ;;  %v1709_v10 = vld [vmem:[#allocation16 + $0x18] sm:$0xff] }
 0x481   : > { %v6248_v13 = vmul.u32.u64.low %v1645_v6, %v1644_v12  ;;  %v6249_v14 = vmul.u32.u64.high %v1645_v6, %v1644_v12, %v6248_v13  ;;  %v3736_v12 = vpack.c.bf16 %v1709_v10, %v1708_v9  ;;  %v3498_v9 = vld [vmem:[#allocation27] ss:$0 sm:$0xff] }
 0x482   : > { %v1655_v22 = vadd.s32 1, %v6252_v20  ;;  %v3489_v13 = vld [vmem:[#allocation15] ss:$0 sm:$0xff] }
 0x483   : > { %vm1654_vm6 = vc.u32 %v6249_v14, %v6251_v15  ;;  %v1653_v39 = vadd.s32 %v6251_v15, %v6249_v14  ;;  %3737 = vmatpush3.bf16.msra.mxu1 %v3736_v12 }
 0x484   : > { %v1656_v25 = vsel %vm1654_vm6, %v1655_v22, %v6252_v20  ;;  %3744 = vmatprep.subr.bf16.mxu1 %v5400_v8  ;;  %v1712_v22 = vld [vmem:[#allocation19 + $0x8] sm:$0xff] }
 0x485   : > { %v1657_v26 = vadd.s32 %v1656_v25, %v1652_v23  ;;  %v1713_v25 = vld [vmem:[#allocation19 + $0x10] sm:$0xff] }
 0x487   : > { %v1658_v28 = vadd.s32 536870912, %v1657_v26 }
 0x489   : > { %v1659_v30 = vshrl.u32 %v1658_v28, 30 }
 0x48b   : > { %v1660_v31 = vshll.u32 %v1659_v30, 30  ;;  %v1683_v57 = vsub.s32 4, %v1659_v30 }
 0x48d   : > { %v1661_v32 = vsub.s32 %v1657_v26, %v1660_v31  ;;  %v1684_v60 = vsel %vm1599_vm8, %v1683_v57, %v1659_v30  ;;  %v1714_v26 = vld [vmem:[#allocation19 + $0x18] sm:$0xff] }
 0x48e   : > { %v1686_v62 = vsel %vm1598_vm9, 0, %v1684_v60  ;;  %v3742_v28 = vpack.c.bf16 %v1714_v26, %v1713_v25  ;;  %v3491_v30 = vld [vmem:[#allocation18] ss:$0 sm:$0xff]  ;;  %v3500_v25 = vld [vmem:[#allocation30] ss:$0 sm:$0xff] }
 0x48f   : > { %v1663_v33 = vsub.s32 0, %v1661_v32  ;;  %v1690_v63 = vadd.s32 3, %v1686_v62  ;;  %v2056_v62 = vld [vmem:[#allocation28 + $0x8] sm:$0xff] }
 0x491   : > { %v3486_v35 = vmin.u32 %v1663_v33, %v1661_v32  ;;  %v1691_v0 = vand.u32 3, %v1690_v63 }
 0x493   : > { %v1665_v36 = vclz %v3486_v35  ;;  %vm1696_vm10 = vcmp.eq.s32.totalorder %v1691_v0, 2  ;;  %vm1693_vm11 = vcmp.eq.s32.totalorder %v1691_v0, 0  ;;  %vm1692_vm12 = vcmp.lt.s32.totalorder %v1691_v0, 2  ;;  %v3495_v0 = vld [vmem:[#allocation24] ss:$0 sm:$0xff] }
 0x495   : > { %v3487_v37 = vadd.s32 4294967294, %v1665_v36 }
 0x497   : > { %vm3488_vm7 = vcmp.lt.s32.totalorder %v3487_v37, 0 }
 0x498   : > { %v1668_v38 = vsel %vm3488_vm7, 0, %v3487_v37  ;;  %v1716_v37 = vld [vmem:[#allocation22] sm:$0xff] }
 0x499   : > { %v1669_v41 = vsub.s32 32, %v1668_v38  ;;  %v1673_v43 = vsub.s32 4294967266, %v1668_v38  ;;  %v1670_v44 = vshll.u32 %v1661_v32, %v1668_v38  ;;  %v1717_v38 = vld [vmem:[#allocation22 + $0x8] sm:$0xff] }
 0x49b   : > { %v1671_v46 = vshrl.u32 %v1653_v39, %v1669_v41  ;;  %v1674_v47 = vadd.s32 127, %v1673_v43  ;;  %v3745_v39 = vpack.c.bf16 %v1717_v38, %v1716_v37  ;;  %v1718_v41 = vld [vmem:[#allocation22 + $0x10] sm:$0xff]  ;;  %v1719_v43 = vld [vmem:[#allocation22 + $0x18] sm:$0xff]  ;;  %v2068_v38 = vld [vmem:[#allocation34 + $0x18] sm:$0xff] }
 0x49c   : > { %v2067_v37 = vld [vmem:[#allocation34 + $0x10] sm:$0xff] }
 0x49d   : > { %v1672_v49 = vor.u32 %v1671_v46, %v1670_v44  ;;  %v1675_v50 = vshll.u32 %v1674_v47, 23  ;;  %v3748_v44 = vpack.c.bf16 %v1719_v43, %v1718_v41  ;;  %v2050_v46 = vld [vmem:[#allocation25] sm:$0xff]  ;;  %v2051_v47 = vld [vmem:[#allocation25 + $0x8] sm:$0xff] }
 0x49e   : > { %v3502_v41 = vld [vmem:[#allocation33] ss:$0 sm:$0xff] }
 0x49f   : > { %v1676_v52 = vor.u32 4788187, %v1675_v50  ;;  %v1679_v55 = vcvt.s32.f32 %v1672_v49  ;;  %v3751_v49 = vpack.c.bf16 %v2051_v47, %v2050_v46  ;;  %v3493_v50 = vld [vmem:[#allocation21] ss:$0 sm:$0xff] }
 0x4a1   : > { %v1677_v53 = vand.u32 2147483647, %v1676_v52 }
 0x4a3   : > { %v1680_v56 = vmul.f32 %v1679_v55, %v1677_v53 }
 0x4a5   : > { %v1681_v58 = vxor.u32 2147483648, %v1680_v56 }
 0x4a7   : > { %v1682_v59 = vsel %vm1599_vm8, %v1681_v58, %v1680_v56  ;;  %v2052_v58 = vld [vmem:[#allocation25 + $0x10] sm:$0xff] }
 0x4a8   : > { %v1685_v61 = vsel %vm1598_vm9, %v6231_v29, %v1682_v59  ;;  %v1711_v29 = vld [vmem:[#allocation19] sm:$0xff] }
 0x4a9   : > { %4237 = vcosq.f32 %v1685_v61  ;;  %v3739_v23 = vpack.c.bf16 %v1712_v22, %v1711_v29  ;;  %v2053_v59 = vld [vmem:[#allocation25 + $0x18] sm:$0xff] }
 0x4aa   : > { %4239 = vsinq.f32 %v1685_v61  ;;  %v3754_v60 = vpack.c.bf16 %v2053_v59, %v2052_v58  ;;  %v2055_v61 = vld [vmem:[#allocation28] sm:$0xff]  ;;  %v2062_v29 = vld [vmem:[#allocation31 + $0x10] sm:$0xff] }
 0x4ab   : > { %v3757_v63 = vpack.c.bf16 %v2056_v62, %v2055_v61  ;;  %v2063_v22 = vld [vmem:[#allocation31 + $0x18] sm:$0xff]  ;;  %v3507_v61 = vld [vmem:[#allocation2] ss:$0 sm:$0xff] }
 0x4b3   : > { %v4238_v1 = vpop.eup %4237 }
 0x4b4   : > { %v4240_v2 = vpop.eup %4239  ;;  %v1697_v3 = vxor.u32 2147483648, %v4238_v1 }
 0x4b5   : > { %v1694_v4 = vxor.u32 2147483648, %v4240_v2 }
 0x4b6   : > { %v1698_v5 = vsel %vm1696_vm10, %v1697_v3, %v4240_v2 }
 0x4b7   : > { %v1695_v6 = vsel %vm1693_vm11, %v4238_v1, %v1694_v4  ;;  %v3497_v1 = vld [vmem:[%s6127_s18] ss:$0 sm:$0xff] }
 0x4b8   : > { %v1699_v34 = vsel %vm1692_vm12, %v1695_v6, %v1698_v5  ;;  %v2057_v6 = vld [vmem:[#allocation28 + $0x10] sm:$0xff] }
 0x4b9   : > { %v1700_v7 = vsel %vm1689_vm14, nan, %v1699_v34  ;;  %v2058_v34 = vld [vmem:[#allocation28 + $0x18] sm:$0xff] }
 0x4ba   : > { %3603 = vmatmul.mubr.msk.f32.vlgmr.msra.gmra.mrb[0].mxu0 %vm1727_vm13, %v1700_v7  ;;  %v3760_v7 = vpack.c.bf16 %v2058_v34, %v2057_v6 }
 0x4bb   : > { %3624 = vmatprep.mubr.msk.f32.mxu0 %vm5401_vm0, %v5402_v11  ;;  %3740 = vmatpush3.bf16.msra.mxu0 %v3739_v23  ;;  %v3766_v23 = vpack.c.bf16 %v2063_v22, %v2062_v29 }
 0x4bc   : > { %3741 = vmatprep.subr.bf16.mxu0 %v5400_v8 }
 0x4bf   : > { %3743 = vmatpush3.bf16.msra.mxu0 %v3742_v28 }
 0x4c0   : > { %3750 = vmatprep.subr.bf16.mxu0 %v5400_v8 }
 0x58d   : > { %v1797_v14 = vpop.f32.mrb[0].mxu0 }
 0x58e   : > { %v1798_v15 = vadd.f32 %v3489_v13, %v1797_v14  ;;  %v3604_v20 = vpop.f32.mrb[1].mxu0 }
 0x58f   : > { %v2061_v20 = vld [vmem:[#allocation31 + $0x8] sm:$0xff] }
 0x590   : > { %v1801_v21 = vmax.f32 %v1798_v15, 0.0  ;;  %v2060_v15 = vld [vmem:[#allocation31] sm:$0xff] }
 0x592   : > { %3614 = vmatmul.mubr.msk.f32.vlgmr.msra.gmra.mrb[0].mxu1 %vm1727_vm13, %v1801_v21 }
 0x593   : > { %3635 = vmatprep.mubr.msk.f32.mxu1 %vm5401_vm0, %v5402_v11  ;;  %3746 = vmatpush3.bf16.msra.mxu1 %v3745_v39  ;;  %v3772_v39 = vpack.c.bf16 %v2068_v38, %v2067_v37 }
 0x594   : > { %3747 = vmatprep.subr.bf16.mxu1 %v5400_v8 }
 0x597   : > { %3749 = vmatpush3.bf16.msra.mxu1 %v3748_v44 }
 0x598   : > { %3756 = vmatprep.subr.bf16.mxu1 %v5400_v8 }
 0x665   : > { %v1877_v31 = vpop.f32.mrb[0].mxu1 }
 0x666   : > { %v1878_v32 = vadd.f32 %v3491_v30, %v1877_v31  ;;  %v3615_v33 = vpop.f32.mrb[1].mxu1 }
 0x667   : > { %v2065_v33 = vld [vmem:[#allocation34] sm:$0xff] }
 0x668   : > { %v1881_v35 = vmax.f32 %v1878_v32, 0.0 }
 0x66a   : > { %v1882_v36 = vadd.f32 %v1881_v35, %v1801_v21  ;;  %v3763_v21 = vpack.c.bf16 %v2061_v20, %v2060_v15  ;;  %v2066_v35 = vld [vmem:[#allocation34 + $0x8] sm:$0xff] }
 0x66c   : > { %3625 = vmatmul.mubr.msk.f32.vlgmr.msra.gmra.mrb[2].mxu0 %vm1727_vm13, %v1882_v36 }
 0x66d   : > { %3646 = vmatprep.mubr.msk.f32.mxu0 %vm5401_vm0, %v5402_v11  ;;  %3752 = vmatpush3.bf16.msra.mxu0 %v3751_v49 }
 0x66e   : > { %3753 = vmatprep.subr.bf16.mxu0 %v5400_v8 }
 0x671   : > { %3755 = vmatpush3.bf16.msra.mxu0 %v3754_v60 }
 0x672   : > { %3762 = vmatprep.subr.bf16.mxu0 %v5400_v8 }
 0x73f   : > { %v1958_v52 = vpop.f32.mrb[2].mxu0 }
 0x740   : > { %v1959_v53 = vadd.f32 %v3493_v50, %v1958_v52  ;;  %v3626_v55 = vpop.f32.mrb[3].mxu0  ;;  %v3504_v50 = vld [vmem:[#allocation36] ss:$0 sm:$0xff] }
 0x742   : > { %v1962_v56 = vmax.f32 %v1959_v53, 0.0 }
 0x744   : > { %v1963_v57 = vadd.f32 %v1962_v56, %v1882_v36  ;;  %v3769_v36 = vpack.c.bf16 %v2066_v35, %v2065_v33 }
 0x746   : > { %3636 = vmatmul.mubr.msk.f32.vlgmr.msra.gmra.mrb[2].mxu1 %vm1727_vm13, %v1963_v57  ;;  %v3506_v57 = vld [vmem:[#allocation37] ss:$0 sm:$0xff] }
 0x747   : > { %3657 = vmatprep.mubr.msk.f32.mxu1 %vm5401_vm0, %v5402_v11  ;;  %3758 = vmatpush3.bf16.msra.mxu1 %v3757_v63 }
 0x748   : > { %3759 = vmatprep.subr.bf16.mxu1 %v5400_v8 }
 0x74b   : > { %3761 = vmatpush3.bf16.msra.mxu1 %v3760_v7 }
 0x74c   : > { %3768 = vmatprep.subr.bf16.mxu1 %v5400_v8 }
 0x819   : > { %v2039_v2 = vpop.f32.mrb[2].mxu1 }
 0x81a   : > { %v2040_v3 = vadd.f32 %v3495_v0, %v2039_v2  ;;  %v3637_v4 = vpop.f32.mrb[3].mxu1  ;;  %v2417_v0 = vand.u32 127, %v1574_v16 }
 0x81c   : > { %v2049_v5 = vmul.f32 %v3497_v1, %v2040_v3  ;;  %v2425_v1 = vld [vmem:[#allocation10] sm:$0x3]  ;;  %v6306_v3 = vsub.s32 %v2417_v0, %v6217_v17 }
 0x81d   : > { %v2435_v2 = vrot.slane %v2425_v1, %v1586_v19  ;;  %v2430_v4 = vrot.slane %v2425_v1, %v1576_v18 }
 0x81e   : > { %3647 = vmatmul.mubr.msk.f32.vlgmr.msra.gmra.mrb[4].mxu0 %vm1727_vm13, %v2049_v5 }
 0x81f   : > { %3668 = vmatprep.mubr.msk.f32.mxu0 %vm5401_vm0, %v5402_v11  ;;  %3764 = vmatpush3.bf16.msra.mxu0 %v3763_v21  ;;  %v2436_v6 = vmul.f32 %v2435_v2, %v6225_v24 }
 0x820   : > { %3765 = vmatprep.subr.bf16.mxu0 %v5400_v8 }
 0x823   : > { %3767 = vmatpush3.bf16.msra.mxu0 %v3766_v23 }
 0x824   : > { %3774 = vmatprep.subr.bf16.mxu0 %v5400_v8 }
 0x8f1   : > { %v2147_v10 = vpop.f32.mrb[4].mxu0 }
 0x8f2   : > { %v2148_v12 = vadd.f32 %v3498_v9, %v2147_v10  ;;  %v3648_v13 = vpop.f32.mrb[5].mxu0 }
 0x8f4   : > { %v2151_v14 = vmax.f32 %v2148_v12, 0.0 }
 0x8f6   : > { %3658 = vmatmul.mubr.msk.f32.vlgmr.msra.gmra.mrb[4].mxu1 %vm1727_vm13, %v2151_v14 }
 0x8f7   : > { %3679 = vmatprep.mubr.msk.f32.mxu1 %vm5401_vm0, %v5402_v11  ;;  %3770 = vmatpush3.bf16.msra.mxu1 %v3769_v36 }
 0x8f8   : > { %3771 = vmatprep.subr.bf16.mxu1 %v5400_v8 }
 0x8fb   : > { %3773 = vmatpush3.bf16.msra.mxu1 %v3772_v39 }
 0x8fc   : > { %3780 = vmatprep.subr.bf16.mxu1 %v5400_v8 }
 0x9c9   : > { %v2227_v26 = vpop.f32.mrb[4].mxu1 }
 0x9ca   : > { %v2228_v28 = vadd.f32 %v3500_v25, %v2227_v26  ;;  %v3659_v30 = vpop.f32.mrb[5].mxu1 }
 0x9cc   : > { %v2231_v31 = vmax.f32 %v2228_v28, 0.0 }
 0x9ce   : > { %v2232_v32 = vadd.f32 %v2231_v31, %v2151_v14 }
 0x9d0   : > { %3669 = vmatmul.mubr.msk.f32.vlgmr.msra.gmra.mrb[6].mxu0 %vm1727_vm13, %v2232_v32 }
 0x9d1   : > { %3690 = vmatprep.mubr.msk.f32.mxu0 %vm5401_vm0, %v5402_v11 }
 0xaa3   : > { %v2308_v43 = vpop.f32.mrb[6].mxu0 }
 0xaa4   : > { %v2309_v44 = vadd.f32 %v3502_v41, %v2308_v43  ;;  %v3670_v46 = vpop.f32.mrb[7].mxu0 }
 0xaa6   : > { %v2312_v47 = vmax.f32 %v2309_v44, 0.0 }
 0xaa8   : > { %v2313_v49 = vadd.f32 %v2312_v47, %v2232_v32 }
 0xaaa   : > { %3680 = vmatmul.mubr.msk.f32.vlgmr.msra.gmra.mrb[6].mxu1 %vm1727_vm13, %v2313_v49 }
 0xaab   : > { %3701 = vmatprep.mubr.msk.f32.mxu1 %vm5401_vm0, %v5402_v11 }
 0xb7d   : > { %v2389_v52 = vpop.f32.mrb[6].mxu1 }
 0xb7e   : > { %v2390_v53 = vadd.f32 %v3504_v50, %v2389_v52  ;;  %v3681_v55 = vpop.f32.mrb[7].mxu1 }
 0xb80   : > { %v2393_v56 = vmax.f32 %v2390_v53, 0.0 }
 0xb82   : > { %v2394_v58 = vadd.f32 %v2393_v56, %v2313_v49 }
 0xb84   : > { %v2401_v59 = vmul.f32 %v3506_v57, %v2394_v58 }
 0xb86   : > { %v2402_v60 = vsel %vm1727_vm13, %v2401_v59, 0.0 }
 0xb87   : > { %2403 = vadd.xlane.f32.xlu1 %v2402_v60 }
 0xc14   : > { %v2404_v62 = vpop.xlane.xlu1 %2403 }
 0xc15   : > { %v2411_v63 = vadd.f32 %v3507_v61, %v2404_v62 }
 0xc17   : > { %2414 = vperm.xlu1 %4236, %v2411_v63  }
 0xc96   : > { %v2415_v5 = vpop.permute.xlu1 %2414 }
 0xc97   : > { %v2421_v34 = vrot.slane %v2415_v5, %v6306_v3  ;;  %v2431_v7 = vmul.f32 %v2430_v4, %v2415_v5 }
 0xc99   : > { %2424 = vst.msk [vmem:[%s6314_s1] sm:$0x1] %vm2423_vm15, %v2421_v34  ;;  %v2437_v16 = vadd.f32 %v2436_v6, %v2431_v7 }
 0xc9b   : > { %v6319_v19 = vadd.f32 %v6228_v27, %v2437_v16 }
 0xc9d   : > { %v2442_v17 = vand.u32 2139095040, %v6319_v19  ;;  %v2439_v24 = vand.u32 2147483647, %v6319_v19  ;;  %vm2441_vm8 = vcmp.lt.s32.totalorder %v6319_v19, 0  ;;  %vm2531_vm14 = vweird.f32 %v6319_v19 }
 0xc9f   : > { %v2443_v18 = vshrl.u32 %v2442_v17, 23  ;;  %v2446_v15 = vand.u32 8388607, %v2439_v24  ;;  %vm2440_vm9 = vcmp.le.f32.partialorder %v2439_v24, 0.7853982 }
 0xca1   : > { %v3508_v9 = vadd.s32 4294967169, %v2443_v18  ;;  %v2447_v32 = vor.u32 8388608, %v2446_v15 }
 0xca3   : > { %v2449_v10 = vadd.s32 1, %v3508_v9 }
 0xca5   : > { %vm2450_vm1 = vcmp.gt.s32.totalorder %v2449_v10, 0 }
 0xca6   : > { %v2451_v12 = vsel %vm2450_vm1, %v2449_v10, 0 }
 0xca7   : > { %v2453_v13 = vand.u32 31, %v2451_v12  ;;  %v2452_v20 = vshrl.u32 %v2451_v12, 5 }
 0xca9   : > { %v2454_v14 = vsub.s32 32, %v2453_v13  ;;  %v2456_v21 = vshll.u32 %v5403_v40, %v2453_v13  ;;  %v2459_v27 = vshll.u32 %v5404_v42, %v2453_v13  ;;  %v2462_v23 = vshll.u32 %v5405_v45, %v2453_v13 }
 0xcaa   : > { %v2465_v26 = vshll.u32 %v5406_v48, %v2453_v13  ;;  %v2468_v30 = vshll.u32 %v5407_v51, %v2453_v13  ;;  %vm2471_vm2 = vcmp.lt.s32.totalorder %v2452_v20, 1  ;;  %vm2474_vm3 = vcmp.lt.s32.totalorder %v2452_v20, 4 }
 0xcab   : > { %v2457_v29 = vshrl.u32 %v5404_v42, %v2454_v14  ;;  %v2460_v22 = vshrl.u32 %v5405_v45, %v2454_v14  ;;  %v2463_v25 = vshrl.u32 %v5406_v48, %v2454_v14  ;;  %v2466_v28 = vshrl.u32 %v5407_v51, %v2454_v14 }
 0xcac   : > { %v2469_v31 = vshrl.u32 %v5408_v54, %v2454_v14  ;;  %v2455_v41 = vshrl.u32 %v5403_v40, %v2454_v14  ;;  %vm2473_vm4 = vcmp.lt.s32.totalorder %v2452_v20, 3  ;;  %vm2472_vm5 = vcmp.lt.s32.totalorder %v2452_v20, 2 }
 0xcad   : > { %v2458_v33 = vor.u32 %v2457_v29, %v2456_v21  ;;  %v2461_v35 = vor.u32 %v2460_v22, %v2459_v27  ;;  %v2464_v36 = vor.u32 %v2463_v25, %v2462_v23  ;;  %v2467_v37 = vor.u32 %v2466_v28, %v2465_v26 }
 0xcae   : > { %v2470_v42 = vor.u32 %v2469_v31, %v2468_v30  ;;  %v2487_v54 = vshll.u32 %v2447_v32, 8 }
 0xcaf   : > { %v2476_v38 = vsel %vm2474_vm3, %v2464_v36, 2102212464  ;;  %v2479_v45 = vsel %vm2471_vm2, %v2458_v33, %v2461_v35  ;;  %v2483_v39 = vsel %vm2471_vm2, %v2461_v35, %v2464_v36  ;;  %v2480_v48 = vsel %vm2474_vm3, %v2467_v37, 920167782 }
 0xcb0   : > { %v2484_v43 = vsel %vm2474_vm3, %v2470_v42, 1326507024  ;;  %v2481_v51 = vsel %vm2473_vm4, %v2464_v36, %v2480_v48  ;;  %v2475_v46 = vsel %vm2471_vm2, %v2455_v41, %v2458_v33  ;;  %v2477_v47 = vsel %vm2473_vm4, %v2461_v35, %v2476_v38  ;;  %v3512_v36 = vld [vmem:[%s6127_s18 + $0x1] ss:$0 sm:$0xff] }
 0xcb1   : > { %v2485_v44 = vsel %vm2473_vm4, %v2467_v37, %v2484_v43  ;;  %v2482_v49 = vsel %vm2472_vm5, %v2479_v45, %v2481_v51  ;;  %v2478_v57 = vsel %vm2472_vm5, %v2475_v46, %v2477_v47  ;;  %v2583_v47 = vld [vmem:[#allocation39 + $0x10] sm:$0xff] }
 0xcb2   : > { %v2486_v50 = vsel %vm2472_vm5, %v2483_v39, %v2485_v44  ;;  %v6339_v55 = vmul.u32.u64.low %v2487_v54, %v2482_v49  ;;  %v6340_v56 = vmul.u32.u64.high %v2487_v54, %v2482_v49, %v6339_v55  ;;  %v2494_v58 = vmul.u32 %v2487_v54, %v2478_v57  ;;  %v2581_v44 = vld [vmem:[#allocation39] sm:$0xff]  ;;  %v2584_v49 = vld [vmem:[#allocation39 + $0x18] sm:$0xff] }
 0xcb3   : > { %v6336_v52 = vmul.u32.u64.low %v2487_v54, %v2486_v50  ;;  %v6337_v53 = vmul.u32.u64.high %v2487_v54, %v2486_v50, %v6336_v52  ;;  %v2582_v54 = vld [vmem:[#allocation39 + $0x8] sm:$0xff] }
 0xcb4   : > { %v2497_v40 = vadd.s32 1, %v6340_v56  ;;  %v3775_v46 = vpack.c.bf16 %v2582_v54, %v2581_v44  ;;  %v2586_v50 = vld [vmem:[#allocation42] sm:$0xff]  ;;  %v2587_v52 = vld [vmem:[#allocation42 + $0x8] sm:$0xff] }
 0xcb5   : > { %vm2496_vm6 = vc.u32 %v6337_v53, %v6339_v55  ;;  %v2495_v34 = vadd.s32 %v6339_v55, %v6337_v53  ;;  %v3781_v53 = vpack.c.bf16 %v2587_v52, %v2586_v50 }
 0xcb6   : > { %v2498_v59 = vsel %vm2496_vm6, %v2497_v40, %v6340_v56  ;;  %3776 = vmatpush3.bf16.msra.mxu0 %v3775_v46 }
 0xcb7   : > { %v2499_v60 = vadd.s32 %v2498_v59, %v2494_v58  ;;  %3777 = vmatprep.subr.bf16.mxu0 %v5400_v8  ;;  %3782 = vmatpush3.bf16.msra.mxu1 %v3781_v53  ;;  %v3513_v58 = vld [vmem:[#allocation52] ss:$0 sm:$0xff] }
 0xcb8   : > { %3783 = vmatprep.subr.bf16.mxu1 %v5400_v8 }
 0xcb9   : > { %v2500_v61 = vadd.s32 536870912, %v2499_v60 }
 0xcbb   : > { %v2501_v62 = vshrl.u32 %v2500_v61, 30 }
 0xcbd   : > { %v2502_v63 = vshll.u32 %v2501_v62, 30  ;;  %v2525_v21 = vsub.s32 4, %v2501_v62 }
 0xcbf   : > { %v2503_v0 = vsub.s32 %v2499_v60, %v2502_v63  ;;  %v2526_v22 = vsel %vm2441_vm8, %v2525_v21, %v2501_v62  ;;  %v3514_v60 = vld [vmem:[#allocation54] ss:$0 sm:$0xff] }
 0xcc0   : > { %v2528_v25 = vsel %vm2440_vm9, 0, %v2526_v22 }
 0xcc1   : > { %v2505_v1 = vsub.s32 0, %v2503_v0  ;;  %v2532_v26 = vadd.s32 3, %v2528_v25  ;;  %v2599_v25 = vld [vmem:[#allocation48 + $0x18] sm:$0xff] }
 0xcc3   : > { %v3509_v2 = vmin.u32 %v2505_v1, %v2503_v0  ;;  %v2533_v28 = vand.u32 3, %v2532_v26  ;;  %v2589_v1 = vld [vmem:[#allocation42 + $0x18] sm:$0xff] }
 0xcc5   : > { %v2507_v4 = vclz %v3509_v2  ;;  %vm2538_vm10 = vcmp.eq.s32.totalorder %v2533_v28, 2  ;;  %vm2535_vm11 = vcmp.eq.s32.totalorder %v2533_v28, 0  ;;  %vm2534_vm12 = vcmp.lt.s32.totalorder %v2533_v28, 2  ;;  %v3519_v28 = vld [vmem:[#allocation46] ss:$0 sm:$0xff] }
 0xcc7   : > { %v3510_v5 = vadd.s32 4294967294, %v2507_v4  ;;  %v3515_v4 = vld [vmem:[#allocation40] ss:$0 sm:$0xff] }
 0xcc9   : > { %vm3511_vm7 = vcmp.lt.s32.totalorder %v3510_v5, 0 }
 0xcca   : > { %v2510_v6 = vsel %vm3511_vm7, 0, %v3510_v5 }
 0xccb   : > { %v2511_v7 = vsub.s32 32, %v2510_v6  ;;  %v2515_v16 = vsub.s32 4294967266, %v2510_v6  ;;  %v2512_v17 = vshll.u32 %v2503_v0, %v2510_v6  ;;  %v2588_v0 = vld [vmem:[#allocation42 + $0x10] sm:$0xff] }
 0xccc   : > { %v3784_v2 = vpack.c.bf16 %v2589_v1, %v2588_v0 }
 0xccd   : > { %v2513_v18 = vshrl.u32 %v2495_v34, %v2511_v7  ;;  %v2516_v9 = vadd.s32 127, %v2515_v16  ;;  %v2591_v16 = vld [vmem:[#allocation45] sm:$0xff] }
 0xcce   : > { %3785 = vmatpush3.bf16.msra.mxu1 %v3784_v2 }
 0xccf   : > { %v2514_v10 = vor.u32 %v2513_v18, %v2512_v17  ;;  %v2517_v12 = vshll.u32 %v2516_v9, 23  ;;  %3792 = vmatprep.subr.bf16.mxu1 %v5400_v8  ;;  %v2592_v17 = vld [vmem:[#allocation45 + $0x8] sm:$0xff]  ;;  %v2593_v9 = vld [vmem:[#allocation45 + $0x10] sm:$0xff] }
 0xcd0   : > { %v3787_v18 = vpack.c.bf16 %v2592_v17, %v2591_v16 }
 0xcd1   : > { %v2518_v13 = vor.u32 4788187, %v2517_v12  ;;  %v2521_v15 = vcvt.s32.f32 %v2514_v10  ;;  %v2594_v10 = vld [vmem:[#allocation45 + $0x18] sm:$0xff] }
 0xcd2   : > { %v3790_v12 = vpack.c.bf16 %v2594_v10, %v2593_v9 }
 0xcd3   : > { %v2519_v14 = vand.u32 2147483647, %v2518_v13  ;;  %v3517_v13 = vld [vmem:[#allocation43] ss:$0 sm:$0xff] }
 0xcd5   : > { %v2522_v20 = vmul.f32 %v2521_v15, %v2519_v14 }
 0xcd7   : > { %v2523_v27 = vxor.u32 2147483648, %v2522_v20 }
 0xcd9   : > { %v2524_v29 = vsel %vm2441_vm8, %v2523_v27, %v2522_v20 }
 0xcda   : > { %v2527_v23 = vsel %vm2440_vm9, %v6319_v19, %v2524_v29  ;;  %v3778_v19 = vpack.c.bf16 %v2584_v49, %v2583_v47  ;;  %v2596_v29 = vld [vmem:[#allocation48] sm:$0xff] }
 0xcdb   : > { %4241 = vcosq.f32 %v2527_v23 }
 0xcdc   : > { %4243 = vsinq.f32 %v2527_v23  ;;  %3779 = vmatpush3.bf16.msra.mxu0 %v3778_v19  ;;  %v2598_v23 = vld [vmem:[#allocation48 + $0x10] sm:$0xff] }
 0xcdd   : > { %3786 = vmatprep.subr.bf16.mxu0 %v5400_v8  ;;  %v3796_v26 = vpack.c.bf16 %v2599_v25, %v2598_v23 }
 0xce5   : > { %v4242_v30 = vpop.eup %4241 }
 0xce6   : > { %v4244_v31 = vpop.eup %4243  ;;  %v2539_v32 = vxor.u32 2147483648, %v4242_v30 }
 0xce7   : > { %v2536_v33 = vxor.u32 2147483648, %v4244_v31 }
 0xce8   : > { %v2540_v35 = vsel %vm2538_vm10, %v2539_v32, %v4244_v31 }
 0xce9   : > { %v2537_v24 = vsel %vm2535_vm11, %v4242_v30, %v2536_v33 }
 0xcea   : > { %v2541_v37 = vsel %vm2534_vm12, %v2537_v24, %v2540_v35 }
 0xceb   : > { %v2542_v42 = vsel %vm2531_vm14, nan, %v2541_v37 }
 0xcec   : > { %v2549_v38 = vadd.f32 %v3512_v36, %v2542_v42  ;;  %v3521_v36 = vld [vmem:[#allocation49] ss:$0 sm:$0xff] }
 0xcee   : > { %v2552_v45 = vsel %vm1727_vm13, %v2549_v38, 0.0 }
 0xcef   : > { %2553 = vadd.xlane.f32.xlu0 %v2552_v45 }
 0xd7c   : > { %v2554_v39 = vpop.xlane.xlu0 %2553 }
 0xd7d   : > { %v2556_v41 = vmul.f32 0.03125, %v2554_v39 }
 0xd7f   : > { %v2557_v48 = vsub.f32 %v2549_v38, %v2556_v41  ;;  %v3523_v38 = vld [vmem:[#allocation51] ss:$0 sm:$0xff] }
 0xd81   : > { %v2558_v43 = vmul.f32 %v2557_v48, %v2557_v48 }
 0xd83   : > { %v2559_v51 = vsel %vm1727_vm13, %v2558_v43, 0.0 }
 0xd84   : > { %2560 = vadd.xlane.f32.xlu1 %v2559_v51 }
 0xe11   : > { %v2561_v55 = vpop.xlane.xlu1 %2560 }
 0xe12   : > { %v2562_v56 = vmul.f32 0.03125, %v2561_v55 }
 0xe14   : > { %v2563_v57 = vadd.f32 1e-05, %v2562_v56 }
 0xe16   : > { %4245 = vrsqrt.f32 %v2563_v57 }
 0xe20   : > { %v4246_v40 = vpop.eup %4245 }
 0xe21   : > { %v2565_v59 = vmul.f32 %v4246_v40, %v2557_v48  ;;  %v3524_v48 = vld [vmem:[#allocation3] ss:$0 sm:$0xff] }
 0xe23   : > { %v2572_v61 = vmul.f32 %v3513_v58, %v2565_v59 }
 0xe25   : > { %v2579_v62 = vadd.f32 %v3514_v60, %v2572_v61 }
 0xe27   : > { %v2580_v63 = vmul.f32 %v2579_v62, %v2542_v42 }
 0xe29   : > { %3691 = vmatmul.mubr.msk.f32.vlgmr.msra.gmra.mrb[8].mxu0 %vm1727_vm13, %v2580_v63 }
 0xe2a   : > { %3712 = vmatprep.mubr.msk.f32.mxu0 %vm5401_vm0, %v5402_v11  ;;  %3788 = vmatpush3.bf16.msra.mxu0 %v3787_v18 }
 0xe2b   : > { %3789 = vmatprep.subr.bf16.mxu0 %v5400_v8 }
 0xe2e   : > { %3791 = vmatpush3.bf16.msra.mxu0 %v3790_v12 }
 0xefc   : > { %v2678_v5 = vpop.f32.mrb[8].mxu0 }
 0xefd   : > { %v2679_v6 = vadd.f32 %v3515_v4, %v2678_v5  ;;  %v3692_v34 = vpop.f32.mrb[9].mxu0 }
 0xeff   : > { %v2682_v7 = vmax.f32 %v2679_v6, 0.0 }
 0xf01   : > { %3702 = vmatmul.mubr.msk.f32.vlgmr.msra.gmra.mrb[8].mxu1 %vm1727_vm13, %v2682_v7 }
 0xf02   : > { %3723 = vmatprep.mubr.msk.f32.mxu1 %vm5401_vm0, %v5402_v11  ;;  %v2597_v11 = vld [vmem:[#allocation48 + $0x8] sm:$0xff] }
 0xf03   : > { %v3793_v22 = vpack.c.bf16 %v2597_v11, %v2596_v29 }
 0xf05   : > { %3794 = vmatpush3.bf16.msra.mxu1 %v3793_v22 }
 0xf06   : > { %3795 = vmatprep.subr.bf16.mxu1 %v5400_v8 }
 0xf09   : > { %3797 = vmatpush3.bf16.msra.mxu1 %v3796_v26 }
 0xfd4   : > { %v2758_v14 = vpop.f32.mrb[8].mxu1 }
 0xfd5   : > { %v2759_v15 = vadd.f32 %v3517_v13, %v2758_v14  ;;  %v3703_v20 = vpop.f32.mrb[9].mxu1 }
 0xfd7   : > { %v2762_v21 = vmax.f32 %v2759_v15, 0.0 }
 0xfd9   : > { %v2763_v27 = vadd.f32 %v2762_v21, %v2682_v7 }
 0xfdb   : > { %3713 = vmatmul.mubr.msk.f32.vlgmr.msra.gmra.mrb[10].mxu0 %vm1727_vm13, %v2763_v27 }
0x10ae   : > { %v2839_v30 = vpop.f32.mrb[10].mxu0 }
0x10af   : > { %v2840_v31 = vadd.f32 %v3519_v28, %v2839_v30  ;;  %v3714_v32 = vpop.f32.mrb[11].mxu0 }
0x10b1   : > { %v2843_v33 = vmax.f32 %v2840_v31, 0.0 }
0x10b3   : > { %v2844_v35 = vadd.f32 %v2843_v33, %v2763_v27 }
0x10b5   : > { %3724 = vmatmul.mubr.msk.f32.vlgmr.msra.gmra.mrb[10].mxu1 %vm1727_vm13, %v2844_v35 }
0x1188   : > { %v2920_v24 = vpop.f32.mrb[10].mxu1 }
0x1189   : > { %v2921_v37 = vadd.f32 %v3521_v36, %v2920_v24  ;;  %v3725_v42 = vpop.f32.mrb[11].mxu1 }
0x118b   : > { %v2924_v8 = vmax.f32 %v2921_v37, 0.0 }
0x118d   : > { %v2925_v45 = vadd.f32 %v2924_v8, %v2844_v35 }
0x118f   : > { %v2932_v39 = vmul.f32 %v3523_v38, %v2925_v45 }
0x1191   : > { %v2933_v41 = vsel %vm1727_vm13, %v2932_v39, 0.0 }
0x1192   : > { %2934 = vadd.xlane.f32.xlu0 %v2933_v41 }
0x121f   : > { %v2935_v43 = vpop.xlane.xlu0 %2934 }
0x1220   : > { %v2942_v51 = vadd.f32 %v3524_v48, %v2935_v43 }
0x1222   : > { %2945 = vperm.xlu0 %4235, %v2942_v51  }
0x12a1   : > { %v2946_v44 = vpop.permute.xlu0 %2945 }
0x12a2   : > { %v2950_v54 = vrot.slane %v2946_v44, %v6306_v3 }
0x12a4   : > { %3525 = vst.msk [vmem:[%s6314_s1 + $0x1] sm:$0x1] %vm2423_vm15, %v2950_v54 }
0x12a5   : > { %5188 = shalt.err (!%p5185_p3)
}
0x12a6   : > { %s5189_s21 = scalar_lea.hbm %s6372_s14, 32  ;;  %s5193_s10 = scalar_lea.hbm %s6593_s19, 64 }
0x12a7   : > { %p5190_p7 = scmp.ne.s32.totalorder %s6372_s14, %s5189_s21  ;;  %p5194_p11 = scmp.lt.u32.totalorder %s6372_s14, %s6593_s19 }
0x12a8   : > { %p5195_p4 = scmp.lt.u32.totalorder %s5193_s10, %s5189_s21  ;;  %p5197_p8 = scmp.lt.u32.totalorder %s5189_s21, %s6372_s14 }
0x12a9   : > { %p5191_p2 = pnand %p5190_p7, %p6594_p9 }
0x12aa   : > { %p5196_p0 = por %p5195_p4, %p5194_p11 }
0x12ab   : > { %p5192_p5 = pneg %p5191_p2 }
0x12ac   : > { %p5198_p6 = por %p5197_p8, %p5196_p0 }
0x12ae   : > { %p5199_p1 = pnand %p5198_p6, %p5192_p5 }
0x12b0   : > { %5202 = shalt.err (!%p5199_p1)
}
0x12b1   : > { %s5410_s18 = smov 16   ;;  %s5411_s24 = smov 1  }
0x12b2   : > { %3934 = dma.vmem_to_hbm [thread:$0]  (%p6594_p9), %s6374_s13, 32, %s6372_s14, %s2955_s25, %s5410_s18, %s5410_s18, %s5411_s24  }
0x12b3 PF: > { %s2984_s27 = sand.u32 1, %s5305_s0   ;;  %p6595_p12 = scmp.ne.s32.totalorder %s6555_s3, 0 }
0x12b4   : > { %p6596_p13 = scmp.ge.s32.totalorder %s5325_s26, 2  ;;  %s2985_s11 = scalar_lea.sflag [#allocation6], %s2984_s27 }
0x12b6   : > { %p4038_p10 = pnand %p6596_p13, %p6595_p12 }
0x12b8   : > { %5300 = dma.done.wait (!%p4038_p10), %s2985_s11, 32  }
0x12b9   : > { %5302 = vsyncadd (!%p4038_p10), %s2985_s11, 4294967264  ;;  %s109_s26 = sadd.s32 1, %s5325_s26   ;;  %s6597_s0 = smov %s5309_s7 }
0x12ba   : > { %p106_p3 = scmp.ge.s32.totalorder %s109_s26, 4   ;;  %s6598_s7 = smov %s5313_s23 }
0x12bb   : > { %s6599_s23 = smov %s6037_s5  ;;  %s6600_s9 = smov %s5321_s22 }
0x12bc   : > { %s6601_s22 = smov %s6603_s12  ;;  %108 = sbr.rel (!%p106_p3) target bundleno = 97 (0x61), region = 380 }
0x12c3   :  { %2990 = vsyncpa [#allocation5], 1 }
0x12c4   :  { %2992 = vsyncpa [#allocation5 + $0x1], 1 }
0x12c5   :  { %2993 = vsyncpa [#allocation8], 1 }
0x12c6   :  { %2995 = vsyncpa [#allocation8 + $0x1], 1 }
0x12c7   :  { %2996 = vsyncpa [#allocation11], 1 }
0x12c8   :  { %2997 = vsyncpa [#allocation14], 1 }
0x12c9   :  { %2998 = vsyncpa [#allocation17], 1 }
0x12ca   :  { %2999 = vsyncpa [#allocation20], 1 }
0x12cb   :  { %3000 = vsyncpa [#allocation23], 1 }
0x12cc   :  { %3001 = vsyncpa [#allocation26], 1 }
0x12cd   :  { %3002 = vsyncpa [#allocation29], 1 }
0x12ce   :  { %3003 = vsyncpa [#allocation32], 1 }
0x12cf   :  { %3004 = vsyncpa [#allocation35], 1 }
0x12d0   :  { %3005 = vsyncpa [#allocation38], 1 }
0x12d1   :  { %3006 = vsyncpa [#allocation41], 1 }
0x12d2   :  { %3007 = vsyncpa [#allocation44], 1 }
0x12d3   :  { %3008 = vsyncpa [#allocation47], 1 }
0x12d4   :  { %3009 = vsyncpa [#allocation50], 1 }
0x12d5   :  { %3010 = vsyncpa [#allocation53], 1 }
0x12d6   :  { %3011 = vsyncpa [#allocation6], 1 }
0x12d7   :  { %3013 = vsyncpa [#allocation6 + $0x1], 1 }

</bundles_post_ra>
